<compile_context>
chip_gen: v7x
topology: tpu7x:2x2x1
jax: 0.10.0
libtpu: 0.0.40
codegen_flags: <defaults>
</compile_context>

<pallas_src>
import math
import functools

import jax
import jax.numpy as jnp
from jax.experimental import pallas as pl
from jax.experimental.pallas import tpu as pltpu


# ----------------------------- Fused Pallas kernel -----------------------------

def _fused_decoder_kernel(
    trg_ref, mem_ref,
    emb_w_ref, emb_b_ref,
    sa_qkv_w_ref, sa_qkv_b_ref, sa_out_w_ref, sa_out_b_ref,
    ca_qkv_w_ref, ca_qkv_b_ref, ca_out_w_ref, ca_out_b_ref,
    ff1_w_ref, ff1_b_ref, ff2_w_ref, ff2_b_ref,
    ln_g_ref, ln_b_ref,
    out_w_ref, out_b_ref,
    o_ref,
    *, nhead, num_layers, eps,
):
    S, D = mem_ref.shape
    hd = D // nhead

    # Additive causal mask built in-kernel (no HBM DMA). Large finite negative
    # instead of -inf so exp(s - max) can never produce NaN.
    rows = jax.lax.broadcasted_iota(jnp.int32, (S, S), 0)
    cols = jax.lax.broadcasted_iota(jnp.int32, (S, S), 1)
    neg_mask = jnp.where(cols > rows, jnp.float32(-1e30), jnp.float32(0.0))

    nt_dims = (((1,), (1,)), ((), ()))  # A @ B^T without explicit transpose

    def layer_norm(x, g, b):
        mean = jnp.mean(x, axis=-1, keepdims=True)
        var = jnp.mean(jnp.square(x - mean), axis=-1, keepdims=True)
        return (x - mean) * jax.lax.rsqrt(var + eps) * g + b

    def attention(q_src, kv_src, qkv_w_ref, qkv_b_ref, w_out_ref, b_out_ref, l):
        # qkv weights are pre-transposed to (in, out); q part pre-scaled by 1/sqrt(hd).
        q = jnp.dot(q_src, qkv_w_ref[l, 0], preferred_element_type=jnp.float32) + qkv_b_ref[l, 0]
        k = jnp.dot(kv_src, qkv_w_ref[l, 1], preferred_element_type=jnp.float32) + qkv_b_ref[l, 1]
        v = jnp.dot(kv_src, qkv_w_ref[l, 2], preferred_element_type=jnp.float32) + qkv_b_ref[l, 2]
        w_out = w_out_ref[l]          # (D, D), pre-transposed (in, out)
        b_out = b_out_ref[l]          # (1, D)

        acc = jnp.zeros((q_src.shape[0], D), jnp.float32)
        for h in range(nhead):
            qh = q[:, h * hd:(h + 1) * hd]
            kh = k[:, h * hd:(h + 1) * hd]
            vh = v[:, h * hd:(h + 1) * hd]
            s = jax.lax.dot_general(qh, kh, nt_dims,
                                    preferred_element_type=jnp.float32) + neg_mask
            s = s - jnp.max(s, axis=-1, keepdims=True)
            p = jnp.exp(s)
            p = p * pl.reciprocal(jnp.sum(p, axis=-1, keepdims=True), approx=True)
            ph = jnp.dot(p, vh, preferred_element_type=jnp.float32)          # (S, hd)
            # fold head output through its slice of the output projection (no lane concat)
            acc = acc + jnp.dot(ph, w_out[h * hd:(h + 1) * hd, :],
                                preferred_element_type=jnp.float32)
        return acc + b_out

    # embedding + positional encoding (PE row 0 pre-folded into emb bias; dropout = identity)
    x = jnp.dot(trg_ref[...], emb_w_ref[...], preferred_element_type=jnp.float32) + emb_b_ref[...]
    mem = mem_ref[...]

    # nn.TransformerDecoderLayer, post-norm, relu activation, eval-mode dropout
    for l in range(num_layers):
        sa = attention(x, x, sa_qkv_w_ref, sa_qkv_b_ref, sa_out_w_ref, sa_out_b_ref, l)
        x = layer_norm(x + sa, ln_g_ref[l, 0], ln_b_ref[l, 0])
        ca = attention(x, mem, ca_qkv_w_ref, ca_qkv_b_ref, ca_out_w_ref, ca_out_b_ref, l)
        x = layer_norm(x + ca, ln_g_ref[l, 1], ln_b_ref[l, 1])
        h1 = jnp.maximum(
            jnp.dot(x, ff1_w_ref[l], preferred_element_type=jnp.float32) + ff1_b_ref[l], 0.0)
        h2 = jnp.dot(h1, ff2_w_ref[l], preferred_element_type=jnp.float32) + ff2_b_ref[l]
        x = layer_norm(x + h2, ln_g_ref[l, 2], ln_b_ref[l, 2])

    o_ref[...] = (jnp.dot(x, out_w_ref[...], preferred_element_type=jnp.float32)
                  + out_b_ref[...]).astype(o_ref.dtype)


def _full_spec(shape):
    ndim = len(shape)

    def idx(i):
        return (0,) * ndim

    return pl.BlockSpec(shape, idx)


def transformer_decoder_forward(kp, trg, memory, *, nhead, num_layers, eps=1e-5):
    # trg:    (1, S, output_dim)
    # memory: (1, S_mem, d_model)  with S == S_mem == d_model (forced by the module's masks)
    trg2 = trg[0]
    mem2 = memory[0]
    S, out_dim = trg2.shape

    args = (
        trg2, mem2,
        kp["emb_w"], kp["emb_b"],
        kp["sa_qkv_w"], kp["sa_qkv_b"], kp["sa_out_w"], kp["sa_out_b"],
        kp["ca_qkv_w"], kp["ca_qkv_b"], kp["ca_out_w"], kp["ca_out_b"],
        kp["ff1_w"], kp["ff1_b"], kp["ff2_w"], kp["ff2_b"],
        kp["ln_g"], kp["ln_b"],
        kp["out_w"], kp["out_b"],
    )

    out = pl.pallas_call(
        functools.partial(_fused_decoder_kernel, nhead=nhead,
                          num_layers=num_layers, eps=eps),
        grid=(1,),
        in_specs=[_full_spec(a.shape) for a in args],
        out_specs=_full_spec((S, out_dim)),
        out_shape=jax.ShapeDtypeStruct((S, out_dim), trg.dtype),
        compiler_params=pltpu.CompilerParams(dimension_semantics=("arbitrary",)),
    )(*args)
    return out[None, ...]  # torch.unsqueeze(output, dim=0)


# ----------------------------- Parameter prep -----------------------------

def positional_encoding_row0(d_model):
    # pe[:x.size(0)] with x.size(0)==1 -> only row 0 of the PE table is added.
    # row 0: sin(0)=0 at even channels, cos(0)=1 at odd channels.
    pe0 = jnp.zeros((d_model,), jnp.float32)
    pe0 = pe0.at[1::2].set(1.0)
    return pe0


def init_params(key, output_dim, d_model, nhead, num_layers, dim_feedforward):
    # PyTorch-layout parameters (nn.Linear weight is (out, in)).
    n_draws = 2 + num_layers * 6
    keys = iter(jax.random.split(key, n_draws))

    def w(shape):
        return jax.random.normal(next(keys), shape, jnp.float32) * 0.02

    params = {
        "emb_w": w((d_model, output_dim)),
        "emb_b": jnp.zeros((d_model,), jnp.float32),
        "out_w": w((output_dim, d_model)),
        "out_b": jnp.zeros((output_dim,), jnp.float32),
        "layers": [],
    }
    for _ in range(num_layers):
        params["layers"].append({
            "sa_in_w": w((3 * d_model, d_model)), "sa_in_b": jnp.zeros((3 * d_model,), jnp.float32),
            "sa_out_w": w((d_model, d_model)), "sa_out_b": jnp.zeros((d_model,), jnp.float32),
            "ca_in_w": w((3 * d_model, d_model)), "ca_in_b": jnp.zeros((3 * d_model,), jnp.float32),
            "ca_out_w": w((d_model, d_model)), "ca_out_b": jnp.zeros((d_model,), jnp.float32),
            "ff1_w": w((dim_feedforward, d_model)), "ff1_b": jnp.zeros((dim_feedforward,), jnp.float32),
            "ff2_w": w((d_model, dim_feedforward)), "ff2_b": jnp.zeros((d_model,), jnp.float32),
            "ln1_g": jnp.ones((d_model,), jnp.float32), "ln1_b": jnp.zeros((d_model,), jnp.float32),
            "ln2_g": jnp.ones((d_model,), jnp.float32), "ln2_b": jnp.zeros((d_model,), jnp.float32),
            "ln3_g": jnp.ones((d_model,), jnp.float32), "ln3_b": jnp.zeros((d_model,), jnp.float32),
        })
    return params


def prepare_kernel_params(params, d_model, nhead):
    # One-time layout plumbing: transpose weights to (in, out), fold the positional-encoding
    # row into the embedding bias, fold 1/sqrt(head_dim) into the q projection, and stack
    # per-layer params along a leading layer axis.
    hd = d_model // nhead
    scale = 1.0 / math.sqrt(hd)
    pe0 = positional_encoding_row0(d_model)

    def attn_pack(in_w, in_b):
        wq, wk, wv = in_w[0:d_model], in_w[d_model:2 * d_model], in_w[2 * d_model:3 * d_model]
        bq, bk, bv = in_b[0:d_model], in_b[d_model:2 * d_model], in_b[2 * d_model:3 * d_model]
        qkv_w = jnp.stack([wq.T * scale, wk.T, wv.T])                      # (3, D, D) (in, out)
        qkv_b = jnp.stack([bq * scale, bk, bv]).reshape(3, 1, d_model)     # (3, 1, D)
        return qkv_w, qkv_b

    sa_qkv_w, sa_qkv_b, sa_out_w, sa_out_b = [], [], [], []
    ca_qkv_w, ca_qkv_b, ca_out_w, ca_out_b = [], [], [], []
    ff1_w, ff1_b, ff2_w, ff2_b, ln_g, ln_b = [], [], [], [], [], []
    for lp in params["layers"]:
        qw, qb = attn_pack(lp["sa_in_w"], lp["sa_in_b"])
        sa_qkv_w.append(qw); sa_qkv_b.append(qb)
        sa_out_w.append(lp["sa_out_w"].T); sa_out_b.append(lp["sa_out_b"].reshape(1, d_model))
        qw, qb = attn_pack(lp["ca_in_w"], lp["ca_in_b"])
        ca_qkv_w.append(qw); ca_qkv_b.append(qb)
        ca_out_w.append(lp["ca_out_w"].T); ca_out_b.append(lp["ca_out_b"].reshape(1, d_model))
        ff1_w.append(lp["ff1_w"].T); ff1_b.append(lp["ff1_b"].reshape(1, -1))
        ff2_w.append(lp["ff2_w"].T); ff2_b.append(lp["ff2_b"].reshape(1, d_model))
        ln_g.append(jnp.stack([lp["ln1_g"], lp["ln2_g"], lp["ln3_g"]]).reshape(3, 1, d_model))
        ln_b.append(jnp.stack([lp["ln1_b"], lp["ln2_b"], lp["ln3_b"]]).reshape(3, 1, d_model))

    return {
        "emb_w": params["emb_w"].T,                                # (output_dim, D)
        "emb_b": (params["emb_b"] + pe0).reshape(1, d_model),      # PE row 0 folded in
        "out_w": params["out_w"].T,                                # (D, output_dim)
        "out_b": params["out_b"].reshape(1, -1),
        "sa_qkv_w": jnp.stack(sa_qkv_w), "sa_qkv_b": jnp.stack(sa_qkv_b),
        "sa_out_w": jnp.stack(sa_out_w), "sa_out_b": jnp.stack(sa_out_b),
        "ca_qkv_w": jnp.stack(ca_qkv_w), "ca_qkv_b": jnp.stack(ca_qkv_b),
        "ca_out_w": jnp.stack(ca_out_w), "ca_out_b": jnp.stack(ca_out_b),
        "ff1_w": jnp.stack(ff1_w), "ff1_b": jnp.stack(ff1_b),
        "ff2_w": jnp.stack(ff2_w), "ff2_b": jnp.stack(ff2_b),
        "ln_g": jnp.stack(ln_g), "ln_b": jnp.stack(ln_b),
    }


# ----------------------------- main -----------------------------

if __name__ == "__main__":
    output_dim, d_model, nhead, num_layers, dim_feedforward = 8, 32, 4, 2, 64
    seq = d_model  # module's (nhead, d_model, d_model) masks force seq lengths == d_model

    key = jax.random.PRNGKey(0)
    k_trg, k_mem, k_par = jax.random.split(key, 3)
    trg = jax.random.normal(k_trg, (1, seq, output_dim), jnp.float32)
    memory = jax.random.normal(k_mem, (1, seq, d_model), jnp.float32)
    params = init_params(k_par, output_dim, d_model, nhead, num_layers, dim_feedforward)
    kparams = prepare_kernel_params(params, d_model, nhead)

    fwd = jax.jit(functools.partial(transformer_decoder_forward,
                                    nhead=nhead, num_layers=num_layers))
    out = fwd(kparams, trg, memory)
    jax.block_until_ready(out)
    assert out.shape == (1, seq, output_dim)
    assert bool(jnp.all(jnp.isfinite(out)))
    print("KERNEL_OK")
</pallas_src>

<mosaic_0001>
module attributes {stable_mosaic.version = 11 : i64} {
  func.func @_fused_decoder_kernel(%arg0: i32, %arg1: memref<32x8xf32, #tpu.memory_space<vmem>>, %arg2: memref<32x32xf32, #tpu.memory_space<vmem>>, %arg3: memref<8x32xf32, #tpu.memory_space<vmem>>, %arg4: memref<1x32xf32, #tpu.memory_space<vmem>>, %arg5: memref<2x3x32x32xf32, #tpu.memory_space<vmem>>, %arg6: memref<2x3x1x32xf32, #tpu.memory_space<vmem>>, %arg7: memref<2x32x32xf32, #tpu.memory_space<vmem>>, %arg8: memref<2x1x32xf32, #tpu.memory_space<vmem>>, %arg9: memref<2x3x32x32xf32, #tpu.memory_space<vmem>>, %arg10: memref<2x3x1x32xf32, #tpu.memory_space<vmem>>, %arg11: memref<2x32x32xf32, #tpu.memory_space<vmem>>, %arg12: memref<2x1x32xf32, #tpu.memory_space<vmem>>, %arg13: memref<2x32x64xf32, #tpu.memory_space<vmem>>, %arg14: memref<2x1x64xf32, #tpu.memory_space<vmem>>, %arg15: memref<2x64x32xf32, #tpu.memory_space<vmem>>, %arg16: memref<2x1x32xf32, #tpu.memory_space<vmem>>, %arg17: memref<2x3x1x32xf32, #tpu.memory_space<vmem>>, %arg18: memref<2x3x1x32xf32, #tpu.memory_space<vmem>>, %arg19: memref<32x8xf32, #tpu.memory_space<vmem>>, %arg20: memref<1x8xf32, #tpu.memory_space<vmem>>, %arg21: memref<32x8xf32, #tpu.memory_space<vmem>>) attributes {dimension_semantics = [#tpu.dimension_semantics<arbitrary>], iteration_bounds = array<i64: 1>, scalar_prefetch = 0 : i64, scratch_operands = 0 : i64, tpu.core_type = #tpu.core_type<tc>, window_params = [{pipeline_mode = #tpu.pipeline_mode<synchronous>, transform_indices = @transform_0, window_bounds = array<i64: 32, 8>}, {pipeline_mode = #tpu.pipeline_mode<synchronous>, transform_indices = @transform_1, window_bounds = array<i64: 32, 32>}, {pipeline_mode = #tpu.pipeline_mode<synchronous>, transform_indices = @transform_2, window_bounds = array<i64: 8, 32>}, {pipeline_mode = #tpu.pipeline_mode<synchronous>, transform_indices = @transform_3, window_bounds = array<i64: 1, 32>}, {pipeline_mode = #tpu.pipeline_mode<synchronous>, transform_indices = @transform_4, window_bounds = array<i64: 2, 3, 32, 32>}, {pipeline_mode = #tpu.pipeline_mode<synchronous>, transform_indices = @transform_5, window_bounds = array<i64: 2, 3, 1, 32>}, {pipeline_mode = #tpu.pipeline_mode<synchronous>, transform_indices = @transform_6, window_bounds = array<i64: 2, 32, 32>}, {pipeline_mode = #tpu.pipeline_mode<synchronous>, transform_indices = @transform_7, window_bounds = array<i64: 2, 1, 32>}, {pipeline_mode = #tpu.pipeline_mode<synchronous>, transform_indices = @transform_8, window_bounds = array<i64: 2, 3, 32, 32>}, {pipeline_mode = #tpu.pipeline_mode<synchronous>, transform_indices = @transform_9, window_bounds = array<i64: 2, 3, 1, 32>}, {pipeline_mode = #tpu.pipeline_mode<synchronous>, transform_indices = @transform_10, window_bounds = array<i64: 2, 32, 32>}, {pipeline_mode = #tpu.pipeline_mode<synchronous>, transform_indices = @transform_11, window_bounds = array<i64: 2, 1, 32>}, {pipeline_mode = #tpu.pipeline_mode<synchronous>, transform_indices = @transform_12, window_bounds = array<i64: 2, 32, 64>}, {pipeline_mode = #tpu.pipeline_mode<synchronous>, transform_indices = @transform_13, window_bounds = array<i64: 2, 1, 64>}, {pipeline_mode = #tpu.pipeline_mode<synchronous>, transform_indices = @transform_14, window_bounds = array<i64: 2, 64, 32>}, {pipeline_mode = #tpu.pipeline_mode<synchronous>, transform_indices = @transform_15, window_bounds = array<i64: 2, 1, 32>}, {pipeline_mode = #tpu.pipeline_mode<synchronous>, transform_indices = @transform_16, window_bounds = array<i64: 2, 3, 1, 32>}, {pipeline_mode = #tpu.pipeline_mode<synchronous>, transform_indices = @transform_17, window_bounds = array<i64: 2, 3, 1, 32>}, {pipeline_mode = #tpu.pipeline_mode<synchronous>, transform_indices = @transform_18, window_bounds = array<i64: 32, 8>}, {pipeline_mode = #tpu.pipeline_mode<synchronous>, transform_indices = @transform_19, window_bounds = array<i64: 1, 8>}, {pipeline_mode = #tpu.pipeline_mode<synchronous>, transform_indices = @transform_20, window_bounds = array<i64: 32, 8>}]} {
    %0 = tpu.iota {dimensions = array<i32: 0>} : vector<32x32xi32>
    %1 = tpu.iota {dimensions = array<i32: 1>} : vector<32x32xi32>
    %2 = arith.cmpi sgt, %1, %0 : vector<32x32xi32>
    %cst = arith.constant -1.000000e+30 : f32
    %cst_0 = arith.constant 0.000000e+00 : f32
    %3 = vector.broadcast %cst : f32 to vector<32x32xf32>
    %4 = vector.broadcast %cst_0 : f32 to vector<32x32xf32>
    %5 = arith.select %2, %3, %4 : vector<32x32xi1>, vector<32x32xf32>
    %c0 = arith.constant 0 : index
    %c0_1 = arith.constant 0 : index
    %6 = vector.load %arg1[%c0, %c0_1] : memref<32x8xf32, #tpu.memory_space<vmem>>, vector<32x8xf32>
    %c0_2 = arith.constant 0 : index
    %c0_3 = arith.constant 0 : index
    %7 = vector.load %arg3[%c0_2, %c0_3] : memref<8x32xf32, #tpu.memory_space<vmem>>, vector<8x32xf32>
    %cst_4 = arith.constant dense<0.000000e+00> : vector<32x32xf32>
    %8 = tpu.matmul %6, %7, %cst_4 {dimension_numbers = #tpu.dot_dimension_numbers<[1], [0], [0], [1], [0, 0, 1, 1], [], []>} : vector<32x8xf32>, vector<8x32xf32>, vector<32x32xf32> -> vector<32x32xf32>
    %c0_5 = arith.constant 0 : index
    %c0_6 = arith.constant 0 : index
    %9 = vector.load %arg4[%c0_5, %c0_6] : memref<1x32xf32, #tpu.memory_space<vmem>>, vector<1x32xf32>
    %10 = vector.broadcast %9 : vector<1x32xf32> to vector<32x32xf32>
    %11 = arith.addf %8, %10 : vector<32x32xf32>
    %c0_7 = arith.constant 0 : index
    %c0_8 = arith.constant 0 : index
    %12 = vector.load %arg2[%c0_7, %c0_8] : memref<32x32xf32, #tpu.memory_space<vmem>>, vector<32x32xf32>
    %c0_9 = arith.constant 0 : index
    %c0_10 = arith.constant 0 : index
    %c0_11 = arith.constant 0 : index
    %c0_12 = arith.constant 0 : index
    %13 = vector.load %arg5[%c0_9, %c0_10, %c0_11, %c0_12] : memref<2x3x32x32xf32, #tpu.memory_space<vmem>>, vector<1x1x32x32xf32>
    %14 = vector.shape_cast %13 : vector<1x1x32x32xf32> to vector<32x32xf32>
    %cst_13 = arith.constant dense<0.000000e+00> : vector<32x32xf32>
    %15 = tpu.matmul %11, %14, %cst_13 {dimension_numbers = #tpu.dot_dimension_numbers<[1], [0], [0], [1], [0, 0, 1, 1], [], []>} : vector<32x32xf32>, vector<32x32xf32>, vector<32x32xf32> -> vector<32x32xf32>
    %c0_14 = arith.constant 0 : index
    %c0_15 = arith.constant 0 : index
    %c0_16 = arith.constant 0 : index
    %c0_17 = arith.constant 0 : index
    %16 = vector.load %arg6[%c0_14, %c0_15, %c0_16, %c0_17] : memref<2x3x1x32xf32, #tpu.memory_space<vmem>>, vector<1x1x1x32xf32>
    %17 = vector.shape_cast %16 : vector<1x1x1x32xf32> to vector<1x32xf32>
    %18 = vector.broadcast %17 : vector<1x32xf32> to vector<32x32xf32>
    %19 = arith.addf %15, %18 : vector<32x32xf32>
    %c0_18 = arith.constant 0 : index
    %c1 = arith.constant 1 : index
    %c0_19 = arith.constant 0 : index
    %c0_20 = arith.constant 0 : index
    %20 = vector.load %arg5[%c0_18, %c1, %c0_19, %c0_20] : memref<2x3x32x32xf32, #tpu.memory_space<vmem>>, vector<1x1x32x32xf32>
    %21 = vector.shape_cast %20 : vector<1x1x32x32xf32> to vector<32x32xf32>
    %cst_21 = arith.constant dense<0.000000e+00> : vector<32x32xf32>
    %22 = tpu.matmul %11, %21, %cst_21 {dimension_numbers = #tpu.dot_dimension_numbers<[1], [0], [0], [1], [0, 0, 1, 1], [], []>} : vector<32x32xf32>, vector<32x32xf32>, vector<32x32xf32> -> vector<32x32xf32>
    %c0_22 = arith.constant 0 : index
    %c1_23 = arith.constant 1 : index
    %c0_24 = arith.constant 0 : index
    %c0_25 = arith.constant 0 : index
    %23 = vector.load %arg6[%c0_22, %c1_23, %c0_24, %c0_25] : memref<2x3x1x32xf32, #tpu.memory_space<vmem>>, vector<1x1x1x32xf32>
    %24 = vector.shape_cast %23 : vector<1x1x1x32xf32> to vector<1x32xf32>
    %25 = vector.broadcast %24 : vector<1x32xf32> to vector<32x32xf32>
    %26 = arith.addf %22, %25 : vector<32x32xf32>
    %c0_26 = arith.constant 0 : index
    %c2 = arith.constant 2 : index
    %c0_27 = arith.constant 0 : index
    %c0_28 = arith.constant 0 : index
    %27 = vector.load %arg5[%c0_26, %c2, %c0_27, %c0_28] : memref<2x3x32x32xf32, #tpu.memory_space<vmem>>, vector<1x1x32x32xf32>
    %28 = vector.shape_cast %27 : vector<1x1x32x32xf32> to vector<32x32xf32>
    %cst_29 = arith.constant dense<0.000000e+00> : vector<32x32xf32>
    %29 = tpu.matmul %11, %28, %cst_29 {dimension_numbers = #tpu.dot_dimension_numbers<[1], [0], [0], [1], [0, 0, 1, 1], [], []>} : vector<32x32xf32>, vector<32x32xf32>, vector<32x32xf32> -> vector<32x32xf32>
    %c0_30 = arith.constant 0 : index
    %c2_31 = arith.constant 2 : index
    %c0_32 = arith.constant 0 : index
    %c0_33 = arith.constant 0 : index
    %30 = vector.load %arg6[%c0_30, %c2_31, %c0_32, %c0_33] : memref<2x3x1x32xf32, #tpu.memory_space<vmem>>, vector<1x1x1x32xf32>
    %31 = vector.shape_cast %30 : vector<1x1x1x32xf32> to vector<1x32xf32>
    %32 = vector.broadcast %31 : vector<1x32xf32> to vector<32x32xf32>
    %33 = arith.addf %29, %32 : vector<32x32xf32>
    %c0_34 = arith.constant 0 : index
    %c0_35 = arith.constant 0 : index
    %c0_36 = arith.constant 0 : index
    %34 = vector.load %arg7[%c0_34, %c0_35, %c0_36] : memref<2x32x32xf32, #tpu.memory_space<vmem>>, vector<1x32x32xf32>
    %35 = vector.shape_cast %34 : vector<1x32x32xf32> to vector<32x32xf32>
    %c0_37 = arith.constant 0 : index
    %c0_38 = arith.constant 0 : index
    %c0_39 = arith.constant 0 : index
    %36 = vector.load %arg8[%c0_37, %c0_38, %c0_39] : memref<2x1x32xf32, #tpu.memory_space<vmem>>, vector<1x1x32xf32>
    %37 = vector.shape_cast %36 : vector<1x1x32xf32> to vector<1x32xf32>
    %cst_40 = arith.constant 0.000000e+00 : f32
    %38 = vector.broadcast %cst_40 : f32 to vector<32x32xf32>
    %39 = vector.extract_strided_slice %19 {offsets = [0, 0], sizes = [32, 8], strides = [1, 1]} : vector<32x32xf32> to vector<32x8xf32>
    %40 = vector.extract_strided_slice %26 {offsets = [0, 0], sizes = [32, 8], strides = [1, 1]} : vector<32x32xf32> to vector<32x8xf32>
    %41 = vector.extract_strided_slice %33 {offsets = [0, 0], sizes = [32, 8], strides = [1, 1]} : vector<32x32xf32> to vector<32x8xf32>
    %cst_41 = arith.constant dense<0.000000e+00> : vector<32x32xf32>
    %42 = tpu.matmul %39, %40, %cst_41 {dimension_numbers = #tpu.dot_dimension_numbers<[1], [1], [0], [0], [0, 0, 1, 0], [], []>} : vector<32x8xf32>, vector<32x8xf32>, vector<32x32xf32> -> vector<32x32xf32>
    %43 = arith.addf %42, %5 : vector<32x32xf32>
    %cst_42 = arith.constant dense<0xFF800000> : vector<32xf32>
    %44 = vector.multi_reduction <maximumf>, %43, %cst_42 [1] : vector<32x32xf32> to vector<32xf32>
    %45 = vector.shape_cast %44 : vector<32xf32> to vector<32x1xf32>
    %46 = vector.broadcast %45 : vector<32x1xf32> to vector<32x32xf32>
    %47 = arith.subf %43, %46 : vector<32x32xf32>
    %48 = math.exp %47 : vector<32x32xf32>
    %cst_43 = arith.constant dense<0.000000e+00> : vector<32xf32>
    %49 = vector.multi_reduction <add>, %48, %cst_43 [1] : vector<32x32xf32> to vector<32xf32>
    %50 = vector.shape_cast %49 : vector<32xf32> to vector<32x1xf32>
    %51 = tpu.reciprocal %50 {approx = true} : vector<32x1xf32> -> vector<32x1xf32>
    %52 = vector.broadcast %51 : vector<32x1xf32> to vector<32x32xf32>
    %53 = arith.mulf %48, %52 : vector<32x32xf32>
    %cst_44 = arith.constant dense<0.000000e+00> : vector<32x8xf32>
    %54 = tpu.matmul %53, %41, %cst_44 {dimension_numbers = #tpu.dot_dimension_numbers<[1], [0], [0], [1], [0, 0, 1, 1], [], []>} : vector<32x32xf32>, vector<32x8xf32>, vector<32x8xf32> -> vector<32x8xf32>
    %55 = vector.extract_strided_slice %35 {offsets = [0, 0], sizes = [8, 32], strides = [1, 1]} : vector<32x32xf32> to vector<8x32xf32>
    %cst_45 = arith.constant dense<0.000000e+00> : vector<32x32xf32>
    %56 = tpu.matmul %54, %55, %cst_45 {dimension_numbers = #tpu.dot_dimension_numbers<[1], [0], [0], [1], [0, 0, 1, 1], [], []>} : vector<32x8xf32>, vector<8x32xf32>, vector<32x32xf32> -> vector<32x32xf32>
    %57 = arith.addf %38, %56 : vector<32x32xf32>
    %58 = vector.extract_strided_slice %19 {offsets = [0, 8], sizes = [32, 8], strides = [1, 1]} : vector<32x32xf32> to vector<32x8xf32>
    %59 = vector.extract_strided_slice %26 {offsets = [0, 8], sizes = [32, 8], strides = [1, 1]} : vector<32x32xf32> to vector<32x8xf32>
    %60 = vector.extract_strided_slice %33 {offsets = [0, 8], sizes = [32, 8], strides = [1, 1]} : vector<32x32xf32> to vector<32x8xf32>
    %cst_46 = arith.constant dense<0.000000e+00> : vector<32x32xf32>
    %61 = tpu.matmul %58, %59, %cst_46 {dimension_numbers = #tpu.dot_dimension_numbers<[1], [1], [0], [0], [0, 0, 1, 0], [], []>} : vector<32x8xf32>, vector<32x8xf32>, vector<32x32xf32> -> vector<32x32xf32>
    %62 = arith.addf %61, %5 : vector<32x32xf32>
    %cst_47 = arith.constant dense<0xFF800000> : vector<32xf32>
    %63 = vector.multi_reduction <maximumf>, %62, %cst_47 [1] : vector<32x32xf32> to vector<32xf32>
    %64 = vector.shape_cast %63 : vector<32xf32> to vector<32x1xf32>
    %65 = vector.broadcast %64 : vector<32x1xf32> to vector<32x32xf32>
    %66 = arith.subf %62, %65 : vector<32x32xf32>
    %67 = math.exp %66 : vector<32x32xf32>
    %cst_48 = arith.constant dense<0.000000e+00> : vector<32xf32>
    %68 = vector.multi_reduction <add>, %67, %cst_48 [1] : vector<32x32xf32> to vector<32xf32>
    %69 = vector.shape_cast %68 : vector<32xf32> to vector<32x1xf32>
    %70 = tpu.reciprocal %69 {approx = true} : vector<32x1xf32> -> vector<32x1xf32>
    %71 = vector.broadcast %70 : vector<32x1xf32> to vector<32x32xf32>
    %72 = arith.mulf %67, %71 : vector<32x32xf32>
    %cst_49 = arith.constant dense<0.000000e+00> : vector<32x8xf32>
    %73 = tpu.matmul %72, %60, %cst_49 {dimension_numbers = #tpu.dot_dimension_numbers<[1], [0], [0], [1], [0, 0, 1, 1], [], []>} : vector<32x32xf32>, vector<32x8xf32>, vector<32x8xf32> -> vector<32x8xf32>
    %74 = vector.extract_strided_slice %35 {offsets = [8, 0], sizes = [8, 32], strides = [1, 1]} : vector<32x32xf32> to vector<8x32xf32>
    %cst_50 = arith.constant dense<0.000000e+00> : vector<32x32xf32>
    %75 = tpu.matmul %73, %74, %cst_50 {dimension_numbers = #tpu.dot_dimension_numbers<[1], [0], [0], [1], [0, 0, 1, 1], [], []>} : vector<32x8xf32>, vector<8x32xf32>, vector<32x32xf32> -> vector<32x32xf32>
    %76 = arith.addf %57, %75 : vector<32x32xf32>
    %77 = vector.extract_strided_slice %19 {offsets = [0, 16], sizes = [32, 8], strides = [1, 1]} : vector<32x32xf32> to vector<32x8xf32>
    %78 = vector.extract_strided_slice %26 {offsets = [0, 16], sizes = [32, 8], strides = [1, 1]} : vector<32x32xf32> to vector<32x8xf32>
    %79 = vector.extract_strided_slice %33 {offsets = [0, 16], sizes = [32, 8], strides = [1, 1]} : vector<32x32xf32> to vector<32x8xf32>
    %cst_51 = arith.constant dense<0.000000e+00> : vector<32x32xf32>
    %80 = tpu.matmul %77, %78, %cst_51 {dimension_numbers = #tpu.dot_dimension_numbers<[1], [1], [0], [0], [0, 0, 1, 0], [], []>} : vector<32x8xf32>, vector<32x8xf32>, vector<32x32xf32> -> vector<32x32xf32>
    %81 = arith.addf %80, %5 : vector<32x32xf32>
    %cst_52 = arith.constant dense<0xFF800000> : vector<32xf32>
    %82 = vector.multi_reduction <maximumf>, %81, %cst_52 [1] : vector<32x32xf32> to vector<32xf32>
    %83 = vector.shape_cast %82 : vector<32xf32> to vector<32x1xf32>
    %84 = vector.broadcast %83 : vector<32x1xf32> to vector<32x32xf32>
    %85 = arith.subf %81, %84 : vector<32x32xf32>
    %86 = math.exp %85 : vector<32x32xf32>
    %cst_53 = arith.constant dense<0.000000e+00> : vector<32xf32>
    %87 = vector.multi_reduction <add>, %86, %cst_53 [1] : vector<32x32xf32> to vector<32xf32>
    %88 = vector.shape_cast %87 : vector<32xf32> to vector<32x1xf32>
    %89 = tpu.reciprocal %88 {approx = true} : vector<32x1xf32> -> vector<32x1xf32>
    %90 = vector.broadcast %89 : vector<32x1xf32> to vector<32x32xf32>
    %91 = arith.mulf %86, %90 : vector<32x32xf32>
    %cst_54 = arith.constant dense<0.000000e+00> : vector<32x8xf32>
    %92 = tpu.matmul %91, %79, %cst_54 {dimension_numbers = #tpu.dot_dimension_numbers<[1], [0], [0], [1], [0, 0, 1, 1], [], []>} : vector<32x32xf32>, vector<32x8xf32>, vector<32x8xf32> -> vector<32x8xf32>
    %93 = vector.extract_strided_slice %35 {offsets = [16, 0], sizes = [8, 32], strides = [1, 1]} : vector<32x32xf32> to vector<8x32xf32>
    %cst_55 = arith.constant dense<0.000000e+00> : vector<32x32xf32>
    %94 = tpu.matmul %92, %93, %cst_55 {dimension_numbers = #tpu.dot_dimension_numbers<[1], [0], [0], [1], [0, 0, 1, 1], [], []>} : vector<32x8xf32>, vector<8x32xf32>, vector<32x32xf32> -> vector<32x32xf32>
    %95 = arith.addf %76, %94 : vector<32x32xf32>
    %96 = vector.extract_strided_slice %19 {offsets = [0, 24], sizes = [32, 8], strides = [1, 1]} : vector<32x32xf32> to vector<32x8xf32>
    %97 = vector.extract_strided_slice %26 {offsets = [0, 24], sizes = [32, 8], strides = [1, 1]} : vector<32x32xf32> to vector<32x8xf32>
    %98 = vector.extract_strided_slice %33 {offsets = [0, 24], sizes = [32, 8], strides = [1, 1]} : vector<32x32xf32> to vector<32x8xf32>
    %cst_56 = arith.constant dense<0.000000e+00> : vector<32x32xf32>
    %99 = tpu.matmul %96, %97, %cst_56 {dimension_numbers = #tpu.dot_dimension_numbers<[1], [1], [0], [0], [0, 0, 1, 0], [], []>} : vector<32x8xf32>, vector<32x8xf32>, vector<32x32xf32> -> vector<32x32xf32>
    %100 = arith.addf %99, %5 : vector<32x32xf32>
    %cst_57 = arith.constant dense<0xFF800000> : vector<32xf32>
    %101 = vector.multi_reduction <maximumf>, %100, %cst_57 [1] : vector<32x32xf32> to vector<32xf32>
    %102 = vector.shape_cast %101 : vector<32xf32> to vector<32x1xf32>
    %103 = vector.broadcast %102 : vector<32x1xf32> to vector<32x32xf32>
    %104 = arith.subf %100, %103 : vector<32x32xf32>
    %105 = math.exp %104 : vector<32x32xf32>
    %cst_58 = arith.constant dense<0.000000e+00> : vector<32xf32>
    %106 = vector.multi_reduction <add>, %105, %cst_58 [1] : vector<32x32xf32> to vector<32xf32>
    %107 = vector.shape_cast %106 : vector<32xf32> to vector<32x1xf32>
    %108 = tpu.reciprocal %107 {approx = true} : vector<32x1xf32> -> vector<32x1xf32>
    %109 = vector.broadcast %108 : vector<32x1xf32> to vector<32x32xf32>
    %110 = arith.mulf %105, %109 : vector<32x32xf32>
    %cst_59 = arith.constant dense<0.000000e+00> : vector<32x8xf32>
    %111 = tpu.matmul %110, %98, %cst_59 {dimension_numbers = #tpu.dot_dimension_numbers<[1], [0], [0], [1], [0, 0, 1, 1], [], []>} : vector<32x32xf32>, vector<32x8xf32>, vector<32x8xf32> -> vector<32x8xf32>
    %112 = vector.extract_strided_slice %35 {offsets = [24, 0], sizes = [8, 32], strides = [1, 1]} : vector<32x32xf32> to vector<8x32xf32>
    %cst_60 = arith.constant dense<0.000000e+00> : vector<32x32xf32>
    %113 = tpu.matmul %111, %112, %cst_60 {dimension_numbers = #tpu.dot_dimension_numbers<[1], [0], [0], [1], [0, 0, 1, 1], [], []>} : vector<32x8xf32>, vector<8x32xf32>, vector<32x32xf32> -> vector<32x32xf32>
    %114 = arith.addf %95, %113 : vector<32x32xf32>
    %115 = vector.broadcast %37 : vector<1x32xf32> to vector<32x32xf32>
    %116 = arith.addf %114, %115 : vector<32x32xf32>
    %117 = arith.addf %11, %116 : vector<32x32xf32>
    %c0_61 = arith.constant 0 : index
    %c0_62 = arith.constant 0 : index
    %c0_63 = arith.constant 0 : index
    %c0_64 = arith.constant 0 : index
    %118 = vector.load %arg17[%c0_61, %c0_62, %c0_63, %c0_64] : memref<2x3x1x32xf32, #tpu.memory_space<vmem>>, vector<1x1x1x32xf32>
    %119 = vector.shape_cast %118 : vector<1x1x1x32xf32> to vector<1x32xf32>
    %c0_65 = arith.constant 0 : index
    %c0_66 = arith.constant 0 : index
    %c0_67 = arith.constant 0 : index
    %c0_68 = arith.constant 0 : index
    %120 = vector.load %arg18[%c0_65, %c0_66, %c0_67, %c0_68] : memref<2x3x1x32xf32, #tpu.memory_space<vmem>>, vector<1x1x1x32xf32>
    %121 = vector.shape_cast %120 : vector<1x1x1x32xf32> to vector<1x32xf32>
    %cst_69 = arith.constant dense<0.000000e+00> : vector<32xf32>
    %122 = vector.multi_reduction <add>, %117, %cst_69 [1] : vector<32x32xf32> to vector<32xf32>
    %123 = vector.shape_cast %122 : vector<32xf32> to vector<32x1xf32>
    %cst_70 = arith.constant 3.200000e+01 : f32
    %124 = vector.broadcast %cst_70 : f32 to vector<32x1xf32>
    %125 = arith.divf %123, %124 : vector<32x1xf32>
    %126 = vector.broadcast %125 : vector<32x1xf32> to vector<32x32xf32>
    %127 = arith.subf %117, %126 : vector<32x32xf32>
    %128 = arith.mulf %127, %127 : vector<32x32xf32>
    %cst_71 = arith.constant dense<0.000000e+00> : vector<32xf32>
    %129 = vector.multi_reduction <add>, %128, %cst_71 [1] : vector<32x32xf32> to vector<32xf32>
    %130 = vector.shape_cast %129 : vector<32xf32> to vector<32x1xf32>
    %cst_72 = arith.constant 3.200000e+01 : f32
    %131 = vector.broadcast %cst_72 : f32 to vector<32x1xf32>
    %132 = arith.divf %130, %131 : vector<32x1xf32>
    %133 = vector.broadcast %125 : vector<32x1xf32> to vector<32x32xf32>
    %134 = arith.subf %117, %133 : vector<32x32xf32>
    %cst_73 = arith.constant 9.99999974E-6 : f32
    %135 = vector.broadcast %cst_73 : f32 to vector<32x1xf32>
    %136 = arith.addf %132, %135 : vector<32x1xf32>
    %137 = math.rsqrt %136 : vector<32x1xf32>
    %138 = vector.broadcast %137 : vector<32x1xf32> to vector<32x32xf32>
    %139 = arith.mulf %134, %138 : vector<32x32xf32>
    %140 = vector.broadcast %119 : vector<1x32xf32> to vector<32x32xf32>
    %141 = arith.mulf %139, %140 : vector<32x32xf32>
    %142 = vector.broadcast %121 : vector<1x32xf32> to vector<32x32xf32>
    %143 = arith.addf %141, %142 : vector<32x32xf32>
    %c0_74 = arith.constant 0 : index
    %c0_75 = arith.constant 0 : index
    %c0_76 = arith.constant 0 : index
    %c0_77 = arith.constant 0 : index
    %144 = vector.load %arg9[%c0_74, %c0_75, %c0_76, %c0_77] : memref<2x3x32x32xf32, #tpu.memory_space<vmem>>, vector<1x1x32x32xf32>
    %145 = vector.shape_cast %144 : vector<1x1x32x32xf32> to vector<32x32xf32>
    %cst_78 = arith.constant dense<0.000000e+00> : vector<32x32xf32>
    %146 = tpu.matmul %143, %145, %cst_78 {dimension_numbers = #tpu.dot_dimension_numbers<[1], [0], [0], [1], [0, 0, 1, 1], [], []>} : vector<32x32xf32>, vector<32x32xf32>, vector<32x32xf32> -> vector<32x32xf32>
    %c0_79 = arith.constant 0 : index
    %c0_80 = arith.constant 0 : index
    %c0_81 = arith.constant 0 : index
    %c0_82 = arith.constant 0 : index
    %147 = vector.load %arg10[%c0_79, %c0_80, %c0_81, %c0_82] : memref<2x3x1x32xf32, #tpu.memory_space<vmem>>, vector<1x1x1x32xf32>
    %148 = vector.shape_cast %147 : vector<1x1x1x32xf32> to vector<1x32xf32>
    %149 = vector.broadcast %148 : vector<1x32xf32> to vector<32x32xf32>
    %150 = arith.addf %146, %149 : vector<32x32xf32>
    %c0_83 = arith.constant 0 : index
    %c1_84 = arith.constant 1 : index
    %c0_85 = arith.constant 0 : index
    %c0_86 = arith.constant 0 : index
    %151 = vector.load %arg9[%c0_83, %c1_84, %c0_85, %c0_86] : memref<2x3x32x32xf32, #tpu.memory_space<vmem>>, vector<1x1x32x32xf32>
    %152 = vector.shape_cast %151 : vector<1x1x32x32xf32> to vector<32x32xf32>
    %cst_87 = arith.constant dense<0.000000e+00> : vector<32x32xf32>
    %153 = tpu.matmul %12, %152, %cst_87 {dimension_numbers = #tpu.dot_dimension_numbers<[1], [0], [0], [1], [0, 0, 1, 1], [], []>} : vector<32x32xf32>, vector<32x32xf32>, vector<32x32xf32> -> vector<32x32xf32>
    %c0_88 = arith.constant 0 : index
    %c1_89 = arith.constant 1 : index
    %c0_90 = arith.constant 0 : index
    %c0_91 = arith.constant 0 : index
    %154 = vector.load %arg10[%c0_88, %c1_89, %c0_90, %c0_91] : memref<2x3x1x32xf32, #tpu.memory_space<vmem>>, vector<1x1x1x32xf32>
    %155 = vector.shape_cast %154 : vector<1x1x1x32xf32> to vector<1x32xf32>
    %156 = vector.broadcast %155 : vector<1x32xf32> to vector<32x32xf32>
    %157 = arith.addf %153, %156 : vector<32x32xf32>
    %c0_92 = arith.constant 0 : index
    %c2_93 = arith.constant 2 : index
    %c0_94 = arith.constant 0 : index
    %c0_95 = arith.constant 0 : index
    %158 = vector.load %arg9[%c0_92, %c2_93, %c0_94, %c0_95] : memref<2x3x32x32xf32, #tpu.memory_space<vmem>>, vector<1x1x32x32xf32>
    %159 = vector.shape_cast %158 : vector<1x1x32x32xf32> to vector<32x32xf32>
    %cst_96 = arith.constant dense<0.000000e+00> : vector<32x32xf32>
    %160 = tpu.matmul %12, %159, %cst_96 {dimension_numbers = #tpu.dot_dimension_numbers<[1], [0], [0], [1], [0, 0, 1, 1], [], []>} : vector<32x32xf32>, vector<32x32xf32>, vector<32x32xf32> -> vector<32x32xf32>
    %c0_97 = arith.constant 0 : index
    %c2_98 = arith.constant 2 : index
    %c0_99 = arith.constant 0 : index
    %c0_100 = arith.constant 0 : index
    %161 = vector.load %arg10[%c0_97, %c2_98, %c0_99, %c0_100] : memref<2x3x1x32xf32, #tpu.memory_space<vmem>>, vector<1x1x1x32xf32>
    %162 = vector.shape_cast %161 : vector<1x1x1x32xf32> to vector<1x32xf32>
    %163 = vector.broadcast %162 : vector<1x32xf32> to vector<32x32xf32>
    %164 = arith.addf %160, %163 : vector<32x32xf32>
    %c0_101 = arith.constant 0 : index
    %c0_102 = arith.constant 0 : index
    %c0_103 = arith.constant 0 : index
    %165 = vector.load %arg11[%c0_101, %c0_102, %c0_103] : memref<2x32x32xf32, #tpu.memory_space<vmem>>, vector<1x32x32xf32>
    %166 = vector.shape_cast %165 : vector<1x32x32xf32> to vector<32x32xf32>
    %c0_104 = arith.constant 0 : index
    %c0_105 = arith.constant 0 : index
    %c0_106 = arith.constant 0 : index
    %167 = vector.load %arg12[%c0_104, %c0_105, %c0_106] : memref<2x1x32xf32, #tpu.memory_space<vmem>>, vector<1x1x32xf32>
    %168 = vector.shape_cast %167 : vector<1x1x32xf32> to vector<1x32xf32>
    %cst_107 = arith.constant 0.000000e+00 : f32
    %169 = vector.broadcast %cst_107 : f32 to vector<32x32xf32>
    %170 = vector.extract_strided_slice %150 {offsets = [0, 0], sizes = [32, 8], strides = [1, 1]} : vector<32x32xf32> to vector<32x8xf32>
    %171 = vector.extract_strided_slice %157 {offsets = [0, 0], sizes = [32, 8], strides = [1, 1]} : vector<32x32xf32> to vector<32x8xf32>
    %172 = vector.extract_strided_slice %164 {offsets = [0, 0], sizes = [32, 8], strides = [1, 1]} : vector<32x32xf32> to vector<32x8xf32>
    %cst_108 = arith.constant dense<0.000000e+00> : vector<32x32xf32>
    %173 = tpu.matmul %170, %171, %cst_108 {dimension_numbers = #tpu.dot_dimension_numbers<[1], [1], [0], [0], [0, 0, 1, 0], [], []>} : vector<32x8xf32>, vector<32x8xf32>, vector<32x32xf32> -> vector<32x32xf32>
    %174 = arith.addf %173, %5 : vector<32x32xf32>
    %cst_109 = arith.constant dense<0xFF800000> : vector<32xf32>
    %175 = vector.multi_reduction <maximumf>, %174, %cst_109 [1] : vector<32x32xf32> to vector<32xf32>
    %176 = vector.shape_cast %175 : vector<32xf32> to vector<32x1xf32>
    %177 = vector.broadcast %176 : vector<32x1xf32> to vector<32x32xf32>
    %178 = arith.subf %174, %177 : vector<32x32xf32>
    %179 = math.exp %178 : vector<32x32xf32>
    %cst_110 = arith.constant dense<0.000000e+00> : vector<32xf32>
    %180 = vector.multi_reduction <add>, %179, %cst_110 [1] : vector<32x32xf32> to vector<32xf32>
    %181 = vector.shape_cast %180 : vector<32xf32> to vector<32x1xf32>
    %182 = tpu.reciprocal %181 {approx = true} : vector<32x1xf32> -> vector<32x1xf32>
    %183 = vector.broadcast %182 : vector<32x1xf32> to vector<32x32xf32>
    %184 = arith.mulf %179, %183 : vector<32x32xf32>
    %cst_111 = arith.constant dense<0.000000e+00> : vector<32x8xf32>
    %185 = tpu.matmul %184, %172, %cst_111 {dimension_numbers = #tpu.dot_dimension_numbers<[1], [0], [0], [1], [0, 0, 1, 1], [], []>} : vector<32x32xf32>, vector<32x8xf32>, vector<32x8xf32> -> vector<32x8xf32>
    %186 = vector.extract_strided_slice %166 {offsets = [0, 0], sizes = [8, 32], strides = [1, 1]} : vector<32x32xf32> to vector<8x32xf32>
    %cst_112 = arith.constant dense<0.000000e+00> : vector<32x32xf32>
    %187 = tpu.matmul %185, %186, %cst_112 {dimension_numbers = #tpu.dot_dimension_numbers<[1], [0], [0], [1], [0, 0, 1, 1], [], []>} : vector<32x8xf32>, vector<8x32xf32>, vector<32x32xf32> -> vector<32x32xf32>
    %188 = arith.addf %169, %187 : vector<32x32xf32>
    %189 = vector.extract_strided_slice %150 {offsets = [0, 8], sizes = [32, 8], strides = [1, 1]} : vector<32x32xf32> to vector<32x8xf32>
    %190 = vector.extract_strided_slice %157 {offsets = [0, 8], sizes = [32, 8], strides = [1, 1]} : vector<32x32xf32> to vector<32x8xf32>
    %191 = vector.extract_strided_slice %164 {offsets = [0, 8], sizes = [32, 8], strides = [1, 1]} : vector<32x32xf32> to vector<32x8xf32>
    %cst_113 = arith.constant dense<0.000000e+00> : vector<32x32xf32>
    %192 = tpu.matmul %189, %190, %cst_113 {dimension_numbers = #tpu.dot_dimension_numbers<[1], [1], [0], [0], [0, 0, 1, 0], [], []>} : vector<32x8xf32>, vector<32x8xf32>, vector<32x32xf32> -> vector<32x32xf32>
    %193 = arith.addf %192, %5 : vector<32x32xf32>
    %cst_114 = arith.constant dense<0xFF800000> : vector<32xf32>
    %194 = vector.multi_reduction <maximumf>, %193, %cst_114 [1] : vector<32x32xf32> to vector<32xf32>
    %195 = vector.shape_cast %194 : vector<32xf32> to vector<32x1xf32>
    %196 = vector.broadcast %195 : vector<32x1xf32> to vector<32x32xf32>
    %197 = arith.subf %193, %196 : vector<32x32xf32>
    %198 = math.exp %197 : vector<32x32xf32>
    %cst_115 = arith.constant dense<0.000000e+00> : vector<32xf32>
    %199 = vector.multi_reduction <add>, %198, %cst_115 [1] : vector<32x32xf32> to vector<32xf32>
    %200 = vector.shape_cast %199 : vector<32xf32> to vector<32x1xf32>
    %201 = tpu.reciprocal %200 {approx = true} : vector<32x1xf32> -> vector<32x1xf32>
    %202 = vector.broadcast %201 : vector<32x1xf32> to vector<32x32xf32>
    %203 = arith.mulf %198, %202 : vector<32x32xf32>
    %cst_116 = arith.constant dense<0.000000e+00> : vector<32x8xf32>
    %204 = tpu.matmul %203, %191, %cst_116 {dimension_numbers = #tpu.dot_dimension_numbers<[1], [0], [0], [1], [0, 0, 1, 1], [], []>} : vector<32x32xf32>, vector<32x8xf32>, vector<32x8xf32> -> vector<32x8xf32>
    %205 = vector.extract_strided_slice %166 {offsets = [8, 0], sizes = [8, 32], strides = [1, 1]} : vector<32x32xf32> to vector<8x32xf32>
    %cst_117 = arith.constant dense<0.000000e+00> : vector<32x32xf32>
    %206 = tpu.matmul %204, %205, %cst_117 {dimension_numbers = #tpu.dot_dimension_numbers<[1], [0], [0], [1], [0, 0, 1, 1], [], []>} : vector<32x8xf32>, vector<8x32xf32>, vector<32x32xf32> -> vector<32x32xf32>
    %207 = arith.addf %188, %206 : vector<32x32xf32>
    %208 = vector.extract_strided_slice %150 {offsets = [0, 16], sizes = [32, 8], strides = [1, 1]} : vector<32x32xf32> to vector<32x8xf32>
    %209 = vector.extract_strided_slice %157 {offsets = [0, 16], sizes = [32, 8], strides = [1, 1]} : vector<32x32xf32> to vector<32x8xf32>
    %210 = vector.extract_strided_slice %164 {offsets = [0, 16], sizes = [32, 8], strides = [1, 1]} : vector<32x32xf32> to vector<32x8xf32>
    %cst_118 = arith.constant dense<0.000000e+00> : vector<32x32xf32>
    %211 = tpu.matmul %208, %209, %cst_118 {dimension_numbers = #tpu.dot_dimension_numbers<[1], [1], [0], [0], [0, 0, 1, 0], [], []>} : vector<32x8xf32>, vector<32x8xf32>, vector<32x32xf32> -> vector<32x32xf32>
    %212 = arith.addf %211, %5 : vector<32x32xf32>
    %cst_119 = arith.constant dense<0xFF800000> : vector<32xf32>
    %213 = vector.multi_reduction <maximumf>, %212, %cst_119 [1] : vector<32x32xf32> to vector<32xf32>
    %214 = vector.shape_cast %213 : vector<32xf32> to vector<32x1xf32>
    %215 = vector.broadcast %214 : vector<32x1xf32> to vector<32x32xf32>
    %216 = arith.subf %212, %215 : vector<32x32xf32>
    %217 = math.exp %216 : vector<32x32xf32>
    %cst_120 = arith.constant dense<0.000000e+00> : vector<32xf32>
    %218 = vector.multi_reduction <add>, %217, %cst_120 [1] : vector<32x32xf32> to vector<32xf32>
    %219 = vector.shape_cast %218 : vector<32xf32> to vector<32x1xf32>
    %220 = tpu.reciprocal %219 {approx = true} : vector<32x1xf32> -> vector<32x1xf32>
    %221 = vector.broadcast %220 : vector<32x1xf32> to vector<32x32xf32>
    %222 = arith.mulf %217, %221 : vector<32x32xf32>
    %cst_121 = arith.constant dense<0.000000e+00> : vector<32x8xf32>
    %223 = tpu.matmul %222, %210, %cst_121 {dimension_numbers = #tpu.dot_dimension_numbers<[1], [0], [0], [1], [0, 0, 1, 1], [], []>} : vector<32x32xf32>, vector<32x8xf32>, vector<32x8xf32> -> vector<32x8xf32>
    %224 = vector.extract_strided_slice %166 {offsets = [16, 0], sizes = [8, 32], strides = [1, 1]} : vector<32x32xf32> to vector<8x32xf32>
    %cst_122 = arith.constant dense<0.000000e+00> : vector<32x32xf32>
    %225 = tpu.matmul %223, %224, %cst_122 {dimension_numbers = #tpu.dot_dimension_numbers<[1], [0], [0], [1], [0, 0, 1, 1], [], []>} : vector<32x8xf32>, vector<8x32xf32>, vector<32x32xf32> -> vector<32x32xf32>
    %226 = arith.addf %207, %225 : vector<32x32xf32>
    %227 = vector.extract_strided_slice %150 {offsets = [0, 24], sizes = [32, 8], strides = [1, 1]} : vector<32x32xf32> to vector<32x8xf32>
    %228 = vector.extract_strided_slice %157 {offsets = [0, 24], sizes = [32, 8], strides = [1, 1]} : vector<32x32xf32> to vector<32x8xf32>
    %229 = vector.extract_strided_slice %164 {offsets = [0, 24], sizes = [32, 8], strides = [1, 1]} : vector<32x32xf32> to vector<32x8xf32>
    %cst_123 = arith.constant dense<0.000000e+00> : vector<32x32xf32>
    %230 = tpu.matmul %227, %228, %cst_123 {dimension_numbers = #tpu.dot_dimension_numbers<[1], [1], [0], [0], [0, 0, 1, 0], [], []>} : vector<32x8xf32>, vector<32x8xf32>, vector<32x32xf32> -> vector<32x32xf32>
    %231 = arith.addf %230, %5 : vector<32x32xf32>
    %cst_124 = arith.constant dense<0xFF800000> : vector<32xf32>
    %232 = vector.multi_reduction <maximumf>, %231, %cst_124 [1] : vector<32x32xf32> to vector<32xf32>
    %233 = vector.shape_cast %232 : vector<32xf32> to vector<32x1xf32>
    %234 = vector.broadcast %233 : vector<32x1xf32> to vector<32x32xf32>
    %235 = arith.subf %231, %234 : vector<32x32xf32>
    %236 = math.exp %235 : vector<32x32xf32>
    %cst_125 = arith.constant dense<0.000000e+00> : vector<32xf32>
    %237 = vector.multi_reduction <add>, %236, %cst_125 [1] : vector<32x32xf32> to vector<32xf32>
    %238 = vector.shape_cast %237 : vector<32xf32> to vector<32x1xf32>
    %239 = tpu.reciprocal %238 {approx = true} : vector<32x1xf32> -> vector<32x1xf32>
    %240 = vector.broadcast %239 : vector<32x1xf32> to vector<32x32xf32>
    %241 = arith.mulf %236, %240 : vector<32x32xf32>
    %cst_126 = arith.constant dense<0.000000e+00> : vector<32x8xf32>
    %242 = tpu.matmul %241, %229, %cst_126 {dimension_numbers = #tpu.dot_dimension_numbers<[1], [0], [0], [1], [0, 0, 1, 1], [], []>} : vector<32x32xf32>, vector<32x8xf32>, vector<32x8xf32> -> vector<32x8xf32>
    %243 = vector.extract_strided_slice %166 {offsets = [24, 0], sizes = [8, 32], strides = [1, 1]} : vector<32x32xf32> to vector<8x32xf32>
    %cst_127 = arith.constant dense<0.000000e+00> : vector<32x32xf32>
    %244 = tpu.matmul %242, %243, %cst_127 {dimension_numbers = #tpu.dot_dimension_numbers<[1], [0], [0], [1], [0, 0, 1, 1], [], []>} : vector<32x8xf32>, vector<8x32xf32>, vector<32x32xf32> -> vector<32x32xf32>
    %245 = arith.addf %226, %244 : vector<32x32xf32>
    %246 = vector.broadcast %168 : vector<1x32xf32> to vector<32x32xf32>
    %247 = arith.addf %245, %246 : vector<32x32xf32>
    %248 = arith.addf %143, %247 : vector<32x32xf32>
    %c0_128 = arith.constant 0 : index
    %c1_129 = arith.constant 1 : index
    %c0_130 = arith.constant 0 : index
    %c0_131 = arith.constant 0 : index
    %249 = vector.load %arg17[%c0_128, %c1_129, %c0_130, %c0_131] : memref<2x3x1x32xf32, #tpu.memory_space<vmem>>, vector<1x1x1x32xf32>
    %250 = vector.shape_cast %249 : vector<1x1x1x32xf32> to vector<1x32xf32>
    %c0_132 = arith.constant 0 : index
    %c1_133 = arith.constant 1 : index
    %c0_134 = arith.constant 0 : index
    %c0_135 = arith.constant 0 : index
    %251 = vector.load %arg18[%c0_132, %c1_133, %c0_134, %c0_135] : memref<2x3x1x32xf32, #tpu.memory_space<vmem>>, vector<1x1x1x32xf32>
    %252 = vector.shape_cast %251 : vector<1x1x1x32xf32> to vector<1x32xf32>
    %cst_136 = arith.constant dense<0.000000e+00> : vector<32xf32>
    %253 = vector.multi_reduction <add>, %248, %cst_136 [1] : vector<32x32xf32> to vector<32xf32>
    %254 = vector.shape_cast %253 : vector<32xf32> to vector<32x1xf32>
    %cst_137 = arith.constant 3.200000e+01 : f32
    %255 = vector.broadcast %cst_137 : f32 to vector<32x1xf32>
    %256 = arith.divf %254, %255 : vector<32x1xf32>
    %257 = vector.broadcast %256 : vector<32x1xf32> to vector<32x32xf32>
    %258 = arith.subf %248, %257 : vector<32x32xf32>
    %259 = arith.mulf %258, %258 : vector<32x32xf32>
    %cst_138 = arith.constant dense<0.000000e+00> : vector<32xf32>
    %260 = vector.multi_reduction <add>, %259, %cst_138 [1] : vector<32x32xf32> to vector<32xf32>
    %261 = vector.shape_cast %260 : vector<32xf32> to vector<32x1xf32>
    %cst_139 = arith.constant 3.200000e+01 : f32
    %262 = vector.broadcast %cst_139 : f32 to vector<32x1xf32>
    %263 = arith.divf %261, %262 : vector<32x1xf32>
    %264 = vector.broadcast %256 : vector<32x1xf32> to vector<32x32xf32>
    %265 = arith.subf %248, %264 : vector<32x32xf32>
    %cst_140 = arith.constant 9.99999974E-6 : f32
    %266 = vector.broadcast %cst_140 : f32 to vector<32x1xf32>
    %267 = arith.addf %263, %266 : vector<32x1xf32>
    %268 = math.rsqrt %267 : vector<32x1xf32>
    %269 = vector.broadcast %268 : vector<32x1xf32> to vector<32x32xf32>
    %270 = arith.mulf %265, %269 : vector<32x32xf32>
    %271 = vector.broadcast %250 : vector<1x32xf32> to vector<32x32xf32>
    %272 = arith.mulf %270, %271 : vector<32x32xf32>
    %273 = vector.broadcast %252 : vector<1x32xf32> to vector<32x32xf32>
    %274 = arith.addf %272, %273 : vector<32x32xf32>
    %c0_141 = arith.constant 0 : index
    %c0_142 = arith.constant 0 : index
    %c0_143 = arith.constant 0 : index
    %275 = vector.load %arg13[%c0_141, %c0_142, %c0_143] : memref<2x32x64xf32, #tpu.memory_space<vmem>>, vector<1x32x64xf32>
    %276 = vector.shape_cast %275 : vector<1x32x64xf32> to vector<32x64xf32>
    %cst_144 = arith.constant dense<0.000000e+00> : vector<32x64xf32>
    %277 = tpu.matmul %274, %276, %cst_144 {dimension_numbers = #tpu.dot_dimension_numbers<[1], [0], [0], [1], [0, 0, 1, 1], [], []>} : vector<32x32xf32>, vector<32x64xf32>, vector<32x64xf32> -> vector<32x64xf32>
    %c0_145 = arith.constant 0 : index
    %c0_146 = arith.constant 0 : index
    %c0_147 = arith.constant 0 : index
    %278 = vector.load %arg14[%c0_145, %c0_146, %c0_147] : memref<2x1x64xf32, #tpu.memory_space<vmem>>, vector<1x1x64xf32>
    %279 = vector.shape_cast %278 : vector<1x1x64xf32> to vector<1x64xf32>
    %280 = vector.broadcast %279 : vector<1x64xf32> to vector<32x64xf32>
    %281 = arith.addf %277, %280 : vector<32x64xf32>
    %cst_148 = arith.constant 0.000000e+00 : f32
    %282 = vector.broadcast %cst_148 : f32 to vector<32x64xf32>
    %283 = arith.maximumf %281, %282 : vector<32x64xf32>
    %c0_149 = arith.constant 0 : index
    %c0_150 = arith.constant 0 : index
    %c0_151 = arith.constant 0 : index
    %284 = vector.load %arg15[%c0_149, %c0_150, %c0_151] : memref<2x64x32xf32, #tpu.memory_space<vmem>>, vector<1x64x32xf32>
    %285 = vector.shape_cast %284 : vector<1x64x32xf32> to vector<64x32xf32>
    %cst_152 = arith.constant dense<0.000000e+00> : vector<32x32xf32>
    %286 = tpu.matmul %283, %285, %cst_152 {dimension_numbers = #tpu.dot_dimension_numbers<[1], [0], [0], [1], [0, 0, 1, 1], [], []>} : vector<32x64xf32>, vector<64x32xf32>, vector<32x32xf32> -> vector<32x32xf32>
    %c0_153 = arith.constant 0 : index
    %c0_154 = arith.constant 0 : index
    %c0_155 = arith.constant 0 : index
    %287 = vector.load %arg16[%c0_153, %c0_154, %c0_155] : memref<2x1x32xf32, #tpu.memory_space<vmem>>, vector<1x1x32xf32>
    %288 = vector.shape_cast %287 : vector<1x1x32xf32> to vector<1x32xf32>
    %289 = vector.broadcast %288 : vector<1x32xf32> to vector<32x32xf32>
    %290 = arith.addf %286, %289 : vector<32x32xf32>
    %291 = arith.addf %274, %290 : vector<32x32xf32>
    %c0_156 = arith.constant 0 : index
    %c2_157 = arith.constant 2 : index
    %c0_158 = arith.constant 0 : index
    %c0_159 = arith.constant 0 : index
    %292 = vector.load %arg17[%c0_156, %c2_157, %c0_158, %c0_159] : memref<2x3x1x32xf32, #tpu.memory_space<vmem>>, vector<1x1x1x32xf32>
    %293 = vector.shape_cast %292 : vector<1x1x1x32xf32> to vector<1x32xf32>
    %c0_160 = arith.constant 0 : index
    %c2_161 = arith.constant 2 : index
    %c0_162 = arith.constant 0 : index
    %c0_163 = arith.constant 0 : index
    %294 = vector.load %arg18[%c0_160, %c2_161, %c0_162, %c0_163] : memref<2x3x1x32xf32, #tpu.memory_space<vmem>>, vector<1x1x1x32xf32>
    %295 = vector.shape_cast %294 : vector<1x1x1x32xf32> to vector<1x32xf32>
    %cst_164 = arith.constant dense<0.000000e+00> : vector<32xf32>
    %296 = vector.multi_reduction <add>, %291, %cst_164 [1] : vector<32x32xf32> to vector<32xf32>
    %297 = vector.shape_cast %296 : vector<32xf32> to vector<32x1xf32>
    %cst_165 = arith.constant 3.200000e+01 : f32
    %298 = vector.broadcast %cst_165 : f32 to vector<32x1xf32>
    %299 = arith.divf %297, %298 : vector<32x1xf32>
    %300 = vector.broadcast %299 : vector<32x1xf32> to vector<32x32xf32>
    %301 = arith.subf %291, %300 : vector<32x32xf32>
    %302 = arith.mulf %301, %301 : vector<32x32xf32>
    %cst_166 = arith.constant dense<0.000000e+00> : vector<32xf32>
    %303 = vector.multi_reduction <add>, %302, %cst_166 [1] : vector<32x32xf32> to vector<32xf32>
    %304 = vector.shape_cast %303 : vector<32xf32> to vector<32x1xf32>
    %cst_167 = arith.constant 3.200000e+01 : f32
    %305 = vector.broadcast %cst_167 : f32 to vector<32x1xf32>
    %306 = arith.divf %304, %305 : vector<32x1xf32>
    %307 = vector.broadcast %299 : vector<32x1xf32> to vector<32x32xf32>
    %308 = arith.subf %291, %307 : vector<32x32xf32>
    %cst_168 = arith.constant 9.99999974E-6 : f32
    %309 = vector.broadcast %cst_168 : f32 to vector<32x1xf32>
    %310 = arith.addf %306, %309 : vector<32x1xf32>
    %311 = math.rsqrt %310 : vector<32x1xf32>
    %312 = vector.broadcast %311 : vector<32x1xf32> to vector<32x32xf32>
    %313 = arith.mulf %308, %312 : vector<32x32xf32>
    %314 = vector.broadcast %293 : vector<1x32xf32> to vector<32x32xf32>
    %315 = arith.mulf %313, %314 : vector<32x32xf32>
    %316 = vector.broadcast %295 : vector<1x32xf32> to vector<32x32xf32>
    %317 = arith.addf %315, %316 : vector<32x32xf32>
    %c1_169 = arith.constant 1 : index
    %c0_170 = arith.constant 0 : index
    %c0_171 = arith.constant 0 : index
    %c0_172 = arith.constant 0 : index
    %318 = vector.load %arg5[%c1_169, %c0_170, %c0_171, %c0_172] : memref<2x3x32x32xf32, #tpu.memory_space<vmem>>, vector<1x1x32x32xf32>
    %319 = vector.shape_cast %318 : vector<1x1x32x32xf32> to vector<32x32xf32>
    %cst_173 = arith.constant dense<0.000000e+00> : vector<32x32xf32>
    %320 = tpu.matmul %317, %319, %cst_173 {dimension_numbers = #tpu.dot_dimension_numbers<[1], [0], [0], [1], [0, 0, 1, 1], [], []>} : vector<32x32xf32>, vector<32x32xf32>, vector<32x32xf32> -> vector<32x32xf32>
    %c1_174 = arith.constant 1 : index
    %c0_175 = arith.constant 0 : index
    %c0_176 = arith.constant 0 : index
    %c0_177 = arith.constant 0 : index
    %321 = vector.load %arg6[%c1_174, %c0_175, %c0_176, %c0_177] : memref<2x3x1x32xf32, #tpu.memory_space<vmem>>, vector<1x1x1x32xf32>
    %322 = vector.shape_cast %321 : vector<1x1x1x32xf32> to vector<1x32xf32>
    %323 = vector.broadcast %322 : vector<1x32xf32> to vector<32x32xf32>
    %324 = arith.addf %320, %323 : vector<32x32xf32>
    %c1_178 = arith.constant 1 : index
    %c1_179 = arith.constant 1 : index
    %c0_180 = arith.constant 0 : index
    %c0_181 = arith.constant 0 : index
    %325 = vector.load %arg5[%c1_178, %c1_179, %c0_180, %c0_181] : memref<2x3x32x32xf32, #tpu.memory_space<vmem>>, vector<1x1x32x32xf32>
    %326 = vector.shape_cast %325 : vector<1x1x32x32xf32> to vector<32x32xf32>
    %cst_182 = arith.constant dense<0.000000e+00> : vector<32x32xf32>
    %327 = tpu.matmul %317, %326, %cst_182 {dimension_numbers = #tpu.dot_dimension_numbers<[1], [0], [0], [1], [0, 0, 1, 1], [], []>} : vector<32x32xf32>, vector<32x32xf32>, vector<32x32xf32> -> vector<32x32xf32>
    %c1_183 = arith.constant 1 : index
    %c1_184 = arith.constant 1 : index
    %c0_185 = arith.constant 0 : index
    %c0_186 = arith.constant 0 : index
    %328 = vector.load %arg6[%c1_183, %c1_184, %c0_185, %c0_186] : memref<2x3x1x32xf32, #tpu.memory_space<vmem>>, vector<1x1x1x32xf32>
    %329 = vector.shape_cast %328 : vector<1x1x1x32xf32> to vector<1x32xf32>
    %330 = vector.broadcast %329 : vector<1x32xf32> to vector<32x32xf32>
    %331 = arith.addf %327, %330 : vector<32x32xf32>
    %c1_187 = arith.constant 1 : index
    %c2_188 = arith.constant 2 : index
    %c0_189 = arith.constant 0 : index
    %c0_190 = arith.constant 0 : index
    %332 = vector.load %arg5[%c1_187, %c2_188, %c0_189, %c0_190] : memref<2x3x32x32xf32, #tpu.memory_space<vmem>>, vector<1x1x32x32xf32>
    %333 = vector.shape_cast %332 : vector<1x1x32x32xf32> to vector<32x32xf32>
    %cst_191 = arith.constant dense<0.000000e+00> : vector<32x32xf32>
    %334 = tpu.matmul %317, %333, %cst_191 {dimension_numbers = #tpu.dot_dimension_numbers<[1], [0], [0], [1], [0, 0, 1, 1], [], []>} : vector<32x32xf32>, vector<32x32xf32>, vector<32x32xf32> -> vector<32x32xf32>
    %c1_192 = arith.constant 1 : index
    %c2_193 = arith.constant 2 : index
    %c0_194 = arith.constant 0 : index
    %c0_195 = arith.constant 0 : index
    %335 = vector.load %arg6[%c1_192, %c2_193, %c0_194, %c0_195] : memref<2x3x1x32xf32, #tpu.memory_space<vmem>>, vector<1x1x1x32xf32>
    %336 = vector.shape_cast %335 : vector<1x1x1x32xf32> to vector<1x32xf32>
    %337 = vector.broadcast %336 : vector<1x32xf32> to vector<32x32xf32>
    %338 = arith.addf %334, %337 : vector<32x32xf32>
    %c1_196 = arith.constant 1 : index
    %c0_197 = arith.constant 0 : index
    %c0_198 = arith.constant 0 : index
    %339 = vector.load %arg7[%c1_196, %c0_197, %c0_198] : memref<2x32x32xf32, #tpu.memory_space<vmem>>, vector<1x32x32xf32>
    %340 = vector.shape_cast %339 : vector<1x32x32xf32> to vector<32x32xf32>
    %c1_199 = arith.constant 1 : index
    %c0_200 = arith.constant 0 : index
    %c0_201 = arith.constant 0 : index
    %341 = vector.load %arg8[%c1_199, %c0_200, %c0_201] : memref<2x1x32xf32, #tpu.memory_space<vmem>>, vector<1x1x32xf32>
    %342 = vector.shape_cast %341 : vector<1x1x32xf32> to vector<1x32xf32>
    %cst_202 = arith.constant 0.000000e+00 : f32
    %343 = vector.broadcast %cst_202 : f32 to vector<32x32xf32>
    %344 = vector.extract_strided_slice %324 {offsets = [0, 0], sizes = [32, 8], strides = [1, 1]} : vector<32x32xf32> to vector<32x8xf32>
    %345 = vector.extract_strided_slice %331 {offsets = [0, 0], sizes = [32, 8], strides = [1, 1]} : vector<32x32xf32> to vector<32x8xf32>
    %346 = vector.extract_strided_slice %338 {offsets = [0, 0], sizes = [32, 8], strides = [1, 1]} : vector<32x32xf32> to vector<32x8xf32>
    %cst_203 = arith.constant dense<0.000000e+00> : vector<32x32xf32>
    %347 = tpu.matmul %344, %345, %cst_203 {dimension_numbers = #tpu.dot_dimension_numbers<[1], [1], [0], [0], [0, 0, 1, 0], [], []>} : vector<32x8xf32>, vector<32x8xf32>, vector<32x32xf32> -> vector<32x32xf32>
    %348 = arith.addf %347, %5 : vector<32x32xf32>
    %cst_204 = arith.constant dense<0xFF800000> : vector<32xf32>
    %349 = vector.multi_reduction <maximumf>, %348, %cst_204 [1] : vector<32x32xf32> to vector<32xf32>
    %350 = vector.shape_cast %349 : vector<32xf32> to vector<32x1xf32>
    %351 = vector.broadcast %350 : vector<32x1xf32> to vector<32x32xf32>
    %352 = arith.subf %348, %351 : vector<32x32xf32>
    %353 = math.exp %352 : vector<32x32xf32>
    %cst_205 = arith.constant dense<0.000000e+00> : vector<32xf32>
    %354 = vector.multi_reduction <add>, %353, %cst_205 [1] : vector<32x32xf32> to vector<32xf32>
    %355 = vector.shape_cast %354 : vector<32xf32> to vector<32x1xf32>
    %356 = tpu.reciprocal %355 {approx = true} : vector<32x1xf32> -> vector<32x1xf32>
    %357 = vector.broadcast %356 : vector<32x1xf32> to vector<32x32xf32>
    %358 = arith.mulf %353, %357 : vector<32x32xf32>
    %cst_206 = arith.constant dense<0.000000e+00> : vector<32x8xf32>
    %359 = tpu.matmul %358, %346, %cst_206 {dimension_numbers = #tpu.dot_dimension_numbers<[1], [0], [0], [1], [0, 0, 1, 1], [], []>} : vector<32x32xf32>, vector<32x8xf32>, vector<32x8xf32> -> vector<32x8xf32>
    %360 = vector.extract_strided_slice %340 {offsets = [0, 0], sizes = [8, 32], strides = [1, 1]} : vector<32x32xf32> to vector<8x32xf32>
    %cst_207 = arith.constant dense<0.000000e+00> : vector<32x32xf32>
    %361 = tpu.matmul %359, %360, %cst_207 {dimension_numbers = #tpu.dot_dimension_numbers<[1], [0], [0], [1], [0, 0, 1, 1], [], []>} : vector<32x8xf32>, vector<8x32xf32>, vector<32x32xf32> -> vector<32x32xf32>
    %362 = arith.addf %343, %361 : vector<32x32xf32>
    %363 = vector.extract_strided_slice %324 {offsets = [0, 8], sizes = [32, 8], strides = [1, 1]} : vector<32x32xf32> to vector<32x8xf32>
    %364 = vector.extract_strided_slice %331 {offsets = [0, 8], sizes = [32, 8], strides = [1, 1]} : vector<32x32xf32> to vector<32x8xf32>
    %365 = vector.extract_strided_slice %338 {offsets = [0, 8], sizes = [32, 8], strides = [1, 1]} : vector<32x32xf32> to vector<32x8xf32>
    %cst_208 = arith.constant dense<0.000000e+00> : vector<32x32xf32>
    %366 = tpu.matmul %363, %364, %cst_208 {dimension_numbers = #tpu.dot_dimension_numbers<[1], [1], [0], [0], [0, 0, 1, 0], [], []>} : vector<32x8xf32>, vector<32x8xf32>, vector<32x32xf32> -> vector<32x32xf32>
    %367 = arith.addf %366, %5 : vector<32x32xf32>
    %cst_209 = arith.constant dense<0xFF800000> : vector<32xf32>
    %368 = vector.multi_reduction <maximumf>, %367, %cst_209 [1] : vector<32x32xf32> to vector<32xf32>
    %369 = vector.shape_cast %368 : vector<32xf32> to vector<32x1xf32>
    %370 = vector.broadcast %369 : vector<32x1xf32> to vector<32x32xf32>
    %371 = arith.subf %367, %370 : vector<32x32xf32>
    %372 = math.exp %371 : vector<32x32xf32>
    %cst_210 = arith.constant dense<0.000000e+00> : vector<32xf32>
    %373 = vector.multi_reduction <add>, %372, %cst_210 [1] : vector<32x32xf32> to vector<32xf32>
    %374 = vector.shape_cast %373 : vector<32xf32> to vector<32x1xf32>
    %375 = tpu.reciprocal %374 {approx = true} : vector<32x1xf32> -> vector<32x1xf32>
    %376 = vector.broadcast %375 : vector<32x1xf32> to vector<32x32xf32>
    %377 = arith.mulf %372, %376 : vector<32x32xf32>
    %cst_211 = arith.constant dense<0.000000e+00> : vector<32x8xf32>
    %378 = tpu.matmul %377, %365, %cst_211 {dimension_numbers = #tpu.dot_dimension_numbers<[1], [0], [0], [1], [0, 0, 1, 1], [], []>} : vector<32x32xf32>, vector<32x8xf32>, vector<32x8xf32> -> vector<32x8xf32>
    %379 = vector.extract_strided_slice %340 {offsets = [8, 0], sizes = [8, 32], strides = [1, 1]} : vector<32x32xf32> to vector<8x32xf32>
    %cst_212 = arith.constant dense<0.000000e+00> : vector<32x32xf32>
    %380 = tpu.matmul %378, %379, %cst_212 {dimension_numbers = #tpu.dot_dimension_numbers<[1], [0], [0], [1], [0, 0, 1, 1], [], []>} : vector<32x8xf32>, vector<8x32xf32>, vector<32x32xf32> -> vector<32x32xf32>
    %381 = arith.addf %362, %380 : vector<32x32xf32>
    %382 = vector.extract_strided_slice %324 {offsets = [0, 16], sizes = [32, 8], strides = [1, 1]} : vector<32x32xf32> to vector<32x8xf32>
    %383 = vector.extract_strided_slice %331 {offsets = [0, 16], sizes = [32, 8], strides = [1, 1]} : vector<32x32xf32> to vector<32x8xf32>
    %384 = vector.extract_strided_slice %338 {offsets = [0, 16], sizes = [32, 8], strides = [1, 1]} : vector<32x32xf32> to vector<32x8xf32>
    %cst_213 = arith.constant dense<0.000000e+00> : vector<32x32xf32>
    %385 = tpu.matmul %382, %383, %cst_213 {dimension_numbers = #tpu.dot_dimension_numbers<[1], [1], [0], [0], [0, 0, 1, 0], [], []>} : vector<32x8xf32>, vector<32x8xf32>, vector<32x32xf32> -> vector<32x32xf32>
    %386 = arith.addf %385, %5 : vector<32x32xf32>
    %cst_214 = arith.constant dense<0xFF800000> : vector<32xf32>
    %387 = vector.multi_reduction <maximumf>, %386, %cst_214 [1] : vector<32x32xf32> to vector<32xf32>
    %388 = vector.shape_cast %387 : vector<32xf32> to vector<32x1xf32>
    %389 = vector.broadcast %388 : vector<32x1xf32> to vector<32x32xf32>
    %390 = arith.subf %386, %389 : vector<32x32xf32>
    %391 = math.exp %390 : vector<32x32xf32>
    %cst_215 = arith.constant dense<0.000000e+00> : vector<32xf32>
    %392 = vector.multi_reduction <add>, %391, %cst_215 [1] : vector<32x32xf32> to vector<32xf32>
    %393 = vector.shape_cast %392 : vector<32xf32> to vector<32x1xf32>
    %394 = tpu.reciprocal %393 {approx = true} : vector<32x1xf32> -> vector<32x1xf32>
    %395 = vector.broadcast %394 : vector<32x1xf32> to vector<32x32xf32>
    %396 = arith.mulf %391, %395 : vector<32x32xf32>
    %cst_216 = arith.constant dense<0.000000e+00> : vector<32x8xf32>
    %397 = tpu.matmul %396, %384, %cst_216 {dimension_numbers = #tpu.dot_dimension_numbers<[1], [0], [0], [1], [0, 0, 1, 1], [], []>} : vector<32x32xf32>, vector<32x8xf32>, vector<32x8xf32> -> vector<32x8xf32>
    %398 = vector.extract_strided_slice %340 {offsets = [16, 0], sizes = [8, 32], strides = [1, 1]} : vector<32x32xf32> to vector<8x32xf32>
    %cst_217 = arith.constant dense<0.000000e+00> : vector<32x32xf32>
    %399 = tpu.matmul %397, %398, %cst_217 {dimension_numbers = #tpu.dot_dimension_numbers<[1], [0], [0], [1], [0, 0, 1, 1], [], []>} : vector<32x8xf32>, vector<8x32xf32>, vector<32x32xf32> -> vector<32x32xf32>
    %400 = arith.addf %381, %399 : vector<32x32xf32>
    %401 = vector.extract_strided_slice %324 {offsets = [0, 24], sizes = [32, 8], strides = [1, 1]} : vector<32x32xf32> to vector<32x8xf32>
    %402 = vector.extract_strided_slice %331 {offsets = [0, 24], sizes = [32, 8], strides = [1, 1]} : vector<32x32xf32> to vector<32x8xf32>
    %403 = vector.extract_strided_slice %338 {offsets = [0, 24], sizes = [32, 8], strides = [1, 1]} : vector<32x32xf32> to vector<32x8xf32>
    %cst_218 = arith.constant dense<0.000000e+00> : vector<32x32xf32>
    %404 = tpu.matmul %401, %402, %cst_218 {dimension_numbers = #tpu.dot_dimension_numbers<[1], [1], [0], [0], [0, 0, 1, 0], [], []>} : vector<32x8xf32>, vector<32x8xf32>, vector<32x32xf32> -> vector<32x32xf32>
    %405 = arith.addf %404, %5 : vector<32x32xf32>
    %cst_219 = arith.constant dense<0xFF800000> : vector<32xf32>
    %406 = vector.multi_reduction <maximumf>, %405, %cst_219 [1] : vector<32x32xf32> to vector<32xf32>
    %407 = vector.shape_cast %406 : vector<32xf32> to vector<32x1xf32>
    %408 = vector.broadcast %407 : vector<32x1xf32> to vector<32x32xf32>
    %409 = arith.subf %405, %408 : vector<32x32xf32>
    %410 = math.exp %409 : vector<32x32xf32>
    %cst_220 = arith.constant dense<0.000000e+00> : vector<32xf32>
    %411 = vector.multi_reduction <add>, %410, %cst_220 [1] : vector<32x32xf32> to vector<32xf32>
    %412 = vector.shape_cast %411 : vector<32xf32> to vector<32x1xf32>
    %413 = tpu.reciprocal %412 {approx = true} : vector<32x1xf32> -> vector<32x1xf32>
    %414 = vector.broadcast %413 : vector<32x1xf32> to vector<32x32xf32>
    %415 = arith.mulf %410, %414 : vector<32x32xf32>
    %cst_221 = arith.constant dense<0.000000e+00> : vector<32x8xf32>
    %416 = tpu.matmul %415, %403, %cst_221 {dimension_numbers = #tpu.dot_dimension_numbers<[1], [0], [0], [1], [0, 0, 1, 1], [], []>} : vector<32x32xf32>, vector<32x8xf32>, vector<32x8xf32> -> vector<32x8xf32>
    %417 = vector.extract_strided_slice %340 {offsets = [24, 0], sizes = [8, 32], strides = [1, 1]} : vector<32x32xf32> to vector<8x32xf32>
    %cst_222 = arith.constant dense<0.000000e+00> : vector<32x32xf32>
    %418 = tpu.matmul %416, %417, %cst_222 {dimension_numbers = #tpu.dot_dimension_numbers<[1], [0], [0], [1], [0, 0, 1, 1], [], []>} : vector<32x8xf32>, vector<8x32xf32>, vector<32x32xf32> -> vector<32x32xf32>
    %419 = arith.addf %400, %418 : vector<32x32xf32>
    %420 = vector.broadcast %342 : vector<1x32xf32> to vector<32x32xf32>
    %421 = arith.addf %419, %420 : vector<32x32xf32>
    %422 = arith.addf %317, %421 : vector<32x32xf32>
    %c1_223 = arith.constant 1 : index
    %c0_224 = arith.constant 0 : index
    %c0_225 = arith.constant 0 : index
    %c0_226 = arith.constant 0 : index
    %423 = vector.load %arg17[%c1_223, %c0_224, %c0_225, %c0_226] : memref<2x3x1x32xf32, #tpu.memory_space<vmem>>, vector<1x1x1x32xf32>
    %424 = vector.shape_cast %423 : vector<1x1x1x32xf32> to vector<1x32xf32>
    %c1_227 = arith.constant 1 : index
    %c0_228 = arith.constant 0 : index
    %c0_229 = arith.constant 0 : index
    %c0_230 = arith.constant 0 : index
    %425 = vector.load %arg18[%c1_227, %c0_228, %c0_229, %c0_230] : memref<2x3x1x32xf32, #tpu.memory_space<vmem>>, vector<1x1x1x32xf32>
    %426 = vector.shape_cast %425 : vector<1x1x1x32xf32> to vector<1x32xf32>
    %cst_231 = arith.constant dense<0.000000e+00> : vector<32xf32>
    %427 = vector.multi_reduction <add>, %422, %cst_231 [1] : vector<32x32xf32> to vector<32xf32>
    %428 = vector.shape_cast %427 : vector<32xf32> to vector<32x1xf32>
    %cst_232 = arith.constant 3.200000e+01 : f32
    %429 = vector.broadcast %cst_232 : f32 to vector<32x1xf32>
    %430 = arith.divf %428, %429 : vector<32x1xf32>
    %431 = vector.broadcast %430 : vector<32x1xf32> to vector<32x32xf32>
    %432 = arith.subf %422, %431 : vector<32x32xf32>
    %433 = arith.mulf %432, %432 : vector<32x32xf32>
    %cst_233 = arith.constant dense<0.000000e+00> : vector<32xf32>
    %434 = vector.multi_reduction <add>, %433, %cst_233 [1] : vector<32x32xf32> to vector<32xf32>
    %435 = vector.shape_cast %434 : vector<32xf32> to vector<32x1xf32>
    %cst_234 = arith.constant 3.200000e+01 : f32
    %436 = vector.broadcast %cst_234 : f32 to vector<32x1xf32>
    %437 = arith.divf %435, %436 : vector<32x1xf32>
    %438 = vector.broadcast %430 : vector<32x1xf32> to vector<32x32xf32>
    %439 = arith.subf %422, %438 : vector<32x32xf32>
    %cst_235 = arith.constant 9.99999974E-6 : f32
    %440 = vector.broadcast %cst_235 : f32 to vector<32x1xf32>
    %441 = arith.addf %437, %440 : vector<32x1xf32>
    %442 = math.rsqrt %441 : vector<32x1xf32>
    %443 = vector.broadcast %442 : vector<32x1xf32> to vector<32x32xf32>
    %444 = arith.mulf %439, %443 : vector<32x32xf32>
    %445 = vector.broadcast %424 : vector<1x32xf32> to vector<32x32xf32>
    %446 = arith.mulf %444, %445 : vector<32x32xf32>
    %447 = vector.broadcast %426 : vector<1x32xf32> to vector<32x32xf32>
    %448 = arith.addf %446, %447 : vector<32x32xf32>
    %c1_236 = arith.constant 1 : index
    %c0_237 = arith.constant 0 : index
    %c0_238 = arith.constant 0 : index
    %c0_239 = arith.constant 0 : index
    %449 = vector.load %arg9[%c1_236, %c0_237, %c0_238, %c0_239] : memref<2x3x32x32xf32, #tpu.memory_space<vmem>>, vector<1x1x32x32xf32>
    %450 = vector.shape_cast %449 : vector<1x1x32x32xf32> to vector<32x32xf32>
    %cst_240 = arith.constant dense<0.000000e+00> : vector<32x32xf32>
    %451 = tpu.matmul %448, %450, %cst_240 {dimension_numbers = #tpu.dot_dimension_numbers<[1], [0], [0], [1], [0, 0, 1, 1], [], []>} : vector<32x32xf32>, vector<32x32xf32>, vector<32x32xf32> -> vector<32x32xf32>
    %c1_241 = arith.constant 1 : index
    %c0_242 = arith.constant 0 : index
    %c0_243 = arith.constant 0 : index
    %c0_244 = arith.constant 0 : index
    %452 = vector.load %arg10[%c1_241, %c0_242, %c0_243, %c0_244] : memref<2x3x1x32xf32, #tpu.memory_space<vmem>>, vector<1x1x1x32xf32>
    %453 = vector.shape_cast %452 : vector<1x1x1x32xf32> to vector<1x32xf32>
    %454 = vector.broadcast %453 : vector<1x32xf32> to vector<32x32xf32>
    %455 = arith.addf %451, %454 : vector<32x32xf32>
    %c1_245 = arith.constant 1 : index
    %c1_246 = arith.constant 1 : index
    %c0_247 = arith.constant 0 : index
    %c0_248 = arith.constant 0 : index
    %456 = vector.load %arg9[%c1_245, %c1_246, %c0_247, %c0_248] : memref<2x3x32x32xf32, #tpu.memory_space<vmem>>, vector<1x1x32x32xf32>
    %457 = vector.shape_cast %456 : vector<1x1x32x32xf32> to vector<32x32xf32>
    %cst_249 = arith.constant dense<0.000000e+00> : vector<32x32xf32>
    %458 = tpu.matmul %12, %457, %cst_249 {dimension_numbers = #tpu.dot_dimension_numbers<[1], [0], [0], [1], [0, 0, 1, 1], [], []>} : vector<32x32xf32>, vector<32x32xf32>, vector<32x32xf32> -> vector<32x32xf32>
    %c1_250 = arith.constant 1 : index
    %c1_251 = arith.constant 1 : index
    %c0_252 = arith.constant 0 : index
    %c0_253 = arith.constant 0 : index
    %459 = vector.load %arg10[%c1_250, %c1_251, %c0_252, %c0_253] : memref<2x3x1x32xf32, #tpu.memory_space<vmem>>, vector<1x1x1x32xf32>
    %460 = vector.shape_cast %459 : vector<1x1x1x32xf32> to vector<1x32xf32>
    %461 = vector.broadcast %460 : vector<1x32xf32> to vector<32x32xf32>
    %462 = arith.addf %458, %461 : vector<32x32xf32>
    %c1_254 = arith.constant 1 : index
    %c2_255 = arith.constant 2 : index
    %c0_256 = arith.constant 0 : index
    %c0_257 = arith.constant 0 : index
    %463 = vector.load %arg9[%c1_254, %c2_255, %c0_256, %c0_257] : memref<2x3x32x32xf32, #tpu.memory_space<vmem>>, vector<1x1x32x32xf32>
    %464 = vector.shape_cast %463 : vector<1x1x32x32xf32> to vector<32x32xf32>
    %cst_258 = arith.constant dense<0.000000e+00> : vector<32x32xf32>
    %465 = tpu.matmul %12, %464, %cst_258 {dimension_numbers = #tpu.dot_dimension_numbers<[1], [0], [0], [1], [0, 0, 1, 1], [], []>} : vector<32x32xf32>, vector<32x32xf32>, vector<32x32xf32> -> vector<32x32xf32>
    %c1_259 = arith.constant 1 : index
    %c2_260 = arith.constant 2 : index
    %c0_261 = arith.constant 0 : index
    %c0_262 = arith.constant 0 : index
    %466 = vector.load %arg10[%c1_259, %c2_260, %c0_261, %c0_262] : memref<2x3x1x32xf32, #tpu.memory_space<vmem>>, vector<1x1x1x32xf32>
    %467 = vector.shape_cast %466 : vector<1x1x1x32xf32> to vector<1x32xf32>
    %468 = vector.broadcast %467 : vector<1x32xf32> to vector<32x32xf32>
    %469 = arith.addf %465, %468 : vector<32x32xf32>
    %c1_263 = arith.constant 1 : index
    %c0_264 = arith.constant 0 : index
    %c0_265 = arith.constant 0 : index
    %470 = vector.load %arg11[%c1_263, %c0_264, %c0_265] : memref<2x32x32xf32, #tpu.memory_space<vmem>>, vector<1x32x32xf32>
    %471 = vector.shape_cast %470 : vector<1x32x32xf32> to vector<32x32xf32>
    %c1_266 = arith.constant 1 : index
    %c0_267 = arith.constant 0 : index
    %c0_268 = arith.constant 0 : index
    %472 = vector.load %arg12[%c1_266, %c0_267, %c0_268] : memref<2x1x32xf32, #tpu.memory_space<vmem>>, vector<1x1x32xf32>
    %473 = vector.shape_cast %472 : vector<1x1x32xf32> to vector<1x32xf32>
    %cst_269 = arith.constant 0.000000e+00 : f32
    %474 = vector.broadcast %cst_269 : f32 to vector<32x32xf32>
    %475 = vector.extract_strided_slice %455 {offsets = [0, 0], sizes = [32, 8], strides = [1, 1]} : vector<32x32xf32> to vector<32x8xf32>
    %476 = vector.extract_strided_slice %462 {offsets = [0, 0], sizes = [32, 8], strides = [1, 1]} : vector<32x32xf32> to vector<32x8xf32>
    %477 = vector.extract_strided_slice %469 {offsets = [0, 0], sizes = [32, 8], strides = [1, 1]} : vector<32x32xf32> to vector<32x8xf32>
    %cst_270 = arith.constant dense<0.000000e+00> : vector<32x32xf32>
    %478 = tpu.matmul %475, %476, %cst_270 {dimension_numbers = #tpu.dot_dimension_numbers<[1], [1], [0], [0], [0, 0, 1, 0], [], []>} : vector<32x8xf32>, vector<32x8xf32>, vector<32x32xf32> -> vector<32x32xf32>
    %479 = arith.addf %478, %5 : vector<32x32xf32>
    %cst_271 = arith.constant dense<0xFF800000> : vector<32xf32>
    %480 = vector.multi_reduction <maximumf>, %479, %cst_271 [1] : vector<32x32xf32> to vector<32xf32>
    %481 = vector.shape_cast %480 : vector<32xf32> to vector<32x1xf32>
    %482 = vector.broadcast %481 : vector<32x1xf32> to vector<32x32xf32>
    %483 = arith.subf %479, %482 : vector<32x32xf32>
    %484 = math.exp %483 : vector<32x32xf32>
    %cst_272 = arith.constant dense<0.000000e+00> : vector<32xf32>
    %485 = vector.multi_reduction <add>, %484, %cst_272 [1] : vector<32x32xf32> to vector<32xf32>
    %486 = vector.shape_cast %485 : vector<32xf32> to vector<32x1xf32>
    %487 = tpu.reciprocal %486 {approx = true} : vector<32x1xf32> -> vector<32x1xf32>
    %488 = vector.broadcast %487 : vector<32x1xf32> to vector<32x32xf32>
    %489 = arith.mulf %484, %488 : vector<32x32xf32>
    %cst_273 = arith.constant dense<0.000000e+00> : vector<32x8xf32>
    %490 = tpu.matmul %489, %477, %cst_273 {dimension_numbers = #tpu.dot_dimension_numbers<[1], [0], [0], [1], [0, 0, 1, 1], [], []>} : vector<32x32xf32>, vector<32x8xf32>, vector<32x8xf32> -> vector<32x8xf32>
    %491 = vector.extract_strided_slice %471 {offsets = [0, 0], sizes = [8, 32], strides = [1, 1]} : vector<32x32xf32> to vector<8x32xf32>
    %cst_274 = arith.constant dense<0.000000e+00> : vector<32x32xf32>
    %492 = tpu.matmul %490, %491, %cst_274 {dimension_numbers = #tpu.dot_dimension_numbers<[1], [0], [0], [1], [0, 0, 1, 1], [], []>} : vector<32x8xf32>, vector<8x32xf32>, vector<32x32xf32> -> vector<32x32xf32>
    %493 = arith.addf %474, %492 : vector<32x32xf32>
    %494 = vector.extract_strided_slice %455 {offsets = [0, 8], sizes = [32, 8], strides = [1, 1]} : vector<32x32xf32> to vector<32x8xf32>
    %495 = vector.extract_strided_slice %462 {offsets = [0, 8], sizes = [32, 8], strides = [1, 1]} : vector<32x32xf32> to vector<32x8xf32>
    %496 = vector.extract_strided_slice %469 {offsets = [0, 8], sizes = [32, 8], strides = [1, 1]} : vector<32x32xf32> to vector<32x8xf32>
    %cst_275 = arith.constant dense<0.000000e+00> : vector<32x32xf32>
    %497 = tpu.matmul %494, %495, %cst_275 {dimension_numbers = #tpu.dot_dimension_numbers<[1], [1], [0], [0], [0, 0, 1, 0], [], []>} : vector<32x8xf32>, vector<32x8xf32>, vector<32x32xf32> -> vector<32x32xf32>
    %498 = arith.addf %497, %5 : vector<32x32xf32>
    %cst_276 = arith.constant dense<0xFF800000> : vector<32xf32>
    %499 = vector.multi_reduction <maximumf>, %498, %cst_276 [1] : vector<32x32xf32> to vector<32xf32>
    %500 = vector.shape_cast %499 : vector<32xf32> to vector<32x1xf32>
    %501 = vector.broadcast %500 : vector<32x1xf32> to vector<32x32xf32>
    %502 = arith.subf %498, %501 : vector<32x32xf32>
    %503 = math.exp %502 : vector<32x32xf32>
    %cst_277 = arith.constant dense<0.000000e+00> : vector<32xf32>
    %504 = vector.multi_reduction <add>, %503, %cst_277 [1] : vector<32x32xf32> to vector<32xf32>
    %505 = vector.shape_cast %504 : vector<32xf32> to vector<32x1xf32>
    %506 = tpu.reciprocal %505 {approx = true} : vector<32x1xf32> -> vector<32x1xf32>
    %507 = vector.broadcast %506 : vector<32x1xf32> to vector<32x32xf32>
    %508 = arith.mulf %503, %507 : vector<32x32xf32>
    %cst_278 = arith.constant dense<0.000000e+00> : vector<32x8xf32>
    %509 = tpu.matmul %508, %496, %cst_278 {dimension_numbers = #tpu.dot_dimension_numbers<[1], [0], [0], [1], [0, 0, 1, 1], [], []>} : vector<32x32xf32>, vector<32x8xf32>, vector<32x8xf32> -> vector<32x8xf32>
    %510 = vector.extract_strided_slice %471 {offsets = [8, 0], sizes = [8, 32], strides = [1, 1]} : vector<32x32xf32> to vector<8x32xf32>
    %cst_279 = arith.constant dense<0.000000e+00> : vector<32x32xf32>
    %511 = tpu.matmul %509, %510, %cst_279 {dimension_numbers = #tpu.dot_dimension_numbers<[1], [0], [0], [1], [0, 0, 1, 1], [], []>} : vector<32x8xf32>, vector<8x32xf32>, vector<32x32xf32> -> vector<32x32xf32>
    %512 = arith.addf %493, %511 : vector<32x32xf32>
    %513 = vector.extract_strided_slice %455 {offsets = [0, 16], sizes = [32, 8], strides = [1, 1]} : vector<32x32xf32> to vector<32x8xf32>
    %514 = vector.extract_strided_slice %462 {offsets = [0, 16], sizes = [32, 8], strides = [1, 1]} : vector<32x32xf32> to vector<32x8xf32>
    %515 = vector.extract_strided_slice %469 {offsets = [0, 16], sizes = [32, 8], strides = [1, 1]} : vector<32x32xf32> to vector<32x8xf32>
    %cst_280 = arith.constant dense<0.000000e+00> : vector<32x32xf32>
    %516 = tpu.matmul %513, %514, %cst_280 {dimension_numbers = #tpu.dot_dimension_numbers<[1], [1], [0], [0], [0, 0, 1, 0], [], []>} : vector<32x8xf32>, vector<32x8xf32>, vector<32x32xf32> -> vector<32x32xf32>
    %517 = arith.addf %516, %5 : vector<32x32xf32>
    %cst_281 = arith.constant dense<0xFF800000> : vector<32xf32>
    %518 = vector.multi_reduction <maximumf>, %517, %cst_281 [1] : vector<32x32xf32> to vector<32xf32>
    %519 = vector.shape_cast %518 : vector<32xf32> to vector<32x1xf32>
    %520 = vector.broadcast %519 : vector<32x1xf32> to vector<32x32xf32>
    %521 = arith.subf %517, %520 : vector<32x32xf32>
    %522 = math.exp %521 : vector<32x32xf32>
    %cst_282 = arith.constant dense<0.000000e+00> : vector<32xf32>
    %523 = vector.multi_reduction <add>, %522, %cst_282 [1] : vector<32x32xf32> to vector<32xf32>
    %524 = vector.shape_cast %523 : vector<32xf32> to vector<32x1xf32>
    %525 = tpu.reciprocal %524 {approx = true} : vector<32x1xf32> -> vector<32x1xf32>
    %526 = vector.broadcast %525 : vector<32x1xf32> to vector<32x32xf32>
    %527 = arith.mulf %522, %526 : vector<32x32xf32>
    %cst_283 = arith.constant dense<0.000000e+00> : vector<32x8xf32>
    %528 = tpu.matmul %527, %515, %cst_283 {dimension_numbers = #tpu.dot_dimension_numbers<[1], [0], [0], [1], [0, 0, 1, 1], [], []>} : vector<32x32xf32>, vector<32x8xf32>, vector<32x8xf32> -> vector<32x8xf32>
    %529 = vector.extract_strided_slice %471 {offsets = [16, 0], sizes = [8, 32], strides = [1, 1]} : vector<32x32xf32> to vector<8x32xf32>
    %cst_284 = arith.constant dense<0.000000e+00> : vector<32x32xf32>
    %530 = tpu.matmul %528, %529, %cst_284 {dimension_numbers = #tpu.dot_dimension_numbers<[1], [0], [0], [1], [0, 0, 1, 1], [], []>} : vector<32x8xf32>, vector<8x32xf32>, vector<32x32xf32> -> vector<32x32xf32>
    %531 = arith.addf %512, %530 : vector<32x32xf32>
    %532 = vector.extract_strided_slice %455 {offsets = [0, 24], sizes = [32, 8], strides = [1, 1]} : vector<32x32xf32> to vector<32x8xf32>
    %533 = vector.extract_strided_slice %462 {offsets = [0, 24], sizes = [32, 8], strides = [1, 1]} : vector<32x32xf32> to vector<32x8xf32>
    %534 = vector.extract_strided_slice %469 {offsets = [0, 24], sizes = [32, 8], strides = [1, 1]} : vector<32x32xf32> to vector<32x8xf32>
    %cst_285 = arith.constant dense<0.000000e+00> : vector<32x32xf32>
    %535 = tpu.matmul %532, %533, %cst_285 {dimension_numbers = #tpu.dot_dimension_numbers<[1], [1], [0], [0], [0, 0, 1, 0], [], []>} : vector<32x8xf32>, vector<32x8xf32>, vector<32x32xf32> -> vector<32x32xf32>
    %536 = arith.addf %535, %5 : vector<32x32xf32>
    %cst_286 = arith.constant dense<0xFF800000> : vector<32xf32>
    %537 = vector.multi_reduction <maximumf>, %536, %cst_286 [1] : vector<32x32xf32> to vector<32xf32>
    %538 = vector.shape_cast %537 : vector<32xf32> to vector<32x1xf32>
    %539 = vector.broadcast %538 : vector<32x1xf32> to vector<32x32xf32>
    %540 = arith.subf %536, %539 : vector<32x32xf32>
    %541 = math.exp %540 : vector<32x32xf32>
    %cst_287 = arith.constant dense<0.000000e+00> : vector<32xf32>
    %542 = vector.multi_reduction <add>, %541, %cst_287 [1] : vector<32x32xf32> to vector<32xf32>
    %543 = vector.shape_cast %542 : vector<32xf32> to vector<32x1xf32>
    %544 = tpu.reciprocal %543 {approx = true} : vector<32x1xf32> -> vector<32x1xf32>
    %545 = vector.broadcast %544 : vector<32x1xf32> to vector<32x32xf32>
    %546 = arith.mulf %541, %545 : vector<32x32xf32>
    %cst_288 = arith.constant dense<0.000000e+00> : vector<32x8xf32>
    %547 = tpu.matmul %546, %534, %cst_288 {dimension_numbers = #tpu.dot_dimension_numbers<[1], [0], [0], [1], [0, 0, 1, 1], [], []>} : vector<32x32xf32>, vector<32x8xf32>, vector<32x8xf32> -> vector<32x8xf32>
    %548 = vector.extract_strided_slice %471 {offsets = [24, 0], sizes = [8, 32], strides = [1, 1]} : vector<32x32xf32> to vector<8x32xf32>
    %cst_289 = arith.constant dense<0.000000e+00> : vector<32x32xf32>
    %549 = tpu.matmul %547, %548, %cst_289 {dimension_numbers = #tpu.dot_dimension_numbers<[1], [0], [0], [1], [0, 0, 1, 1], [], []>} : vector<32x8xf32>, vector<8x32xf32>, vector<32x32xf32> -> vector<32x32xf32>
    %550 = arith.addf %531, %549 : vector<32x32xf32>
    %551 = vector.broadcast %473 : vector<1x32xf32> to vector<32x32xf32>
    %552 = arith.addf %550, %551 : vector<32x32xf32>
    %553 = arith.addf %448, %552 : vector<32x32xf32>
    %c1_290 = arith.constant 1 : index
    %c1_291 = arith.constant 1 : index
    %c0_292 = arith.constant 0 : index
    %c0_293 = arith.constant 0 : index
    %554 = vector.load %arg17[%c1_290, %c1_291, %c0_292, %c0_293] : memref<2x3x1x32xf32, #tpu.memory_space<vmem>>, vector<1x1x1x32xf32>
    %555 = vector.shape_cast %554 : vector<1x1x1x32xf32> to vector<1x32xf32>
    %c1_294 = arith.constant 1 : index
    %c1_295 = arith.constant 1 : index
    %c0_296 = arith.constant 0 : index
    %c0_297 = arith.constant 0 : index
    %556 = vector.load %arg18[%c1_294, %c1_295, %c0_296, %c0_297] : memref<2x3x1x32xf32, #tpu.memory_space<vmem>>, vector<1x1x1x32xf32>
    %557 = vector.shape_cast %556 : vector<1x1x1x32xf32> to vector<1x32xf32>
    %cst_298 = arith.constant dense<0.000000e+00> : vector<32xf32>
    %558 = vector.multi_reduction <add>, %553, %cst_298 [1] : vector<32x32xf32> to vector<32xf32>
    %559 = vector.shape_cast %558 : vector<32xf32> to vector<32x1xf32>
    %cst_299 = arith.constant 3.200000e+01 : f32
    %560 = vector.broadcast %cst_299 : f32 to vector<32x1xf32>
    %561 = arith.divf %559, %560 : vector<32x1xf32>
    %562 = vector.broadcast %561 : vector<32x1xf32> to vector<32x32xf32>
    %563 = arith.subf %553, %562 : vector<32x32xf32>
    %564 = arith.mulf %563, %563 : vector<32x32xf32>
    %cst_300 = arith.constant dense<0.000000e+00> : vector<32xf32>
    %565 = vector.multi_reduction <add>, %564, %cst_300 [1] : vector<32x32xf32> to vector<32xf32>
    %566 = vector.shape_cast %565 : vector<32xf32> to vector<32x1xf32>
    %cst_301 = arith.constant 3.200000e+01 : f32
    %567 = vector.broadcast %cst_301 : f32 to vector<32x1xf32>
    %568 = arith.divf %566, %567 : vector<32x1xf32>
    %569 = vector.broadcast %561 : vector<32x1xf32> to vector<32x32xf32>
    %570 = arith.subf %553, %569 : vector<32x32xf32>
    %cst_302 = arith.constant 9.99999974E-6 : f32
    %571 = vector.broadcast %cst_302 : f32 to vector<32x1xf32>
    %572 = arith.addf %568, %571 : vector<32x1xf32>
    %573 = math.rsqrt %572 : vector<32x1xf32>
    %574 = vector.broadcast %573 : vector<32x1xf32> to vector<32x32xf32>
    %575 = arith.mulf %570, %574 : vector<32x32xf32>
    %576 = vector.broadcast %555 : vector<1x32xf32> to vector<32x32xf32>
    %577 = arith.mulf %575, %576 : vector<32x32xf32>
    %578 = vector.broadcast %557 : vector<1x32xf32> to vector<32x32xf32>
    %579 = arith.addf %577, %578 : vector<32x32xf32>
    %c1_303 = arith.constant 1 : index
    %c0_304 = arith.constant 0 : index
    %c0_305 = arith.constant 0 : index
    %580 = vector.load %arg13[%c1_303, %c0_304, %c0_305] : memref<2x32x64xf32, #tpu.memory_space<vmem>>, vector<1x32x64xf32>
    %581 = vector.shape_cast %580 : vector<1x32x64xf32> to vector<32x64xf32>
    %cst_306 = arith.constant dense<0.000000e+00> : vector<32x64xf32>
    %582 = tpu.matmul %579, %581, %cst_306 {dimension_numbers = #tpu.dot_dimension_numbers<[1], [0], [0], [1], [0, 0, 1, 1], [], []>} : vector<32x32xf32>, vector<32x64xf32>, vector<32x64xf32> -> vector<32x64xf32>
    %c1_307 = arith.constant 1 : index
    %c0_308 = arith.constant 0 : index
    %c0_309 = arith.constant 0 : index
    %583 = vector.load %arg14[%c1_307, %c0_308, %c0_309] : memref<2x1x64xf32, #tpu.memory_space<vmem>>, vector<1x1x64xf32>
    %584 = vector.shape_cast %583 : vector<1x1x64xf32> to vector<1x64xf32>
    %585 = vector.broadcast %584 : vector<1x64xf32> to vector<32x64xf32>
    %586 = arith.addf %582, %585 : vector<32x64xf32>
    %cst_310 = arith.constant 0.000000e+00 : f32
    %587 = vector.broadcast %cst_310 : f32 to vector<32x64xf32>
    %588 = arith.maximumf %586, %587 : vector<32x64xf32>
    %c1_311 = arith.constant 1 : index
    %c0_312 = arith.constant 0 : index
    %c0_313 = arith.constant 0 : index
    %589 = vector.load %arg15[%c1_311, %c0_312, %c0_313] : memref<2x64x32xf32, #tpu.memory_space<vmem>>, vector<1x64x32xf32>
    %590 = vector.shape_cast %589 : vector<1x64x32xf32> to vector<64x32xf32>
    %cst_314 = arith.constant dense<0.000000e+00> : vector<32x32xf32>
    %591 = tpu.matmul %588, %590, %cst_314 {dimension_numbers = #tpu.dot_dimension_numbers<[1], [0], [0], [1], [0, 0, 1, 1], [], []>} : vector<32x64xf32>, vector<64x32xf32>, vector<32x32xf32> -> vector<32x32xf32>
    %c1_315 = arith.constant 1 : index
    %c0_316 = arith.constant 0 : index
    %c0_317 = arith.constant 0 : index
    %592 = vector.load %arg16[%c1_315, %c0_316, %c0_317] : memref<2x1x32xf32, #tpu.memory_space<vmem>>, vector<1x1x32xf32>
    %593 = vector.shape_cast %592 : vector<1x1x32xf32> to vector<1x32xf32>
    %594 = vector.broadcast %593 : vector<1x32xf32> to vector<32x32xf32>
    %595 = arith.addf %591, %594 : vector<32x32xf32>
    %596 = arith.addf %579, %595 : vector<32x32xf32>
    %c1_318 = arith.constant 1 : index
    %c2_319 = arith.constant 2 : index
    %c0_320 = arith.constant 0 : index
    %c0_321 = arith.constant 0 : index
    %597 = vector.load %arg17[%c1_318, %c2_319, %c0_320, %c0_321] : memref<2x3x1x32xf32, #tpu.memory_space<vmem>>, vector<1x1x1x32xf32>
    %598 = vector.shape_cast %597 : vector<1x1x1x32xf32> to vector<1x32xf32>
    %c1_322 = arith.constant 1 : index
    %c2_323 = arith.constant 2 : index
    %c0_324 = arith.constant 0 : index
    %c0_325 = arith.constant 0 : index
    %599 = vector.load %arg18[%c1_322, %c2_323, %c0_324, %c0_325] : memref<2x3x1x32xf32, #tpu.memory_space<vmem>>, vector<1x1x1x32xf32>
    %600 = vector.shape_cast %599 : vector<1x1x1x32xf32> to vector<1x32xf32>
    %cst_326 = arith.constant dense<0.000000e+00> : vector<32xf32>
    %601 = vector.multi_reduction <add>, %596, %cst_326 [1] : vector<32x32xf32> to vector<32xf32>
    %602 = vector.shape_cast %601 : vector<32xf32> to vector<32x1xf32>
    %cst_327 = arith.constant 3.200000e+01 : f32
    %603 = vector.broadcast %cst_327 : f32 to vector<32x1xf32>
    %604 = arith.divf %602, %603 : vector<32x1xf32>
    %605 = vector.broadcast %604 : vector<32x1xf32> to vector<32x32xf32>
    %606 = arith.subf %596, %605 : vector<32x32xf32>
    %607 = arith.mulf %606, %606 : vector<32x32xf32>
    %cst_328 = arith.constant dense<0.000000e+00> : vector<32xf32>
    %608 = vector.multi_reduction <add>, %607, %cst_328 [1] : vector<32x32xf32> to vector<32xf32>
    %609 = vector.shape_cast %608 : vector<32xf32> to vector<32x1xf32>
    %cst_329 = arith.constant 3.200000e+01 : f32
    %610 = vector.broadcast %cst_329 : f32 to vector<32x1xf32>
    %611 = arith.divf %609, %610 : vector<32x1xf32>
    %612 = vector.broadcast %604 : vector<32x1xf32> to vector<32x32xf32>
    %613 = arith.subf %596, %612 : vector<32x32xf32>
    %cst_330 = arith.constant 9.99999974E-6 : f32
    %614 = vector.broadcast %cst_330 : f32 to vector<32x1xf32>
    %615 = arith.addf %611, %614 : vector<32x1xf32>
    %616 = math.rsqrt %615 : vector<32x1xf32>
    %617 = vector.broadcast %616 : vector<32x1xf32> to vector<32x32xf32>
    %618 = arith.mulf %613, %617 : vector<32x32xf32>
    %619 = vector.broadcast %598 : vector<1x32xf32> to vector<32x32xf32>
    %620 = arith.mulf %618, %619 : vector<32x32xf32>
    %621 = vector.broadcast %600 : vector<1x32xf32> to vector<32x32xf32>
    %622 = arith.addf %620, %621 : vector<32x32xf32>
    %c0_331 = arith.constant 0 : index
    %c0_332 = arith.constant 0 : index
    %623 = vector.load %arg19[%c0_331, %c0_332] : memref<32x8xf32, #tpu.memory_space<vmem>>, vector<32x8xf32>
    %cst_333 = arith.constant dense<0.000000e+00> : vector<32x8xf32>
    %624 = tpu.matmul %622, %623, %cst_333 {dimension_numbers = #tpu.dot_dimension_numbers<[1], [0], [0], [1], [0, 0, 1, 1], [], []>} : vector<32x32xf32>, vector<32x8xf32>, vector<32x8xf32> -> vector<32x8xf32>
    %c0_334 = arith.constant 0 : index
    %c0_335 = arith.constant 0 : index
    %625 = vector.load %arg20[%c0_334, %c0_335] : memref<1x8xf32, #tpu.memory_space<vmem>>, vector<1x8xf32>
    %626 = vector.broadcast %625 : vector<1x8xf32> to vector<32x8xf32>
    %627 = arith.addf %624, %626 : vector<32x8xf32>
    %c0_336 = arith.constant 0 : index
    %c0_337 = arith.constant 0 : index
    %628 = vector.load %arg21[%c0_336, %c0_337] : memref<32x8xf32, #tpu.memory_space<vmem>>, vector<32x8xf32>
    tpu.vector_store %arg21[%c0_336, %c0_337], %627 {strides = array<i32>} : memref<32x8xf32, #tpu.memory_space<vmem>>, vector<32x8xf32>,
    return
  }
  func.func @transform_0(%arg0: i32) -> (i32, i32) {
    %c0_i32 = arith.constant 0 : i32
    %c0_i32_0 = arith.constant 0 : i32
    %c0_i32_1 = arith.constant 0 : i32
    return %c0_i32, %c0_i32_0 : i32, i32
  }
  func.func @transform_1(%arg0: i32) -> (i32, i32) {
    %c0_i32 = arith.constant 0 : i32
    %c0_i32_0 = arith.constant 0 : i32
    %c0_i32_1 = arith.constant 0 : i32
    return %c0_i32, %c0_i32_0 : i32, i32
  }
  func.func @transform_2(%arg0: i32) -> (i32, i32) {
    %c0_i32 = arith.constant 0 : i32
    %c0_i32_0 = arith.constant 0 : i32
    %c0_i32_1 = arith.constant 0 : i32
    return %c0_i32, %c0_i32_0 : i32, i32
  }
  func.func @transform_3(%arg0: i32) -> (i32, i32) {
    %c0_i32 = arith.constant 0 : i32
    %c0_i32_0 = arith.constant 0 : i32
    %c0_i32_1 = arith.constant 0 : i32
    return %c0_i32, %c0_i32_0 : i32, i32
  }
  func.func @transform_4(%arg0: i32) -> (i32, i32, i32, i32) {
    %c0_i32 = arith.constant 0 : i32
    %c0_i32_0 = arith.constant 0 : i32
    %c0_i32_1 = arith.constant 0 : i32
    %c0_i32_2 = arith.constant 0 : i32
    %c0_i32_3 = arith.constant 0 : i32
    return %c0_i32, %c0_i32_0, %c0_i32_1, %c0_i32_2 : i32, i32, i32, i32
  }
  func.func @transform_5(%arg0: i32) -> (i32, i32, i32, i32) {
    %c0_i32 = arith.constant 0 : i32
    %c0_i32_0 = arith.constant 0 : i32
    %c0_i32_1 = arith.constant 0 : i32
    %c0_i32_2 = arith.constant 0 : i32
    %c0_i32_3 = arith.constant 0 : i32
    return %c0_i32, %c0_i32_0, %c0_i32_1, %c0_i32_2 : i32, i32, i32, i32
  }
  func.func @transform_6(%arg0: i32) -> (i32, i32, i32) {
    %c0_i32 = arith.constant 0 : i32
    %c0_i32_0 = arith.constant 0 : i32
    %c0_i32_1 = arith.constant 0 : i32
    %c0_i32_2 = arith.constant 0 : i32
    return %c0_i32, %c0_i32_0, %c0_i32_1 : i32, i32, i32
  }
  func.func @transform_7(%arg0: i32) -> (i32, i32, i32) {
    %c0_i32 = arith.constant 0 : i32
    %c0_i32_0 = arith.constant 0 : i32
    %c0_i32_1 = arith.constant 0 : i32
    %c0_i32_2 = arith.constant 0 : i32
    return %c0_i32, %c0_i32_0, %c0_i32_1 : i32, i32, i32
  }
  func.func @transform_8(%arg0: i32) -> (i32, i32, i32, i32) {
    %c0_i32 = arith.constant 0 : i32
    %c0_i32_0 = arith.constant 0 : i32
    %c0_i32_1 = arith.constant 0 : i32
    %c0_i32_2 = arith.constant 0 : i32
    %c0_i32_3 = arith.constant 0 : i32
    return %c0_i32, %c0_i32_0, %c0_i32_1, %c0_i32_2 : i32, i32, i32, i32
  }
  func.func @transform_9(%arg0: i32) -> (i32, i32, i32, i32) {
    %c0_i32 = arith.constant 0 : i32
    %c0_i32_0 = arith.constant 0 : i32
    %c0_i32_1 = arith.constant 0 : i32
    %c0_i32_2 = arith.constant 0 : i32
    %c0_i32_3 = arith.constant 0 : i32
    return %c0_i32, %c0_i32_0, %c0_i32_1, %c0_i32_2 : i32, i32, i32, i32
  }
  func.func @transform_10(%arg0: i32) -> (i32, i32, i32) {
    %c0_i32 = arith.constant 0 : i32
    %c0_i32_0 = arith.constant 0 : i32
    %c0_i32_1 = arith.constant 0 : i32
    %c0_i32_2 = arith.constant 0 : i32
    return %c0_i32, %c0_i32_0, %c0_i32_1 : i32, i32, i32
  }
  func.func @transform_11(%arg0: i32) -> (i32, i32, i32) {
    %c0_i32 = arith.constant 0 : i32
    %c0_i32_0 = arith.constant 0 : i32
    %c0_i32_1 = arith.constant 0 : i32
    %c0_i32_2 = arith.constant 0 : i32
    return %c0_i32, %c0_i32_0, %c0_i32_1 : i32, i32, i32
  }
  func.func @transform_12(%arg0: i32) -> (i32, i32, i32) {
    %c0_i32 = arith.constant 0 : i32
    %c0_i32_0 = arith.constant 0 : i32
    %c0_i32_1 = arith.constant 0 : i32
    %c0_i32_2 = arith.constant 0 : i32
    return %c0_i32, %c0_i32_0, %c0_i32_1 : i32, i32, i32
  }
  func.func @transform_13(%arg0: i32) -> (i32, i32, i32) {
    %c0_i32 = arith.constant 0 : i32
    %c0_i32_0 = arith.constant 0 : i32
    %c0_i32_1 = arith.constant 0 : i32
    %c0_i32_2 = arith.constant 0 : i32
    return %c0_i32, %c0_i32_0, %c0_i32_1 : i32, i32, i32
  }
  func.func @transform_14(%arg0: i32) -> (i32, i32, i32) {
    %c0_i32 = arith.constant 0 : i32
    %c0_i32_0 = arith.constant 0 : i32
    %c0_i32_1 = arith.constant 0 : i32
    %c0_i32_2 = arith.constant 0 : i32
    return %c0_i32, %c0_i32_0, %c0_i32_1 : i32, i32, i32
  }
  func.func @transform_15(%arg0: i32) -> (i32, i32, i32) {
    %c0_i32 = arith.constant 0 : i32
    %c0_i32_0 = arith.constant 0 : i32
    %c0_i32_1 = arith.constant 0 : i32
    %c0_i32_2 = arith.constant 0 : i32
    return %c0_i32, %c0_i32_0, %c0_i32_1 : i32, i32, i32
  }
  func.func @transform_16(%arg0: i32) -> (i32, i32, i32, i32) {
    %c0_i32 = arith.constant 0 : i32
    %c0_i32_0 = arith.constant 0 : i32
    %c0_i32_1 = arith.constant 0 : i32
    %c0_i32_2 = arith.constant 0 : i32
    %c0_i32_3 = arith.constant 0 : i32
    return %c0_i32, %c0_i32_0, %c0_i32_1, %c0_i32_2 : i32, i32, i32, i32
  }
  func.func @transform_17(%arg0: i32) -> (i32, i32, i32, i32) {
    %c0_i32 = arith.constant 0 : i32
    %c0_i32_0 = arith.constant 0 : i32
    %c0_i32_1 = arith.constant 0 : i32
    %c0_i32_2 = arith.constant 0 : i32
    %c0_i32_3 = arith.constant 0 : i32
    return %c0_i32, %c0_i32_0, %c0_i32_1, %c0_i32_2 : i32, i32, i32, i32
  }
  func.func @transform_18(%arg0: i32) -> (i32, i32) {
    %c0_i32 = arith.constant 0 : i32
    %c0_i32_0 = arith.constant 0 : i32
    %c0_i32_1 = arith.constant 0 : i32
    return %c0_i32, %c0_i32_0 : i32, i32
  }
  func.func @transform_19(%arg0: i32) -> (i32, i32) {
    %c0_i32 = arith.constant 0 : i32
    %c0_i32_0 = arith.constant 0 : i32
    %c0_i32_1 = arith.constant 0 : i32
    return %c0_i32, %c0_i32_0 : i32, i32
  }
  func.func @transform_20(%arg0: i32) -> (i32, i32) {
    %c0_i32 = arith.constant 0 : i32
    %c0_i32_0 = arith.constant 0 : i32
    %c0_i32_1 = arith.constant 0 : i32
    return %c0_i32, %c0_i32_0 : i32, i32
  }
}

</mosaic_0001>

<bundles_post_ra>
// kernel: transformer_decoder_forward.1
= control target key start
LH: loop header
LB: loop body
LE: loop exit
PB: predicated region body
PF: predicated region fallthrough
CT: control target
= control target key end

     0   :  { %s13245_s0 = inlined_call_operand.vmem [shape: f32[32,8], index: 0, kind: input, shape index: {}]   ;;  %s13246_s1 = inlined_call_operand.hbm [shape: f32[32,32], index: 1, kind: input, shape index: {}]   ;;  %s13247_s2 = inlined_call_operand.vmem [shape: f32[8,32], index: 2, kind: input, shape index: {}]   ;;  %s13248_s3 = inlined_call_operand.vmem [shape: f32[1,32], index: 3, kind: input, shape index: {}]   ;;  %s13249_s4 = inlined_call_operand.vmem [shape: f32[2,3,32,32], index: 4, kind: input, shape index: {}]   ;;  %s13250_s5 = inlined_call_operand.vmem [shape: f32[2,3,1,32], index: 5, kind: input, shape index: {}]   ;;  %s13251_s6 = inlined_call_operand.vmem [shape: f32[2,32,32], index: 6, kind: input, shape index: {}]   ;;  %s13252_s7 = inlined_call_operand.vmem [shape: f32[2,1,32], index: 7, kind: input, shape index: {}]   ;;  %s13253_s8 = inlined_call_operand.hbm [shape: f32[2,3,32,32], index: 8, kind: input, shape index: {}]   ;;  %s13254_s9 = inlined_call_operand.hbm [shape: f32[2,3,1,32], index: 9, kind: input, shape index: {}]   ;;  %s13255_s10 = inlined_call_operand.vmem [shape: f32[2,32,32], index: 10, kind: input, shape index: {}]   ;;  %s13256_s11 = inlined_call_operand.vmem [shape: f32[2,1,32], index: 11, kind: input, shape index: {}]   ;;  %s13257_s12 = inlined_call_operand.hbm [shape: f32[2,32,64], index: 12, kind: input, shape index: {}]   ;;  %s13258_s13 = inlined_call_operand.hbm [shape: f32[2,1,64], index: 13, kind: input, shape index: {}]   ;;  %s13259_s14 = inlined_call_operand.vmem [shape: f32[2,64,32], index: 14, kind: input, shape index: {}]   ;;  %s13260_s15 = inlined_call_operand.hbm [shape: f32[2,1,32], index: 15, kind: input, shape index: {}]   ;;  %s13261_s16 = inlined_call_operand.hbm [shape: f32[2,3,1,32], index: 16, kind: input, shape index: {}]   ;;  %s13262_s17 = inlined_call_operand.hbm [shape: f32[2,3,1,32], index: 17, kind: input, shape index: {}]   ;;  %s13263_s18 = inlined_call_operand.vmem [shape: f32[32,8], index: 18, kind: input, shape index: {}]   ;;  %s13264_s19 = inlined_call_operand.hbm [shape: f32[1,8], index: 19, kind: input, shape index: {}]   ;;  %s13265_s20 = inlined_call_operand.vmem [shape: f32[32,8], index: 20, kind: output, shape index: {}]  }
   0x1   :  { %13270 = sst [smem:[#allocation21_spill]] %s13245_s0 }
   0x2   :  { %13271 = sst [smem:[#allocation22_spill]] %s13246_s1 }
   0x3   :  { %13272 = sst [smem:[#allocation23_spill]] %s13247_s2 }
   0x4   :  { %13273 = sst [smem:[#allocation24_spill]] %s13248_s3 }
   0x5   :  { %13274 = sst [smem:[#allocation25_spill]] %s13249_s4 }
   0x6   :  { %25 = vsyncpa [#allocation3], 0 }
   0x7   :  { %26 = vsyncpa [#allocation5], 0 }
   0x8   :  { %27 = vsyncpa [#allocation8], 0 }
   0x9   :  { %28 = vsyncpa [#allocation11], 0 }
   0xa   :  { %29 = vsyncpa [#allocation14], 0  ;;  %s11525_s1 = smov [#allocation4]   ;;  %s11526_s23 = smov [#allocation7]  }
   0xb   :  { %s61_s22 = sshll.u32 %s11525_s1, 4  ;;  %s89_s24 = sshll.u32 %s11526_s23, 4  ;;  %s62_s22 = int_to_ptr.vmem [resolvable:$true] %s61_s22  ;;  %s11647_s24 = int_to_ptr.vmem [resolvable:$true] %s89_s24 }
   0xc   :  { %s11317_s3 = scalar_lea.hbm %s13253_s8, 3072 }
   0xd   :  { %p11318_p0 = scmp.ne.s32.totalorder %s13253_s8, %s11317_s3  ;;  %p11321_p1 = scmp.lt.u32.totalorder %s11317_s3, %s13253_s8 }
   0xf   :  { %p11323_p2 = pnand %p11321_p1, %p11318_p0 }
  0x11   :  { %11326 = shalt.err (!%p11323_p2)
}
  0x12   :  { %s11327_s29 = scalar_lea.vmem %s62_s22, 3072  ;;  %p11332_p4 = scmp.lt.s32.totalorder %s62_s22, %s62_s22 }
  0x13   :  { %p11328_p3 = scmp.ne.s32.totalorder %s62_s22, %s11327_s29  ;;  %p11333_p5 = scmp.lt.s32.totalorder %s11327_s29, %s11327_s29 }
  0x15   :  { %p11334_p6 = por %p11333_p5, %p11332_p4 }
  0x17   :  { %p11335_p7 = pnand %p11334_p6, %p11328_p3 }
  0x19   :  { %11338 = shalt.err (!%p11335_p7)
}
  0x1a   :  { %s13269_s30 = smov 128   ;;  %s11528_s0 = smov 8  }
  0x1b   :  { %67 = dma.hbm_to_vmem [thread:$0]  %s13253_s8, 3072, %s62_s22, [#allocation5], %s13269_s30, %s13269_s30, %s11528_s0  }
  0x1c   :  { %s11339_s25 = scalar_lea.hbm %s13257_s12, 1024 }
  0x1d   :  { %p11340_p8 = scmp.ne.s32.totalorder %s13257_s12, %s11339_s25  ;;  %p11343_p9 = scmp.lt.u32.totalorder %s11339_s25, %s13257_s12 }
  0x1f   :  { %p11345_p10 = pnand %p11343_p9, %p11340_p8 }
  0x21   :  { %11348 = shalt.err (!%p11345_p10)
}
  0x22   :  { %s11349_s4 = scalar_lea.vmem %s11647_s24, 1024  ;;  %p11354_p12 = scmp.lt.s32.totalorder %s11647_s24, %s11647_s24 }
  0x23   :  { %p11350_p11 = scmp.ne.s32.totalorder %s11647_s24, %s11349_s4  ;;  %p11355_p13 = scmp.lt.s32.totalorder %s11349_s4, %s11349_s4 }
  0x25   :  { %p11356_p0 = por %p11355_p13, %p11354_p12 }
  0x27   :  { %p11357_p1 = pnand %p11356_p0, %p11350_p11 }
  0x29   :  { %11360 = shalt.err (!%p11357_p1)
}
  0x2a   :  { %95 = dma.hbm_to_vmem [thread:$0]  %s13257_s12, 1024, %s11647_s24, [#allocation8], %s13269_s30, %s13269_s30, %s11528_s0  }
  0x2b   :  { %s11529_s29 = smov [#allocation10]   ;;  %s11530_s1 = smov [#allocation13]  }
  0x2c   :  { %s115_s21 = sshll.u32 %s11529_s29, 4  ;;  %s139_s23 = sshll.u32 %s11530_s1, 4  ;;  %s116_s21 = int_to_ptr.vmem [resolvable:$true] %s115_s21  ;;  %s11684_s23 = int_to_ptr.vmem [resolvable:$true] %s139_s23 }
  0x2d   :  { %s11361_s3 = scalar_lea.hbm %s13260_s15, 32 }
  0x2e   :  { %p11362_p2 = scmp.ne.s32.totalorder %s13260_s15, %s11361_s3  ;;  %p11365_p3 = scmp.lt.u32.totalorder %s11361_s3, %s13260_s15 }
  0x30   :  { %p11367_p4 = pnand %p11365_p3, %p11362_p2 }
  0x32   :  { %11370 = shalt.err (!%p11367_p4)
}
  0x33   :  { %s11371_s12 = scalar_lea.vmem %s116_s21, 32  ;;  %p11376_p6 = scmp.lt.s32.totalorder %s116_s21, %s116_s21 }
  0x34   :  { %p11372_p5 = scmp.ne.s32.totalorder %s116_s21, %s11371_s12  ;;  %p11377_p7 = scmp.lt.s32.totalorder %s11371_s12, %s11371_s12 }
  0x36   :  { %p11378_p8 = por %p11377_p7, %p11376_p6 }
  0x38   :  { %p11379_p9 = pnand %p11378_p8, %p11372_p5 }
  0x3a   :  { %11382 = shalt.err (!%p11379_p9)
}
  0x3b   :  { %s11531_s24 = smov 16   ;;  %s11532_s8 = smov 1  }
  0x3c   :  { %121 = dma.hbm_to_vmem [thread:$0]  %s13260_s15, 32, %s116_s21, [#allocation11], %s11531_s24, %s11531_s24, %s11532_s8  }
  0x3d   :  { %s11383_s25 = scalar_lea.hbm %s13262_s17, 96 }
  0x3e   :  { %p11384_p10 = scmp.ne.s32.totalorder %s13262_s17, %s11383_s25  ;;  %p11387_p11 = scmp.lt.u32.totalorder %s11383_s25, %s13262_s17 }
  0x40   :  { %p11389_p12 = pnand %p11387_p11, %p11384_p10 }
  0x42   :  { %11392 = shalt.err (!%p11389_p12)
}
  0x43   :  { %s11393_s4 = scalar_lea.vmem %s11684_s23, 96  ;;  %p11398_p0 = scmp.lt.s32.totalorder %s11684_s23, %s11684_s23 }
  0x44   :  { %p11394_p13 = scmp.ne.s32.totalorder %s11684_s23, %s11393_s4  ;;  %p11399_p1 = scmp.lt.s32.totalorder %s11393_s4, %s11393_s4 }
  0x46   :  { %p11400_p2 = por %p11399_p1, %p11398_p0 }
  0x48   :  { %p11401_p3 = pnand %p11400_p2, %p11394_p13 }
  0x4a   :  { %11404 = shalt.err (!%p11401_p3)
}
  0x4b   :  { %145 = dma.hbm_to_vmem [thread:$0]  %s13262_s17, 96, %s11684_s23, [#allocation14], %s11531_s24, %s11531_s24, %s11532_s8  }
  0x4c   :  { %s11533_s12 = smov [#allocation2]   ;;  %s11534_s29 = smov [#allocation6]  }
  0x4d   :  { %s37_s22 = sshll.u32 %s11533_s12, 4  ;;  %s73_s1 = sshll.u32 %s11534_s29, 4  ;;  %s38_s22 = int_to_ptr.vmem [resolvable:$true] %s37_s22  ;;  %s11721_s1 = int_to_ptr.vmem [resolvable:$true] %s73_s1 }
  0x4e   :  { %s13275_s3 = sld [smem:[#allocation22_spill]] }
  0x54   :  { %s11405_s26 = scalar_lea.hbm %s13275_s3, 512 }
  0x55   :  { %p11406_p4 = scmp.ne.s32.totalorder %s13275_s3, %s11405_s26  ;;  %p11409_p5 = scmp.lt.u32.totalorder %s11405_s26, %s13275_s3 }
  0x57   :  { %p11411_p6 = pnand %p11409_p5, %p11406_p4 }
  0x59   :  { %11414 = shalt.err (!%p11411_p6)
}
  0x5a   :  { %s11415_s17 = scalar_lea.vmem %s38_s22, 512  ;;  %p11420_p8 = scmp.lt.s32.totalorder %s38_s22, %s38_s22 }
  0x5b   :  { %p11416_p7 = scmp.ne.s32.totalorder %s38_s22, %s11415_s17  ;;  %p11421_p9 = scmp.lt.s32.totalorder %s11415_s17, %s11415_s17 }
  0x5d   :  { %p11422_p10 = por %p11421_p9, %p11420_p8 }
  0x5f   :  { %p11423_p11 = pnand %p11422_p10, %p11416_p7 }
  0x61   :  { %11426 = shalt.err (!%p11423_p11)
}
  0x62   :  { %s13276_s23 = smov 128   ;;  %s11427_s30 = scalar_lea.hbm %s13254_s9, 96 }
  0x63   :  { %43 = dma.hbm_to_vmem [thread:$0]  %s13275_s3, 512, %s38_s22, [#allocation3], %s13276_s23, %s13276_s23, %s11528_s0  }
  0x64   :  { %p11428_p12 = scmp.ne.s32.totalorder %s13254_s9, %s11427_s30  ;;  %p11431_p13 = scmp.lt.u32.totalorder %s11427_s30, %s13254_s9 }
  0x66   :  { %p11433_p0 = pnand %p11431_p13, %p11428_p12 }
  0x68   :  { %11436 = shalt.err (!%p11433_p0)
}
  0x69   :  { %s11437_s28 = scalar_lea.vmem %s11721_s1, 96  ;;  %p11442_p2 = scmp.lt.s32.totalorder %s11721_s1, %s11721_s1 }
  0x6a   :  { %p11438_p1 = scmp.ne.s32.totalorder %s11721_s1, %s11437_s28  ;;  %p11443_p3 = scmp.lt.s32.totalorder %s11437_s28, %s11437_s28 }
  0x6c   :  { %p11444_p4 = por %p11443_p3, %p11442_p2 }
  0x6e   :  { %p11445_p5 = pnand %p11444_p4, %p11438_p1 }
  0x70   :  { %11448 = shalt.err (!%p11445_p5)
}
  0x71   :  { %79 = dma.hbm_to_vmem [thread:$0]  %s13254_s9, 96, %s11721_s1, [#allocation5], %s11531_s24, %s11531_s24, %s11532_s8  }
  0x72   :  { %s11535_s3 = smov [#allocation9]   ;;  %s11536_s17 = smov [#allocation12]  }
  0x73   :  { %s101_s4 = sshll.u32 %s11535_s3, 4  ;;  %s127_s23 = sshll.u32 %s11536_s17, 4  ;;  %s102_s4 = int_to_ptr.vmem [resolvable:$true] %s101_s4  ;;  %s11758_s23 = int_to_ptr.vmem [resolvable:$true] %s127_s23 }
  0x74   :  { %s11449_s12 = scalar_lea.hbm %s13258_s13, 32 }
  0x75   :  { %p11450_p6 = scmp.ne.s32.totalorder %s13258_s13, %s11449_s12  ;;  %p11453_p7 = scmp.lt.u32.totalorder %s11449_s12, %s13258_s13 }
  0x77   :  { %p11455_p8 = pnand %p11453_p7, %p11450_p6 }
  0x79   :  { %11458 = shalt.err (!%p11455_p8)
}
  0x7a   :  { %s11459_s9 = scalar_lea.vmem %s102_s4, 32  ;;  %p11464_p10 = scmp.lt.s32.totalorder %s102_s4, %s102_s4 }
  0x7b   :  { %p11460_p9 = scmp.ne.s32.totalorder %s102_s4, %s11459_s9  ;;  %p11465_p11 = scmp.lt.s32.totalorder %s11459_s9, %s11459_s9 }
  0x7d   :  { %p11466_p12 = por %p11465_p11, %p11464_p10 }
  0x7f   :  { %p11467_p13 = pnand %p11466_p12, %p11460_p9 }
  0x81   :  { %11470 = shalt.err (!%p11467_p13)
}
  0x82   :  { %107 = dma.hbm_to_vmem [thread:$0]  %s13258_s13, 32, %s102_s4, [#allocation8], %s11531_s24, %s11531_s24, %s11532_s8  }
  0x83   :  { %s11471_s0 = scalar_lea.hbm %s13261_s16, 96 }
  0x84   :  { %p11472_p0 = scmp.ne.s32.totalorder %s13261_s16, %s11471_s0  ;;  %p11475_p1 = scmp.lt.u32.totalorder %s11471_s0, %s13261_s16 }
  0x86   :  { %p11477_p2 = pnand %p11475_p1, %p11472_p0 }
  0x88   :  { %11480 = shalt.err (!%p11477_p2)
}
  0x89   :  { %s11481_s21 = scalar_lea.vmem %s11758_s23, 96  ;;  %p11486_p4 = scmp.lt.s32.totalorder %s11758_s23, %s11758_s23 }
  0x8a   :  { %p11482_p3 = scmp.ne.s32.totalorder %s11758_s23, %s11481_s21  ;;  %p11487_p5 = scmp.lt.s32.totalorder %s11481_s21, %s11481_s21 }
  0x8c   :  { %p11488_p6 = por %p11487_p5, %p11486_p4 }
  0x8e   :  { %p11489_p7 = pnand %p11488_p6, %p11482_p3 }
  0x90   :  { %11492 = shalt.err (!%p11489_p7)
}
  0x91   :  { %133 = dma.hbm_to_vmem [thread:$0]  %s13261_s16, 96, %s11758_s23, [#allocation11], %s11531_s24, %s11531_s24, %s11532_s8  }
  0x92   :  { %s11537_s12 = smov [#allocation15]   ;;  %s11493_s25 = scalar_lea.hbm %s13264_s19, 16 }
  0x93   :  { %s154_s29 = sshll.u32 %s11537_s12, 4  ;;  %p11494_p8 = scmp.ne.s32.totalorder %s13264_s19, %s11493_s25  ;;  %s155_s29 = int_to_ptr.vmem [resolvable:$true] %s154_s29 }
  0x94   :  { %p11497_p9 = scmp.lt.u32.totalorder %s11493_s25, %s13264_s19 }
  0x96   :  { %p11499_p10 = pnand %p11497_p9, %p11494_p8 }
  0x98   :  { %11502 = shalt.err (!%p11499_p10)
}
  0x99   :  { %s11503_s28 = scalar_lea.vmem %s155_s29, 16  ;;  %s11507_s16 = scalar_lea.vmem %s155_s29, 32 }
  0x9a   :  { %p11504_p11 = scmp.ne.s32.totalorder %s155_s29, %s11503_s28  ;;  %p11508_p12 = scmp.lt.s32.totalorder %s155_s29, %s155_s29 }
  0x9b   :  { %p11509_p13 = scmp.lt.s32.totalorder %s11507_s16, %s11503_s28 }
  0x9d   :  { %p11510_p0 = por %p11509_p13, %p11508_p12 }
  0x9f   :  { %p11511_p1 = pnand %p11510_p0, %p11504_p11 }
  0xa1   :  { %11514 = shalt.err (!%p11511_p1)
}
  0xa2   :  { %157 = dma.hbm_to_vmem [thread:$0]  %s13264_s19, 16, %s155_s29, [#allocation14]  }
  0xa3   :  { %11515 = dma.done.wait [#allocation3], 512  }
  0xa4   :  { %11516 = vsyncadd [#allocation3], 4294966784 }
  0xa5   :  { %11517 = dma.done.wait [#allocation5], 3168  }
  0xa6   :  { %11518 = vsyncadd [#allocation5], 4294964128 }
  0xa7   :  { %11519 = dma.done.wait [#allocation8], 1056  }
  0xa8   :  { %11520 = vsyncadd [#allocation8], 4294966240 }
  0xa9   :  { %11521 = dma.done.wait [#allocation11], 128  }
  0xaa   :  { %11522 = vsyncadd [#allocation11], 4294967168 }
  0xab   :  { %11523 = dma.done.wait [#allocation14], 112  }
  0xac   :  { %11524 = vsyncadd [#allocation14], 4294967184  ;;  %vm212_vm0 = vcmask 64512   ;;  %s13277_s22 = sld [smem:[#allocation23_spill]]  ;;  %s13278_s15 = sld [smem:[#allocation21_spill]]  ;;  %vm325_vm1 = vcmask 261120  }
  0xad   :  { %s13279_s30 = sld [smem:[#allocation25_spill]]  ;;  %s13280_s2 = sld [smem:[#allocation24_spill]]  ;;  %v8519_v32 = vld [vmem:[%s13250_s5 + $0x1] ss:$0 sm:$0xff]  ;;  %v8509_v33 = vld [vmem:[%s13250_s5] ss:$0 sm:$0xff]  ;;  %vm11907_vm2 = vmpackc.low %vm212_vm0, %vm212_vm0 }
  0xae   :  { %v8529_v50 = vld [vmem:[%s13250_s5 + $0x2] ss:$0 sm:$0xff]  ;;  %s11539_s0 = smov 120   ;;  %s11541_s3 = smov 104   ;;  %vm4171_vm7 = vcmask 523264  }
  0xb2   :  { %v204_v0 = vld [vmem:[%s13277_s22] sm:$0xff]  ;;  %v201_v2 = vld [vmem:[%s13278_s15 + $0x8] sm:$0xff]  ;;  %v202_v3 = vld [vmem:[%s13278_s15 + $0x10] sm:$0xff]  ;;  %s11540_s22 = smov 112  }
  0xb3   :  { %v200_v1 = vld [vmem:[%s13278_s15] sm:$0xff]  ;;  %9394 = vmatprep.subr.mxu0 %v204_v0  ;;  %v315_v5 = vld [vmem:[%s13279_s30 + $0x8] sm:$0xff]  ;;  %v203_v10 = vld [vmem:[%s13278_s15 + $0x18] sm:$0xff] }
  0xb4   :  { %9396 = vmatprep.mubr.msk.f32.mxu0 %vm212_vm0, %v200_v1  ;;  %v314_v4 = vld [vmem:[%s13279_s30] sm:$0xff]  ;;  %9395 = vmatpush3.msra.mxu0 %v204_v0  ;;  %v8515_v7 = vld [vmem:[%s13279_s30 + $0x28] sm:$0xff]  ;;  %v316_v11 = vld [vmem:[%s13279_s30 + $0x10] sm:$0xff] }
  0xb5   :  { %v8514_v6 = vld [vmem:[%s13279_s30 + $0x20] sm:$0xff]  ;;  %9397 = vmatmul.mubr.msk.f32.vlgmr.msra.gmra.mrb[0].mxu0 %vm212_vm0, %v201_v2  ;;  %v10232_v8 = vpack.c.bf16 %v315_v5, %v314_v4  ;;  %v317_v12 = vld [vmem:[%s13279_s30 + $0x18] sm:$0xff]  ;;  %v8516_v13 = vld [vmem:[%s13279_s30 + $0x30] sm:$0xff]  ;;  %v185_v4 = vlaneseq }
  0xb6   :  { %v10240_v9 = vpack.c.bf16 %v8515_v7, %v8514_v6  ;;  %9399 = vmatprep.mubr.msk.f32.mxu0 %vm212_vm0, %v202_v3  ;;  %v10236_v14 = vpack.c.bf16 %v317_v12, %v316_v11  ;;  %v8517_v15 = vld [vmem:[%s13279_s30 + $0x38] sm:$0xff]  ;;  %v8524_v17 = vld [vmem:[%s13279_s30 + $0x40] sm:$0xff]  ;;  %v8525_v18 = vld [vmem:[%s13279_s30 + $0x48] sm:$0xff] }
  0xb7   :  { %10233 = vmatprep.subr.bf16.mxu1 %v10232_v8  ;;  %v10244_v16 = vpack.c.bf16 %v8517_v15, %v8516_v13  ;;  %v10248_v19 = vpack.c.bf16 %v8525_v18, %v8524_v17  ;;  %v8504_v20 = vld [vmem:[%s13280_s2] ss:$0 sm:$0xff]  ;;  %v8526_v22 = vld [vmem:[%s13279_s30 + $0x50] sm:$0xff]  ;;  %v8527_v23 = vld [vmem:[%s13279_s30 + $0x58] sm:$0xff]  ;;  %v186_v5 = vshrl.u32 %v185_v4, 7  ;;  %v191_v6 = vand.u32 127, %v185_v4 }
  0xb8   :  { %10241 = vmatprep.subr.bf16.mxu0 %v10240_v9  ;;  %10235 = vmatpush3.bf16.msra.mxu1 %v10232_v8  ;;  %v10252_v27 = vpack.c.bf16 %v8527_v23, %v8526_v22 }
  0xb9   :  { %10243 = vmatpush3.bf16.msra.mxu0 %v10240_v9  ;;  %10237 = vmatprep.subr.bf16.mxu1 %v10236_v14  ;;  %v187_v7 = vadd.s32 8, %v186_v5  ;;  %vm192_vm3 = vcmp.gt.s32.totalorder %v191_v6, %v186_v5  ;;  %v188_v8 = vadd.s32 16, %v186_v5  ;;  %v189_v9 = vadd.s32 24, %v186_v5 }
  0xba   :  { %9400 = vmatmul.mubr.msk.f32.gmra.mrb[2].mxu0 %vm212_vm0, %v203_v10  ;;  %10245 = vmatprep.subr.bf16.mxu0 %v10244_v16  ;;  %v11538_v10 = vmov 0.0  }
  0xbb   :  { %vm193_vm4 = vcmp.gt.s32.totalorder %v191_v6, %v187_v7  ;;  %v11944_v11 = vsel %vm192_vm3, -1e+30, %v11538_v10  ;;  %vm194_vm5 = vcmp.gt.s32.totalorder %v191_v6, %v188_v8  ;;  %vm195_vm6 = vcmp.gt.s32.totalorder %v191_v6, %v189_v9 }
  0xbc   :  { %10239 = vmatpush3.bf16.msra.mxu1 %v10236_v14  ;;  %v11946_v13 = vsel %vm193_vm4, -1e+30, %v11538_v10 }
  0xbd   :  { %10247 = vmatpush3.bf16.msra.mxu0 %v10244_v16  ;;  %10249 = vmatprep.subr.bf16.mxu1 %v10248_v19  ;;  %v11949_v16 = vsel %vm194_vm5, -1e+30, %v11538_v10 }
 0x188   :  { %v9398_v21 = vpop.f32.mrb[0].mxu0 }
 0x189   :  { %v291_v24 = vpop.f32.mrb[1].mxu0  ;;  %v11867_v26 = vadd.f32 %v9398_v21, %v8504_v20 }
 0x18a   :  { %v11865_v25 = vadd.f32 %v8504_v20, %v291_v24 }
 0x18c   :  { %9410 = vmatprep.mubr.msk.f32.mxu1 %vm325_vm1, %v11865_v25  ;;  %9424 = vmatprep.mubr.msk.f32.mxu0 %vm325_vm1, %v11865_v25 }
 0x18d   :  { %v9401_v28 = vpop.f32.mrb[2].mxu0  ;;  %9411 = vmatmul.mubr.msk.f32.vlgmr.msra.gmra.mrb[0].mxu1 %vm325_vm1, %v11867_v26  ;;  %9425 = vmatmul.mubr.msk.f32.vlgmr.msra.gmra.mrb[4].mxu0 %vm325_vm1, %v11867_v26 }
 0x18e   :  { %v11873_v29 = vadd.f32 %v9401_v28, %v8504_v20  ;;  %v301_v30 = vpop.f32.mrb[3].mxu0  ;;  %10251 = vmatpush3.bf16.msra.mxu1 %v10248_v19 }
 0x18f   :  { %v11879_v31 = vadd.f32 %v8504_v20, %v301_v30  ;;  %10253 = vmatprep.subr.bf16.mxu1 %v10252_v27  ;;  %v11953_v20 = vsel %vm195_vm6, -1e+30, %v11538_v10 }
 0x191   :  { %9413 = vmatprep.mubr.msk.f32.mxu1 %vm325_vm1, %v11879_v31  ;;  %9427 = vmatprep.mubr.msk.f32.mxu0 %vm325_vm1, %v11879_v31 }
 0x192   :  { %9414 = vmatmul.mubr.msk.f32.gmra.mrb[2].mxu1 %vm325_vm1, %v11873_v29  ;;  %9428 = vmatmul.mubr.msk.f32.gmra.mrb[6].mxu0 %vm325_vm1, %v11873_v29 }
 0x193   :  { %10255 = vmatpush3.bf16.msra.mxu1 %v10252_v27  ;;  %9438 = vmatprep.mubr.msk.f32.mxu1 %vm325_vm1, %v11865_v25 }
 0x196   :  { %9439 = vmatmul.mubr.msk.f32.vlgmr.msra.gmra.mrb[4].mxu1 %vm325_vm1, %v11867_v26 }
 0x197   :  { %9441 = vmatprep.mubr.msk.f32.mxu1 %vm325_vm1, %v11879_v31 }
 0x19a   :  { %9442 = vmatmul.mubr.msk.f32.gmra.mrb[6].mxu1 %vm325_vm1, %v11873_v29 }
 0x260   :  { %v9412_v34 = vpop.f32.mrb[0].mxu1  ;;  %v9426_v35 = vpop.f32.mrb[4].mxu0 }
 0x261   :  { %v508_v36 = vadd.f32 %v9426_v35, %v8519_v32  ;;  %v404_v37 = vpop.f32.mrb[1].mxu1  ;;  %v502_v38 = vpop.f32.mrb[5].mxu0  ;;  %v11932_v1 = vadd.f32 %v9412_v34, %v8509_v33 }
 0x262   :  { %v11903_v39 = vadd.f32 %v8509_v33, %v404_v37  ;;  %v503_v40 = vadd.f32 %v8519_v32, %v502_v38 }
 0x264   :  { %9452 = vmatprep.mubr.msk.f32.mxu0 %vm212_vm0, %v11903_v39  ;;  %v10256_v44 = vpack.c.bf16 %v508_v36, %v503_v40  ;;  %v11913_v45 = vpack.i.bf16 %v508_v36, %v503_v40 }
 0x265   :  { %v9415_v42 = vpop.f32.mrb[2].mxu1  ;;  %v9429_v43 = vpop.f32.mrb[6].mxu0 }
 0x266   :  { %v518_v46 = vadd.f32 %v9429_v43, %v8519_v32  ;;  %v414_v47 = vpop.f32.mrb[3].mxu1  ;;  %v512_v48 = vpop.f32.mrb[7].mxu0  ;;  %10258 = vmatprep.subr.msk.bf16.mxu0 %vm11907_vm2, %v10256_v44  ;;  %v11940_v3 = vadd.f32 %v9415_v42, %v8509_v33 }
 0x267   :  { %v513_v49 = vadd.f32 %v8519_v32, %v512_v48  ;;  %10261 = vmatpush3.bf16.xpose.msk.msra.mxu0 %vm11907_vm2, %v10256_v44  ;;  %v11934_v2 = vadd.f32 %v8509_v33, %v414_v47 }
 0x269   :  { %v9440_v51 = vpop.f32.mrb[4].mxu1  ;;  %v10262_v52 = vpack.c.bf16 %v518_v46, %v513_v49  ;;  %v11922_v53 = vpack.i.bf16 %v518_v46, %v513_v49 }
 0x26a   :  { %v606_v54 = vadd.f32 %v9440_v51, %v8529_v50  ;;  %v600_v55 = vpop.f32.mrb[5].mxu1 }
 0x26b   :  { %v601_v56 = vadd.f32 %v8529_v50, %v600_v55  ;;  %10264 = vmatprep.subr.msk.bf16.mxu0 %vm11907_vm2, %v10262_v52 }
 0x26d   :  { %v9443_v57 = vpop.f32.mrb[6].mxu1  ;;  %v10268_v58 = vpack.c.bf16 %v606_v54, %v601_v56  ;;  %v11926_v59 = vpack.i.bf16 %v606_v54, %v601_v56 }
 0x26e   :  { %v616_v60 = vadd.f32 %v9443_v57, %v8529_v50  ;;  %v610_v61 = vpop.f32.mrb[7].mxu1 }
 0x26f   :  { %v611_v62 = vadd.f32 %v8529_v50, %v610_v61  ;;  %10269 = vmatprep.subr.bf16.mxu1 %v10268_v58  ;;  %10267 = vmatpush3.bf16.xpose.msk.msra.mxu0 %vm11907_vm2, %v10262_v52 }
 0x270   :  { %10271 = vmatpush3.bf16.msra.mxu1 %v10268_v58 }
 0x271   :  { %v10272_v63 = vpack.c.bf16 %v616_v60, %v611_v62  ;;  %v11930_v0 = vpack.i.bf16 %v616_v60, %v611_v62 }
 0x273   :  { %10273 = vmatprep.subr.bf16.mxu1 %v10272_v63 }
 0x274   :  { %10275 = vmatpush3.bf16.msra.mxu1 %v10272_v63 }
 0x276   :  { %9453 = vmatmul.mubr.msk.f32.vlgmr.msra.gmra.mrb[8].mxu0 %vm212_vm0, %v11932_v1 }
 0x277   :  { %9455 = vmatprep.mubr.msk.f32.mxu0 %vm212_vm0, %v11934_v2 }
 0x27a   :  { %9456 = vmatmul.mubr.msk.f32.gmra.mrb[10].mxu0 %vm212_vm0, %v11940_v3 }
 0x349   :  { %v9454_v12 = vpop.f32.mrb[8].mxu0 }
 0x34a   :  { %v714_v14 = vpop.f32.mrb[9].mxu0  ;;  %v720_v17 = vadd.f32 %v9454_v12, %v11946_v13 }
 0x34b   :  { %v715_v15 = vadd.f32 %v714_v14, %v11944_v11 }
 0x34c   :  { %v736_v27 = vsel %vm325_vm1, %v720_v17, -inf }
 0x34d   :  { %v9457_v18 = vpop.f32.mrb[10].mxu0  ;;  %v733_v19 = vsel %vm325_vm1, %v715_v15, -inf }
 0x34e   :  { %v724_v21 = vpop.f32.mrb[11].mxu0  ;;  %734 = vmax.xlane.f32.xlu0 %v733_v19  ;;  %v730_v23 = vadd.f32 %v9457_v18, %v11953_v20 }
 0x34f   :  { %v725_v22 = vadd.f32 %v724_v21, %v11949_v16 }
 0x350   :  { %v742_v28 = vsel %vm325_vm1, %v730_v23, -inf }
 0x351   :  { %v739_v24 = vsel %vm325_vm1, %v725_v22, -inf }
 0x352   :  { %740 = vmax.xlane.f32.xlu1 %v739_v24  ;;  %737 = vmax.xlane.f32.xlu0 %v736_v27 }
 0x356   :  { %743 = vmax.xlane.f32.xlu1 %v742_v28 }
 0x3db   :  { %v735_v30 = vpop.xlane.xlu0 %734 }
 0x3dc   :  { %v745_v32 = vsub.f32 %v715_v15, %v735_v30 }
 0x3de   :  { %v749_v33 = vmul.f32 1.442695, %v745_v32 }
 0x3df   :  { %v741_v34 = vpop.xlane.xlu1 %740  ;;  %v738_v35 = vpop.xlane.xlu0 %737 }
 0x3e0   :  { %11009 = vpow2.f32 %v749_v33  ;;  %v747_v36 = vsub.f32 %v725_v22, %v741_v34  ;;  %v746_v37 = vsub.f32 %v720_v17, %v738_v35 }
 0x3e2   :  { %v753_v38 = vmul.f32 1.442695, %v747_v36  ;;  %v751_v40 = vmul.f32 1.442695, %v746_v37 }
 0x3e3   :  { %v744_v42 = vpop.xlane.xlu1 %743 }
 0x3e4   :  { %11011 = vpow2.f32 %v753_v38  ;;  %v748_v43 = vsub.f32 %v730_v23, %v744_v42 }
 0x3e5   :  { %11013 = vpow2.f32 %v751_v40 }
 0x3e6   :  { %v755_v44 = vmul.f32 1.442695, %v748_v43 }
 0x3e8   :  { %11015 = vpow2.f32 %v755_v44 }
 0x3ea   :  { %v11010_v46 = vpop.eup %11009 }
 0x3eb   :  { %v757_v47 = vsel %vm325_vm1, %v11010_v46, 0.0 }
 0x3ec   :  { %758 = vadd.xlane.f32.xlu0 %v757_v47 }
 0x3ee   :  { %v11012_v48 = vpop.eup %11011 }
 0x3ef   :  { %v11014_v49 = vpop.eup %11013  ;;  %v763_v50 = vsel %vm325_vm1, %v11012_v48, 0.0 }
 0x3f0   :  { %764 = vadd.xlane.f32.xlu0 %v763_v50  ;;  %v760_v51 = vsel %vm325_vm1, %v11014_v49, 0.0 }
 0x3f1   :  { %761 = vadd.xlane.f32.xlu1 %v760_v51 }
 0x3f2   :  { %v11016_v52 = vpop.eup %11015 }
 0x3f3   :  { %v766_v54 = vsel %vm325_vm1, %v11016_v52, 0.0 }
 0x3f5   :  { %767 = vadd.xlane.f32.xlu1 %v766_v54 }
 0x406   :  { %10775 = vrot.lane.b32.xlu1 %v11922_v53, %s11539_s0  ;;  %10770 = vrot.lane.b32.xlu0 %v11913_v45, %s11539_s0 }
 0x40a   :  { %874 = vrot.lane.b32.xlu1 %v11903_v39, %s11539_s0  ;;  %878 = vrot.lane.b32.xlu0 %v11934_v2, %s11539_s0 }
 0x40e   :  { %876 = vrot.lane.b32.xlu1 %v11932_v1, %s11539_s0  ;;  %10780 = vrot.lane.b32.xlu0 %v11913_v45, %s11540_s22 }
 0x412   :  { %880 = vrot.lane.b32.xlu1 %v11940_v3, %s11539_s0  ;;  %1342 = vrot.lane.b32.xlu0 %v11903_v39, %s11540_s22 }
 0x416   :  { %10785 = vrot.lane.b32.xlu1 %v11922_v53, %s11540_s22  ;;  %1346 = vrot.lane.b32.xlu0 %v11934_v2, %s11540_s22 }
 0x41a   :  { %1344 = vrot.lane.b32.xlu1 %v11932_v1, %s11540_s22 }
 0x41e   :  { %1348 = vrot.lane.b32.xlu1 %v11940_v3, %s11540_s22 }
 0x479   :  { %v759_v55 = vpop.xlane.xlu0 %758 }
 0x47a   :  { %11017 = vrcp.f32 %v759_v55 }
 0x47d   :  { %v765_v56 = vpop.xlane.xlu0 %764 }
 0x47e   :  { %v762_v57 = vpop.xlane.xlu1 %761  ;;  %11019 = vrcp.f32 %v765_v56 }
 0x47f   :  { %11021 = vrcp.f32 %v762_v57 }
 0x481   :  { %v10771_v58 = vpop.permute.xlu0 %10770 }
 0x482   :  { %v768_v60 = vpop.xlane.xlu1 %767  ;;  %v10773_v61 = vunpack.i.h.bf16 %v10771_v58  ;;  %v10772_v62 = vunpack.i.l.bf16 %v10771_v58 }
 0x483   :  { %11023 = vrcp.f32 %v768_v60 }
 0x484   :  { %v11018_v63 = vpop.eup %11017  ;;  %v10276_v4 = vpack.c.bf16 %v10773_v61, %v10772_v62 }
 0x485   :  { %v773_v5 = vmul.f32 %v11018_v63, %v11010_v46  ;;  %v879_v7 = vpop.permute.xlu0 %878 }
 0x486   :  { %v10776_v6 = vpop.permute.xlu1 %10775  ;;  %10278 = vmatprep.subr.msk.bf16.mxu1 %vm11907_vm2, %v10276_v4 }
 0x487   :  { %9466 = vmatprep.mubr.msk.f32.mxu1 %vm325_vm1, %v773_v5  ;;  %v10778_v9 = vunpack.i.h.bf16 %v10776_v6  ;;  %v10777_v10 = vunpack.i.l.bf16 %v10776_v6 }
 0x488   :  { %v11020_v8 = vpop.eup %11019 }
 0x489   :  { %v11022_v12 = vpop.eup %11021  ;;  %v775_v14 = vmul.f32 %v11020_v8, %v11012_v48  ;;  %v10282_v18 = vpack.c.bf16 %v10778_v9, %v10777_v10  ;;  %v10781_v21 = vpop.permute.xlu0 %10780 }
 0x48a   :  { %v774_v15 = vmul.f32 %v11022_v12, %v11014_v49  ;;  %v875_v17 = vpop.permute.xlu1 %874  ;;  %v10783_v24 = vunpack.i.h.bf16 %v10781_v21  ;;  %v10782_v27 = vunpack.i.l.bf16 %v10781_v21 }
 0x48c   :  { %9467 = vmatmul.mubr.msk.f32.vlgmr.msra.gmra.mrb[8].mxu1 %vm325_vm1, %v774_v15  ;;  %v10296_v30 = vpack.c.bf16 %v10783_v24, %v10782_v27 }
 0x48d   :  { %v11024_v19 = vpop.eup %11023  ;;  %10281 = vmatpush3.bf16.xpose.msk.msra.mxu1 %vm11907_vm2, %v10276_v4  ;;  %9469 = vmatprep.mubr.msk.f32.mxu1 %vm325_vm1, %v775_v14  ;;  %v1343_v36 = vpop.permute.xlu0 %1342 }
 0x48e   :  { %10284 = vmatprep.subr.msk.bf16.mxu1 %vm11907_vm2, %v10282_v18  ;;  %v877_v22 = vpop.permute.xlu1 %876  ;;  %v776_v23 = vmul.f32 %v11024_v19, %v11016_v52 }
 0x490   :  { %9470 = vmatmul.mubr.msk.f32.gmra.mrb[10].mxu1 %vm325_vm1, %v776_v23 }
 0x491   :  { %9480 = vmatprep.mubr.msk.f32.mxu1 %vm212_vm0, %v875_v17  ;;  %v1347_v38 = vpop.permute.xlu0 %1346 }
 0x492   :  { %v881_v28 = vpop.permute.xlu1 %880 }
 0x495   :  { %10287 = vmatpush3.bf16.xpose.msk.msra.mxu1 %vm11907_vm2, %v10282_v18 }
 0x496   :  { %10298 = vmatprep.subr.msk.bf16.mxu1 %vm11907_vm2, %v10296_v30  ;;  %v10786_v32 = vpop.permute.xlu1 %10785 }
 0x497   :  { %v10788_v33 = vunpack.i.h.bf16 %v10786_v32  ;;  %v10787_v34 = vunpack.i.l.bf16 %v10786_v32 }
 0x499   :  { %v10302_v35 = vpack.c.bf16 %v10788_v33, %v10787_v34 }
 0x49a   :  { %v1345_v37 = vpop.permute.xlu1 %1344 }
 0x49c   :  { %9481 = vmatmul.mubr.msk.f32.vlgmr.msra.gmra.mrb[12].mxu1 %vm212_vm0, %v877_v22 }
 0x49d   :  { %9483 = vmatprep.mubr.msk.f32.mxu1 %vm212_vm0, %v879_v7  ;;  %10301 = vmatpush3.bf16.xpose.msk.msra.mxu1 %vm11907_vm2, %v10296_v30 }
 0x49e   :  { %10304 = vmatprep.subr.msk.bf16.mxu1 %vm11907_vm2, %v10302_v35  ;;  %v1349_v40 = vpop.permute.xlu1 %1348 }
 0x4a0   :  { %9484 = vmatmul.mubr.msk.f32.gmra.mrb[14].mxu1 %vm212_vm0, %v881_v28 }
 0x4a1   :  { %9524 = vmatprep.mubr.msk.f32.mxu1 %vm212_vm0, %v1343_v36 }
 0x4a5   :  { %10307 = vmatpush3.bf16.xpose.msk.msra.mxu1 %vm11907_vm2, %v10302_v35 }
 0x4ac   :  { %9525 = vmatmul.mubr.msk.f32.vlgmr.msra.gmra.mrb[16].mxu1 %vm212_vm0, %v1345_v37 }
 0x4ad   :  { %9527 = vmatprep.mubr.msk.f32.mxu1 %vm212_vm0, %v1347_v38 }
 0x4b0   :  { %9528 = vmatmul.mubr.msk.f32.gmra.mrb[18].mxu1 %vm212_vm0, %v1349_v40 }
 0x55f   :  { %v12016_v42 = vpop.f32.mrb[8].mxu1 }
 0x560   :  { %v12018_v43 = vpop.f32.mrb[9].mxu1 }
 0x563   :  { %v12020_v44 = vpop.f32.mrb[10].mxu1 }
 0x564   :  { %v12022_v46 = vpop.f32.mrb[11].mxu1 }
 0x56f   :  { %v9482_v47 = vpop.f32.mrb[12].mxu1 }
 0x570   :  { %v978_v48 = vadd.f32 %v9482_v47, %v11946_v13  ;;  %v972_v49 = vpop.f32.mrb[13].mxu1 }
 0x571   :  { %v973_v50 = vadd.f32 %v972_v49, %v11944_v11 }
 0x572   :  { %v994_v51 = vsel %vm325_vm1, %v978_v48, -inf }
 0x573   :  { %995 = vmax.xlane.f32.xlu1 %v994_v51  ;;  %v9485_v52 = vpop.f32.mrb[14].mxu1  ;;  %v991_v54 = vsel %vm325_vm1, %v973_v50, -inf }
 0x574   :  { %v982_v55 = vpop.f32.mrb[15].mxu1  ;;  %992 = vmax.xlane.f32.xlu0 %v991_v54  ;;  %v988_v57 = vadd.f32 %v9485_v52, %v11953_v20 }
 0x575   :  { %v983_v56 = vadd.f32 %v982_v55, %v11949_v16 }
 0x576   :  { %v1000_v60 = vsel %vm325_vm1, %v988_v57, -inf }
 0x577   :  { %v997_v58 = vsel %vm325_vm1, %v983_v56, -inf }
 0x578   :  { %998 = vmax.xlane.f32.xlu0 %v997_v58 }
 0x57c   :  { %1001 = vmax.xlane.f32.xlu0 %v1000_v60 }
 0x57f   :  { %v9526_v61 = vpop.f32.mrb[16].mxu1 }
 0x580   :  { %v1440_v62 = vpop.f32.mrb[17].mxu1 }
 0x581   :  { %v12059_v33 = vadd.f32 %v1440_v62, %v11944_v11 }
 0x583   :  { %v9529_v63 = vpop.f32.mrb[18].mxu1 }
 0x584   :  { %v1450_v4 = vpop.f32.mrb[19].mxu1 }
 0x600   :  { %v996_v5 = vpop.xlane.xlu1 %995 }
 0x601   :  { %v1004_v6 = vsub.f32 %v978_v48, %v996_v5  ;;  %v993_v7 = vpop.xlane.xlu0 %992 }
 0x602   :  { %v1003_v8 = vsub.f32 %v973_v50, %v993_v7 }
 0x603   :  { %v1009_v9 = vmul.f32 1.442695, %v1004_v6 }
 0x604   :  { %v1007_v10 = vmul.f32 1.442695, %v1003_v8 }
 0x605   :  { %11025 = vpow2.f32 %v1009_v9  ;;  %v999_v12 = vpop.xlane.xlu0 %998 }
 0x606   :  { %11027 = vpow2.f32 %v1007_v10  ;;  %v1005_v14 = vsub.f32 %v983_v56, %v999_v12 }
 0x608   :  { %v1011_v15 = vmul.f32 1.442695, %v1005_v14 }
 0x609   :  { %v1002_v17 = vpop.xlane.xlu0 %1001 }
 0x60a   :  { %11029 = vpow2.f32 %v1011_v15  ;;  %v1006_v18 = vsub.f32 %v988_v57, %v1002_v17 }
 0x60c   :  { %v1013_v19 = vmul.f32 1.442695, %v1006_v18 }
 0x60e   :  { %11031 = vpow2.f32 %v1013_v19 }
 0x60f   :  { %v12032_v21 = vpop.eup %11025 }
 0x610   :  { %v11028_v22 = vpop.eup %11027  ;;  %v1018_v23 = vsel %vm325_vm1, %v12032_v21, 0.0 }
 0x611   :  { %1019 = vadd.xlane.f32.xlu1 %v1018_v23  ;;  %v1015_v24 = vsel %vm325_vm1, %v11028_v22, 0.0 }
 0x612   :  { %1016 = vadd.xlane.f32.xlu0 %v1015_v24 }
 0x614   :  { %v11030_v27 = vpop.eup %11029 }
 0x615   :  { %v1021_v28 = vsel %vm325_vm1, %v11030_v27, 0.0 }
 0x616   :  { %1022 = vadd.xlane.f32.xlu0 %v1021_v28 }
 0x618   :  { %v12038_v30 = vpop.eup %11031 }
 0x619   :  { %v1024_v32 = vsel %vm325_vm1, %v12038_v30, 0.0 }
 0x61a   :  { %1025 = vadd.xlane.f32.xlu1 %v1024_v32 }
 0x62b   :  { %10795 = vrot.lane.b32.xlu1 %v11930_v0, %s11539_s0 }
 0x62c   :  { %10790 = vrot.lane.b32.xlu0 %v11926_v59, %s11539_s0 }
 0x62f   :  { %10800 = vrot.lane.b32.xlu1 %v11913_v45, %s11541_s3  ;;  %v12062_v45 = vadd.f32 %v1450_v4, %v11949_v16 }
 0x630   :  { %1713 = vrot.lane.b32.xlu0 %v11903_v39, %s11541_s3  ;;  %v1459_v39 = vsel %vm325_vm1, %v12059_v33, -inf }
 0x633   :  { %10805 = vrot.lane.b32.xlu1 %v11922_v53, %s11541_s3  ;;  %v12067_v53 = vadd.f32 %v9529_v63, %v11953_v20 }
 0x634   :  { %1717 = vrot.lane.b32.xlu0 %v11934_v2, %s11541_s3  ;;  %v1465_v2 = vsel %vm325_vm1, %v12062_v45, -inf }
 0x637   :  { %1715 = vrot.lane.b32.xlu1 %v11932_v1, %s11541_s3  ;;  %v12072_v1 = vadd.f32 %v9526_v61, %v11946_v13 }
 0x639   :  { %v1462_v34 = vsel %vm325_vm1, %v12072_v1, -inf }
 0x63b   :  { %1719 = vrot.lane.b32.xlu1 %v11940_v3, %s11541_s3  ;;  %v1468_v3 = vsel %vm325_vm1, %v12067_v53, -inf }
 0x653   :  { %1460 = vmax.xlane.f32.xlu0 %v1459_v39 }
 0x657   :  { %1466 = vmax.xlane.f32.xlu0 %v1465_v2 }
 0x65b   :  { %1469 = vmax.xlane.f32.xlu0 %v1468_v3 }
 0x65f   :  { %1463 = vmax.xlane.f32.xlu1 %v1462_v34 }
 0x69e   :  { %v1020_v36 = vpop.xlane.xlu1 %1019 }
 0x69f   :  { %v1017_v35 = vpop.xlane.xlu0 %1016 }
 0x6a0   :  { %11033 = vrcp.f32 %v1017_v35 }
 0x6a1   :  { %11035 = vrcp.f32 %v1020_v36 }
 0x6a3   :  { %v1023_v37 = vpop.xlane.xlu0 %1022 }
 0x6a4   :  { %11037 = vrcp.f32 %v1023_v37 }
 0x6a7   :  { %v1026_v38 = vpop.xlane.xlu1 %1025  ;;  %v10791_v40 = vpop.permute.xlu0 %10790 }
 0x6a8   :  { %v10793_v47 = vunpack.i.h.bf16 %v10791_v40  ;;  %v10792_v48 = vunpack.i.l.bf16 %v10791_v40  ;;  %11039 = vrcp.f32 %v1026_v38  ;;  %v619_v40 = vld [vmem:[%s13251_s6] sm:$0xff] }
 0x6aa   :  { %v11034_v49 = vpop.eup %11033  ;;  %v10288_v50 = vpack.c.bf16 %v10793_v47, %v10792_v48 }
 0x6ab   :  { %v10796_v51 = vpop.permute.xlu1 %10795  ;;  %v1714_v52 = vpop.permute.xlu0 %1713  ;;  %v1031_v54 = vmul.f32 %v11034_v49, %v11028_v22 }
 0x6ac   :  { %v10798_v55 = vunpack.i.h.bf16 %v10796_v51  ;;  %v10797_v56 = vunpack.i.l.bf16 %v10796_v51  ;;  %10289 = vmatprep.subr.bf16.mxu0 %v10288_v50  ;;  %9560 = vmatprep.mubr.msk.f32.mxu1 %vm212_vm0, %v1714_v52  ;;  %v11036_v58 = vpop.eup %11035 }
 0x6ad   :  { %10291 = vmatpush3.bf16.msra.mxu0 %v10288_v50  ;;  %9494 = vmatprep.mubr.msk.f32.mxu0 %vm325_vm1, %v1031_v54  ;;  %v1032_v4 = vmul.f32 %v11036_v58, %v12032_v21 }
 0x6ae   :  { %v10292_v57 = vpack.c.bf16 %v10798_v55, %v10797_v56  ;;  %v11038_v61 = vpop.eup %11037 }
 0x6af   :  { %v10801_v60 = vpop.permute.xlu1 %10800  ;;  %v1033_v8 = vmul.f32 %v11038_v61, %v11030_v27  ;;  %v1718_v17 = vpop.permute.xlu0 %1717 }
 0x6b0   :  { %v10803_v62 = vunpack.i.h.bf16 %v10801_v60  ;;  %v10802_v63 = vunpack.i.l.bf16 %v10801_v60  ;;  %10293 = vmatprep.subr.bf16.mxu0 %v10292_v57 }
 0x6b1   :  { %10295 = vmatpush3.bf16.msra.mxu0 %v10292_v57 }
 0x6b2   :  { %v10316_v5 = vpack.c.bf16 %v10803_v62, %v10802_v63  ;;  %v11040_v6 = vpop.eup %11039 }
 0x6b3   :  { %v10806_v7 = vpop.permute.xlu1 %10805  ;;  %v1034_v14 = vmul.f32 %v11040_v6, %v12038_v30 }
 0x6b4   :  { %v10808_v9 = vunpack.i.h.bf16 %v10806_v7  ;;  %v10807_v10 = vunpack.i.l.bf16 %v10806_v7  ;;  %9495 = vmatmul.mubr.msk.f32.vlgmr.msra.gmra.mrb[12].mxu0 %vm325_vm1, %v1032_v4  ;;  %10318 = vmatprep.subr.msk.bf16.mxu1 %vm11907_vm2, %v10316_v5 }
 0x6b5   :  { %9497 = vmatprep.mubr.msk.f32.mxu0 %vm325_vm1, %v1033_v8  ;;  %10321 = vmatpush3.bf16.xpose.msk.msra.mxu1 %vm11907_vm2, %v10316_v5 }
 0x6b6   :  { %v10322_v12 = vpack.c.bf16 %v10808_v9, %v10807_v10 }
 0x6b7   :  { %v1716_v15 = vpop.permute.xlu1 %1715 }
 0x6b8   :  { %9498 = vmatmul.mubr.msk.f32.gmra.mrb[14].mxu0 %vm325_vm1, %v1034_v14  ;;  %10324 = vmatprep.subr.msk.bf16.mxu1 %vm11907_vm2, %v10322_v12 }
 0x6bb   :  { %v1720_v18 = vpop.permute.xlu1 %1719 }
 0x6bd   :  { %10327 = vmatpush3.bf16.xpose.msk.msra.mxu1 %vm11907_vm2, %v10322_v12 }
 0x6c4   :  { %9561 = vmatmul.mubr.msk.f32.vlgmr.msra.gmra.mrb[20].mxu1 %vm212_vm0, %v1716_v15 }
 0x6c5   :  { %9563 = vmatprep.mubr.msk.f32.mxu1 %vm212_vm0, %v1718_v17 }
 0x6c8   :  { %9564 = vmatmul.mubr.msk.f32.gmra.mrb[22].mxu1 %vm212_vm0, %v1720_v18 }
 0x6e0   :  { %v1461_v19 = vpop.xlane.xlu0 %1460 }
 0x6e1   :  { %v1471_v21 = vsub.f32 %v12059_v33, %v1461_v19 }
 0x6e3   :  { %v1475_v22 = vmul.f32 1.442695, %v1471_v21 }
 0x6e4   :  { %v1467_v23 = vpop.xlane.xlu0 %1466 }
 0x6e5   :  { %11041 = vpow2.f32 %v1475_v22  ;;  %v1473_v24 = vsub.f32 %v12062_v45, %v1467_v23 }
 0x6e7   :  { %v1479_v27 = vmul.f32 1.442695, %v1473_v24 }
 0x6e8   :  { %v1470_v28 = vpop.xlane.xlu0 %1469 }
 0x6e9   :  { %11043 = vpow2.f32 %v1479_v27  ;;  %v1474_v30 = vsub.f32 %v12067_v53, %v1470_v28  ;;  %v621_v27 = vld [vmem:[%s13251_s6 + $0x10] sm:$0xff] }
 0x6eb   :  { %v1481_v3 = vmul.f32 1.442695, %v1474_v30 }
 0x6ec   :  { %v1464_v32 = vpop.xlane.xlu1 %1463 }
 0x6ed   :  { %v1472_v39 = vsub.f32 %v12072_v1, %v1464_v32  ;;  %v620_v1 = vld [vmem:[%s13251_s6 + $0x8] sm:$0xff] }
 0x6ee   :  { %9500 = vmatprep.subr.mxu0 %v620_v1 }
 0x6ef   :  { %v11042_v2 = vpop.eup %11041  ;;  %v1477_v34 = vmul.f32 1.442695, %v1472_v39  ;;  %9501 = vmatpush3.msra.mxu0 %v620_v1 }
 0x6f0   :  { %v1483_v35 = vsel %vm325_vm1, %v11042_v2, 0.0  ;;  %9508 = vmatprep.subr.mxu0 %v619_v40 }
 0x6f1   :  { %11045 = vpow2.f32 %v1477_v34  ;;  %1484 = vadd.xlane.f32.xlu0 %v1483_v35 }
 0x6f2   :  { %11047 = vpow2.f32 %v1481_v3 }
 0x6f3   :  { %v11044_v33 = vpop.eup %11043 }
 0x6f4   :  { %v1489_v36 = vsel %vm325_vm1, %v11044_v33, 0.0 }
 0x6f5   :  { %1490 = vadd.xlane.f32.xlu0 %v1489_v36 }
 0x6fb   :  { %v11046_v45 = vpop.eup %11045 }
 0x6fc   :  { %v1486_v37 = vsel %vm325_vm1, %v11046_v45, 0.0  ;;  %v12103_v38 = vpop.eup %11047 }
 0x6fd   :  { %1487 = vadd.xlane.f32.xlu1 %v1486_v37  ;;  %v1492_v53 = vsel %vm325_vm1, %v12103_v38, 0.0 }
 0x701   :  { %1493 = vadd.xlane.f32.xlu1 %v1492_v53 }
 0x70b   :  { %10810 = vrot.lane.b32.xlu0 %v11926_v59, %s11540_s22 }
 0x712   :  { %10815 = vrot.lane.b32.xlu1 %v11930_v0, %s11540_s22 }
 0x77e   :  { %v1485_v47 = vpop.xlane.xlu0 %1484 }
 0x77f   :  { %11049 = vrcp.f32 %v1485_v47 }
 0x782   :  { %v1491_v48 = vpop.xlane.xlu0 %1490 }
 0x786   :  { %v10811_v49 = vpop.permute.xlu0 %10810 }
 0x787   :  { %v10813_v50 = vunpack.i.h.bf16 %v10811_v49  ;;  %v10812_v51 = vunpack.i.l.bf16 %v10811_v49  ;;  %v9496_v52 = vpop.f32.mrb[12].mxu0 }
 0x788   :  { %v1129_v54 = vpop.f32.mrb[13].mxu0 }
 0x789   :  { %9502 = vmatprep.mubr.msk.f32.mxu0 %vm212_vm0, %v1129_v54  ;;  %v10308_v55 = vpack.c.bf16 %v10813_v50, %v10812_v51  ;;  %v11050_v61 = vpop.eup %11049 }
 0x78a   :  { %v1488_v56 = vpop.xlane.xlu1 %1487  ;;  %9503 = vmatmul.mubr.msk.f32.vlgmr.msra.gmra.mrb[16].mxu0 %vm212_vm0, %v9496_v52  ;;  %v1499_v6 = vmul.f32 %v11050_v61, %v11042_v2 }
 0x78b   :  { %9509 = vmatpush3.msra.mxu0 %v619_v40  ;;  %v9499_v57 = vpop.f32.mrb[14].mxu0  ;;  %11051 = vrcp.f32 %v1488_v56 }
 0x78c   :  { %10309 = vmatprep.subr.bf16.mxu0 %v10308_v55  ;;  %v1139_v58 = vpop.f32.mrb[15].mxu0  ;;  %11053 = vrcp.f32 %v1491_v48 }
 0x78d   :  { %9505 = vmatprep.mubr.msk.f32.mxu0 %vm212_vm0, %v1139_v58 }
 0x78e   :  { %v1494_v60 = vpop.xlane.xlu1 %1493  ;;  %9506 = vmatmul.mubr.msk.f32.gmra.mrb[18].mxu0 %vm212_vm0, %v9499_v57 }
 0x78f   :  { %9510 = vmatprep.mubr.msk.f32.mxu0 %vm212_vm0, %v12018_v43  ;;  %11055 = vrcp.f32 %v1494_v60 }
 0x792   :  { %v10816_v62 = vpop.permute.xlu1 %10815  ;;  %9511 = vmatmul.mubr.msk.f32.vlgmr.msra.gmra.mrb[16].mxu0 %vm212_vm0, %v12016_v42 }
 0x793   :  { %v10818_v63 = vunpack.i.h.bf16 %v10816_v62  ;;  %v10817_v4 = vunpack.i.l.bf16 %v10816_v62  ;;  %10311 = vmatpush3.bf16.msra.mxu0 %v10308_v55  ;;  %9513 = vmatprep.mubr.msk.f32.mxu0 %vm212_vm0, %v12022_v46 }
 0x795   :  { %v10312_v5 = vpack.c.bf16 %v10818_v63, %v10817_v4  ;;  %v11052_v7 = vpop.eup %11051 }
 0x796   :  { %9514 = vmatmul.mubr.msk.f32.gmra.mrb[18].mxu0 %vm212_vm0, %v12020_v44  ;;  %v11054_v8 = vpop.eup %11053  ;;  %v1500_v10 = vmul.f32 %v11052_v7, %v11046_v45 }
 0x797   :  { %10313 = vmatprep.subr.bf16.mxu0 %v10312_v5  ;;  %9538 = vmatprep.mubr.msk.f32.mxu0 %vm325_vm1, %v1499_v6  ;;  %v9562_v43 = vpop.f32.mrb[20].mxu1  ;;  %v1501_v15 = vmul.f32 %v11054_v8, %v11044_v33 }
 0x798   :  { %v1817_v9 = vadd.f32 %v9562_v43, %v11946_v13  ;;  %10315 = vmatpush3.bf16.msra.mxu0 %v10312_v5  ;;  %v1811_v42 = vpop.f32.mrb[21].mxu1 }
 0x799   :  { %v1812_v12 = vadd.f32 %v1811_v42, %v11944_v11  ;;  %v11056_v14 = vpop.eup %11055  ;;  %9544 = vmatprep.subr.mxu0 %v621_v27 }
 0x79a   :  { %v1833_v46 = vsel %vm325_vm1, %v1817_v9, -inf  ;;  %v1502_v22 = vmul.f32 %v11056_v14, %v12103_v38 }
 0x79b   :  { %v9565_v17 = vpop.f32.mrb[22].mxu1  ;;  %1834 = vmax.xlane.f32.xlu0 %v1833_v46  ;;  %9539 = vmatmul.mubr.msk.f32.vlgmr.msra.gmra.mrb[20].mxu0 %vm325_vm1, %v1500_v10  ;;  %v1830_v44 = vsel %vm325_vm1, %v1812_v12, -inf }
 0x79c   :  { %v1827_v18 = vadd.f32 %v9565_v17, %v11953_v20  ;;  %v1821_v19 = vpop.f32.mrb[23].mxu1  ;;  %1831 = vmax.xlane.f32.xlu1 %v1830_v44  ;;  %9541 = vmatprep.mubr.msk.f32.mxu0 %vm325_vm1, %v1501_v15 }
 0x79d   :  { %v1822_v21 = vadd.f32 %v1821_v19, %v11949_v16  ;;  %9545 = vmatpush3.msra.mxu0 %v621_v27  ;;  %v8598_v19 = vld [vmem:[%s13252_s7] ss:$0 sm:$0xff] }
 0x79e   :  { %v1839_v23 = vsel %vm325_vm1, %v1827_v18, -inf }
 0x79f   :  { %9542 = vmatmul.mubr.msk.f32.gmra.mrb[22].mxu0 %vm325_vm1, %v1502_v22  ;;  %v1836_v24 = vsel %vm325_vm1, %v1822_v21, -inf }
 0x7a0   :  { %1837 = vmax.xlane.f32.xlu0 %v1836_v24  ;;  %1840 = vmax.xlane.f32.xlu1 %v1839_v23 }
 0x828   :  { %v1835_v28 = vpop.xlane.xlu0 %1834 }
 0x829   :  { %v1843_v30 = vsub.f32 %v1817_v9, %v1835_v28  ;;  %v1832_v32 = vpop.xlane.xlu1 %1831  ;;  %v622_v9 = vld [vmem:[%s13251_s6 + $0x18] sm:$0xff] }
 0x82a   :  { %v1842_v39 = vsub.f32 %v1812_v12, %v1832_v32 }
 0x82b   :  { %v1848_v2 = vmul.f32 1.442695, %v1843_v30 }
 0x82c   :  { %v1846_v3 = vmul.f32 1.442695, %v1842_v39 }
 0x82d   :  { %11057 = vpow2.f32 %v1848_v2  ;;  %v1841_v34 = vpop.xlane.xlu1 %1840  ;;  %v1838_v35 = vpop.xlane.xlu0 %1837 }
 0x82e   :  { %11059 = vpow2.f32 %v1846_v3  ;;  %v1845_v33 = vsub.f32 %v1827_v18, %v1841_v34  ;;  %v1844_v36 = vsub.f32 %v1822_v21, %v1838_v35 }
 0x830   :  { %v1852_v45 = vmul.f32 1.442695, %v1845_v33  ;;  %v1850_v37 = vmul.f32 1.442695, %v1844_v36 }
 0x832   :  { %11061 = vpow2.f32 %v1852_v45 }
 0x833   :  { %11063 = vpow2.f32 %v1850_v37 }
 0x837   :  { %v11058_v38 = vpop.eup %11057 }
 0x838   :  { %v11060_v53 = vpop.eup %11059  ;;  %v1857_v1 = vsel %vm325_vm1, %v11058_v38, 0.0 }
 0x839   :  { %1858 = vadd.xlane.f32.xlu1 %v1857_v1  ;;  %v1854_v40 = vsel %vm325_vm1, %v11060_v53, 0.0 }
 0x83a   :  { %1855 = vadd.xlane.f32.xlu0 %v1854_v40 }
 0x83c   :  { %v11062_v47 = vpop.eup %11061 }
 0x83d   :  { %v11064_v48 = vpop.eup %11063  ;;  %v1863_v49 = vsel %vm325_vm1, %v11062_v47, 0.0 }
 0x83e   :  { %1864 = vadd.xlane.f32.xlu1 %v1863_v49  ;;  %v1860_v50 = vsel %vm325_vm1, %v11064_v48, 0.0 }
 0x83f   :  { %1861 = vadd.xlane.f32.xlu0 %v1860_v50 }
 0x84f   :  { %10825 = vrot.lane.b32.xlu1 %v11930_v0, %s11541_s3 }
 0x855   :  { %10820 = vrot.lane.b32.xlu0 %v11926_v59, %s11541_s3 }
 0x86e   :  { %v9540_v51 = vpop.f32.mrb[20].mxu0 }
 0x86f   :  { %v1593_v52 = vpop.f32.mrb[21].mxu0 }
 0x870   :  { %9546 = vmatprep.mubr.msk.f32.mxu0 %vm212_vm0, %v1593_v52 }
 0x871   :  { %9547 = vmatmul.mubr.msk.f32.vlgmr.msra.gmra.mrb[16].mxu0 %vm212_vm0, %v9540_v51 }
 0x872   :  { %v9543_v54 = vpop.f32.mrb[22].mxu0 }
 0x873   :  { %v1603_v55 = vpop.f32.mrb[23].mxu0 }
 0x874   :  { %9549 = vmatprep.mubr.msk.f32.mxu0 %vm212_vm0, %v1603_v55 }
 0x875   :  { %9550 = vmatmul.mubr.msk.f32.gmra.mrb[18].mxu0 %vm212_vm0, %v9543_v54 }
 0x8c6   :  { %v1859_v56 = vpop.xlane.xlu1 %1858 }
 0x8c7   :  { %v1856_v57 = vpop.xlane.xlu0 %1855 }
 0x8c8   :  { %11065 = vrcp.f32 %v1856_v57 }
 0x8c9   :  { %11067 = vrcp.f32 %v1859_v56 }
 0x8cb   :  { %v1865_v58 = vpop.xlane.xlu1 %1864 }
 0x8cc   :  { %v1862_v0 = vpop.xlane.xlu0 %1861 }
 0x8cd   :  { %11069 = vrcp.f32 %v1862_v0  ;;  %v2173_v0 = vld [vmem:[#allocation4] sm:$0xff] }
 0x8ce   :  { %11071 = vrcp.f32 %v1865_v58 }
 0x8cf   :  { %v10826_v59 = vpop.permute.xlu1 %10825 }
 0x8d0   :  { %v10821_v60 = vpop.permute.xlu0 %10820  ;;  %v10828_v61 = vunpack.i.h.bf16 %v10826_v59  ;;  %v10827_v62 = vunpack.i.l.bf16 %v10826_v59  ;;  %v2174_v59 = vld [vmem:[#allocation4 + $0x8] sm:$0xff] }
 0x8d1   :  { %v10823_v63 = vunpack.i.h.bf16 %v10821_v60  ;;  %v10822_v4 = vunpack.i.l.bf16 %v10821_v60  ;;  %v10336_v60 = vpack.c.bf16 %v2174_v59, %v2173_v0 }
 0x8d2   :  { %v11066_v5 = vpop.eup %11065  ;;  %v10332_v8 = vpack.c.bf16 %v10828_v61, %v10827_v62  ;;  %v2175_v61 = vld [vmem:[#allocation4 + $0x10] sm:$0xff]  ;;  %v2176_v62 = vld [vmem:[#allocation4 + $0x18] sm:$0xff] }
 0x8d3   :  { %v10328_v6 = vpack.c.bf16 %v10823_v63, %v10822_v4  ;;  %v1870_v7 = vmul.f32 %v11066_v5, %v11060_v53  ;;  %v11068_v43 = vpop.eup %11067  ;;  %10337 = vmatprep.subr.bf16.mxu1 %v10336_v60  ;;  %v10340_v63 = vpack.c.bf16 %v2176_v62, %v2175_v61  ;;  %v2282_v4 = vld [vmem:[#allocation4 + $0x20] sm:$0xff]  ;;  %v2283_v5 = vld [vmem:[#allocation4 + $0x28] sm:$0xff] }
 0x8d4   :  { %v1871_v10 = vmul.f32 %v11068_v43, %v11058_v38  ;;  %10339 = vmatpush3.bf16.msra.mxu1 %v10336_v60 }
 0x8d5   :  { %10329 = vmatprep.subr.bf16.mxu0 %v10328_v6  ;;  %9574 = vmatprep.mubr.msk.f32.mxu0 %vm325_vm1, %v1870_v7  ;;  %v310_v7 = vld [vmem:[#allocation2] sm:$0xff] }
 0x8d6   :  { %10331 = vmatpush3.bf16.msra.mxu0 %v10328_v6  ;;  %10341 = vmatprep.subr.bf16.mxu1 %v10340_v63  ;;  %v10344_v6 = vpack.c.bf16 %v2283_v5, %v2282_v4 }
 0x8d7   :  { %10333 = vmatprep.subr.bf16.mxu0 %v10332_v8  ;;  %v11070_v42 = vpop.eup %11069 }
 0x8d8   :  { %v11072_v12 = vpop.eup %11071  ;;  %v1872_v14 = vmul.f32 %v11070_v42, %v11064_v48  ;;  %10343 = vmatpush3.bf16.msra.mxu1 %v10340_v63 }
 0x8d9   :  { %v1873_v46 = vmul.f32 %v11072_v12, %v11062_v47  ;;  %10345 = vmatprep.subr.bf16.mxu1 %v10344_v6 }
 0x8da   :  { %10335 = vmatpush3.bf16.msra.mxu0 %v10332_v8 }
 0x8db   :  { %9580 = vmatprep.subr.mxu0 %v622_v9 }
 0x8dd   :  { %9575 = vmatmul.mubr.msk.f32.vlgmr.msra.gmra.mrb[24].mxu0 %vm325_vm1, %v1871_v10 }
 0x8de   :  { %9577 = vmatprep.mubr.msk.f32.mxu0 %vm325_vm1, %v1872_v14  ;;  %9581 = vmatpush3.msra.mxu0 %v622_v9 }
 0x8e1   :  { %9578 = vmatmul.mubr.msk.f32.gmra.mrb[26].mxu0 %vm325_vm1, %v1873_v46 }
 0x9b0   :  { %v9576_v15 = vpop.f32.mrb[24].mxu0 }
 0x9b1   :  { %v1964_v17 = vpop.f32.mrb[25].mxu0 }
 0x9b2   :  { %9582 = vmatprep.mubr.msk.f32.mxu0 %vm212_vm0, %v1964_v17 }
 0x9b3   :  { %9583 = vmatmul.mubr.msk.f32.vlgmr.msra.gmra.mrb[16].mxu0 %vm212_vm0, %v9576_v15 }
 0x9b4   :  { %v9579_v44 = vpop.f32.mrb[26].mxu0 }
 0x9b5   :  { %v1974_v18 = vpop.f32.mrb[27].mxu0 }
 0x9b6   :  { %9585 = vmatprep.mubr.msk.f32.mxu0 %vm212_vm0, %v1974_v18 }
 0x9b7   :  { %9586 = vmatmul.mubr.msk.f32.gmra.mrb[18].mxu0 %vm212_vm0, %v9579_v44 }
 0x9b8   :  { %9624 = vmatprep.mubr.msk.f32.mxu0 %vm325_vm1, %v310_v7 }
 0xa86   :  { %v9584_v21 = vpop.f32.mrb[16].mxu0 }
 0xa87   :  { %v2091_v22 = vadd.f32 %v9584_v21, %v8598_v19  ;;  %v2061_v23 = vpop.f32.mrb[17].mxu0  ;;  %v8599_v21 = vld [vmem:[#allocation12] ss:$0 sm:$0xff] }
 0xa88   :  { %v2090_v24 = vadd.f32 %v8598_v19, %v2061_v23 }
 0xa89   :  { %v2095_v27 = vadd.f32 %v2091_v22, %v11867_v26 }
 0xa8a   :  { %v9587_v28 = vpop.f32.mrb[18].mxu0  ;;  %v2094_v30 = vadd.f32 %v2090_v24, %v11865_v25 }
 0xa8b   :  { %v2093_v32 = vadd.f32 %v9587_v28, %v8598_v19  ;;  %v2071_v39 = vpop.f32.mrb[19].mxu0  ;;  %v2103_v2 = vsel %vm325_vm1, %v2095_v27, 0.0 }
 0xa8c   :  { %v2092_v3 = vadd.f32 %v8598_v19, %v2071_v39  ;;  %2104 = vadd.xlane.f32.xlu0 %v2103_v2  ;;  %v2100_v34 = vsel %vm325_vm1, %v2094_v30, 0.0  ;;  %v2285_v39 = vld [vmem:[#allocation4 + $0x38] sm:$0xff] }
 0xa8d   :  { %2101 = vadd.xlane.f32.xlu1 %v2100_v34  ;;  %v2097_v35 = vadd.f32 %v2093_v32, %v11873_v29  ;;  %v2284_v32 = vld [vmem:[#allocation4 + $0x30] sm:$0xff] }
 0xa8e   :  { %v2096_v33 = vadd.f32 %v2092_v3, %v11879_v31 }
 0xa8f   :  { %v2109_v36 = vsel %vm325_vm1, %v2097_v35, 0.0 }
 0xa90   :  { %v2106_v26 = vsel %vm325_vm1, %v2096_v33, 0.0 }
 0xa91   :  { %2110 = vadd.xlane.f32.xlu1 %v2109_v36  ;;  %2107 = vadd.xlane.f32.xlu0 %v2106_v26  ;;  %v10348_v26 = vpack.c.bf16 %v2285_v39, %v2284_v32 }
 0xb19   :  { %v2105_v25 = vpop.xlane.xlu0 %2104 }
 0xb1a   :  { %v2114_v45 = vmul.f32 0.03125, %v2105_v25  ;;  %v2102_v37 = vpop.xlane.xlu1 %2101 }
 0xb1b   :  { %v2113_v38 = vmul.f32 0.03125, %v2102_v37 }
 0xb1c   :  { %v2118_v53 = vsub.f32 %v2095_v27, %v2114_v45  ;;  %v8600_v27 = vld [vmem:[#allocation13] ss:$0 sm:$0xff] }
 0xb1d   :  { %v2117_v1 = vsub.f32 %v2094_v30, %v2113_v38 }
 0xb1e   :  { %v2111_v40 = vpop.xlane.xlu1 %2110  ;;  %v2108_v47 = vpop.xlane.xlu0 %2107  ;;  %v2122_v48 = vmul.f32 %v2118_v53, %v2118_v53 }
 0xb1f   :  { %v2116_v49 = vmul.f32 0.03125, %v2111_v40  ;;  %v2115_v50 = vmul.f32 0.03125, %v2108_v47  ;;  %v2121_v29 = vmul.f32 %v2117_v1, %v2117_v1  ;;  %v313_v40 = vld [vmem:[#allocation2 + $0x18] sm:$0xff]  ;;  %v8601_v47 = vld [vmem:[#allocation6] ss:$0 sm:$0xff] }
 0xb20   :  { %v2128_v31 = vsel %vm325_vm1, %v2122_v48, 0.0 }
 0xb21   :  { %v2120_v51 = vsub.f32 %v2097_v35, %v2116_v49  ;;  %v2119_v52 = vsub.f32 %v2096_v33, %v2115_v50  ;;  %2129 = vadd.xlane.f32.xlu1 %v2128_v31  ;;  %v2125_v54 = vsel %vm325_vm1, %v2121_v29, 0.0 }
 0xb22   :  { %2126 = vadd.xlane.f32.xlu0 %v2125_v54 }
 0xb23   :  { %v2124_v55 = vmul.f32 %v2120_v51, %v2120_v51  ;;  %v2123_v56 = vmul.f32 %v2119_v52, %v2119_v52 }
 0xb25   :  { %v2134_v57 = vsel %vm325_vm1, %v2124_v55, 0.0  ;;  %v2131_v58 = vsel %vm325_vm1, %v2123_v56, 0.0 }
 0xb26   :  { %2135 = vadd.xlane.f32.xlu1 %v2134_v57  ;;  %2132 = vadd.xlane.f32.xlu0 %v2131_v58 }
 0xbae   :  { %v2130_v8 = vpop.xlane.xlu1 %2129 }
 0xbaf   :  { %v2138_v43 = vmul.f32 0.03125, %v2130_v8  ;;  %v2127_v9 = vpop.xlane.xlu0 %2126  ;;  %v2393_v8 = vld [vmem:[#allocation4 + $0x48] sm:$0xff] }
 0xbb0   :  { %v2137_v42 = vmul.f32 0.03125, %v2127_v9 }
 0xbb1   :  { %v2142_v10 = vadd.f32 1e-05, %v2138_v43  ;;  %v2394_v43 = vld [vmem:[#allocation4 + $0x50] sm:$0xff] }
 0xbb2   :  { %v2141_v12 = vadd.f32 1e-05, %v2137_v42  ;;  %v2395_v42 = vld [vmem:[#allocation4 + $0x58] sm:$0xff] }
 0xbb3   :  { %11073 = vrsqrt.f32 %v2142_v10  ;;  %v2136_v14 = vpop.xlane.xlu1 %2135  ;;  %v2133_v46 = vpop.xlane.xlu0 %2132  ;;  %v10356_v10 = vpack.c.bf16 %v2395_v42, %v2394_v43 }
 0xbb4   :  { %11075 = vrsqrt.f32 %v2141_v12  ;;  %v2140_v15 = vmul.f32 0.03125, %v2136_v14  ;;  %v2139_v17 = vmul.f32 0.03125, %v2133_v46 }
 0xbb6   :  { %v2144_v44 = vadd.f32 1e-05, %v2140_v15  ;;  %v2143_v18 = vadd.f32 1e-05, %v2139_v17 }
 0xbb8   :  { %11077 = vrsqrt.f32 %v2144_v44 }
 0xbb9   :  { %11079 = vrsqrt.f32 %v2143_v18 }
 0xbbd   :  { %v11074_v19 = vpop.eup %11073 }
 0xbbe   :  { %v11076_v22 = vpop.eup %11075  ;;  %v2150_v23 = vmul.f32 %v11074_v19, %v2118_v53  ;;  %v311_v53 = vld [vmem:[#allocation2 + $0x8] sm:$0xff] }
 0xbbf   :  { %v2149_v24 = vmul.f32 %v11076_v22, %v2117_v1  ;;  %v312_v1 = vld [vmem:[#allocation2 + $0x10] sm:$0xff] }
 0xbc0   :  { %v2160_v28 = vmul.f32 %v8599_v21, %v2150_v23 }
 0xbc1   :  { %v2159_v30 = vmul.f32 %v8599_v21, %v2149_v24 }
 0xbc2   :  { %v11078_v2 = vpop.eup %11077  ;;  %v12186_v33 = vadd.f32 %v8600_v27, %v2160_v28 }
 0xbc3   :  { %v11080_v3 = vpop.eup %11079  ;;  %v12184_v34 = vadd.f32 %v8600_v27, %v2159_v30  ;;  %v2152_v35 = vmul.f32 %v11078_v2, %v2120_v51  ;;  %v8606_v51 = vld [vmem:[#allocation6 + $0x1] ss:$0 sm:$0xff] }
 0xbc4   :  { %v2151_v36 = vmul.f32 %v11080_v3, %v2119_v52 }
 0xbc5   :  { %9596 = vmatprep.mubr.msk.f32.mxu1 %vm325_vm1, %v12184_v34  ;;  %v2162_v25 = vmul.f32 %v8599_v21, %v2152_v35 }
 0xbc6   :  { %9597 = vmatmul.mubr.msk.f32.vlgmr.msra.gmra.mrb[24].mxu1 %vm325_vm1, %v12186_v33  ;;  %v2161_v45 = vmul.f32 %v8599_v21, %v2151_v36 }
 0xbc7   :  { %10347 = vmatpush3.bf16.msra.mxu1 %v10344_v6  ;;  %v12192_v37 = vadd.f32 %v8600_v27, %v2162_v25 }
 0xbc8   :  { %v12194_v38 = vadd.f32 %v8600_v27, %v2161_v45  ;;  %10349 = vmatprep.subr.bf16.mxu1 %v10348_v26  ;;  %v8611_v27 = vld [vmem:[#allocation6 + $0x2] ss:$0 sm:$0xff] }
 0xbca   :  { %9599 = vmatprep.mubr.msk.f32.mxu1 %vm325_vm1, %v12194_v38 }
 0xbcb   :  { %9600 = vmatmul.mubr.msk.f32.gmra.mrb[26].mxu1 %vm325_vm1, %v12192_v37 }
 0xbcc   :  { %10351 = vmatpush3.bf16.msra.mxu1 %v10348_v26  ;;  %9610 = vmatprep.mubr.msk.f32.mxu1 %vm325_vm1, %v310_v7  ;;  %v2392_v7 = vld [vmem:[#allocation4 + $0x40] sm:$0xff] }
 0xbcd   :  { %v10352_v9 = vpack.c.bf16 %v2393_v8, %v2392_v7 }
 0xbcf   :  { %9611 = vmatmul.mubr.msk.f32.vlgmr.msra.gmra.mrb[28].mxu1 %vm325_vm1, %v311_v53  ;;  %10353 = vmatprep.subr.bf16.mxu0 %v10352_v9 }
 0xbd0   :  { %9613 = vmatprep.mubr.msk.f32.mxu1 %vm325_vm1, %v312_v1  ;;  %10355 = vmatpush3.bf16.msra.mxu0 %v10352_v9 }
 0xbd1   :  { %10357 = vmatprep.subr.bf16.mxu0 %v10356_v10 }
 0xbd3   :  { %9614 = vmatmul.mubr.msk.f32.gmra.mrb[30].mxu1 %vm325_vm1, %v313_v40 }
 0xbd4   :  { %10359 = vmatpush3.bf16.msra.mxu0 %v10356_v10 }
 0xbd7   :  { %9625 = vmatmul.mubr.msk.f32.vlgmr.msra.gmra.mrb[28].mxu0 %vm325_vm1, %v311_v53 }
 0xbd8   :  { %9627 = vmatprep.mubr.msk.f32.mxu0 %vm325_vm1, %v312_v1 }
 0xbdb   :  { %9628 = vmatmul.mubr.msk.f32.gmra.mrb[30].mxu0 %vm325_vm1, %v313_v40 }
 0xc99   :  { %v9598_v48 = vpop.f32.mrb[24].mxu1 }
 0xc9a   :  { %v2262_v49 = vpop.f32.mrb[25].mxu1  ;;  %v12220_v4 = vadd.f32 %v9598_v48, %v8601_v47 }
 0xc9b   :  { %v12204_v50 = vadd.f32 %v8601_v47, %v2262_v49 }
 0xc9d   :  { %9638 = vmatprep.mubr.msk.f32.mxu1 %vm212_vm0, %v12204_v50 }
 0xc9e   :  { %v9601_v29 = vpop.f32.mrb[26].mxu1 }
 0xc9f   :  { %v2272_v31 = vpop.f32.mrb[27].mxu1  ;;  %v12228_v6 = vadd.f32 %v9601_v29, %v8601_v47 }
 0xca0   :  { %v12222_v5 = vadd.f32 %v8601_v47, %v2272_v31 }
 0xca2   :  { %v9612_v52 = vpop.f32.mrb[28].mxu1 }
 0xca3   :  { %v2378_v54 = vadd.f32 %v9612_v52, %v8606_v51  ;;  %v2372_v55 = vpop.f32.mrb[29].mxu1 }
 0xca4   :  { %v2373_v56 = vadd.f32 %v8606_v51, %v2372_v55 }
 0xca6   :  { %v10360_v57 = vpack.c.bf16 %v2378_v54, %v2373_v56  ;;  %v9615_v58 = vpop.f32.mrb[30].mxu1  ;;  %v12208_v0 = vpack.i.bf16 %v2378_v54, %v2373_v56 }
 0xca7   :  { %v2388_v59 = vadd.f32 %v9615_v58, %v8606_v51  ;;  %v2382_v60 = vpop.f32.mrb[31].mxu1 }
 0xca8   :  { %10362 = vmatprep.subr.msk.bf16.mxu1 %vm11907_vm2, %v10360_v57  ;;  %v2383_v61 = vadd.f32 %v8606_v51, %v2382_v60 }
 0xca9   :  { %10365 = vmatpush3.bf16.xpose.msk.msra.mxu1 %vm11907_vm2, %v10360_v57 }
 0xcaa   :  { %v10366_v62 = vpack.c.bf16 %v2388_v59, %v2383_v61  ;;  %v12214_v63 = vpack.i.bf16 %v2388_v59, %v2383_v61  ;;  %v9626_v28 = vpop.f32.mrb[28].mxu0 }
 0xcab   :  { %v12243_v30 = vadd.f32 %v9626_v28, %v8611_v27  ;;  %v2470_v32 = vpop.f32.mrb[29].mxu0 }
 0xcac   :  { %10368 = vmatprep.subr.msk.bf16.mxu1 %vm11907_vm2, %v10366_v62  ;;  %v12245_v39 = vadd.f32 %v8611_v27, %v2470_v32 }
 0xcae   :  { %v9629_v2 = vpop.f32.mrb[30].mxu0  ;;  %v10372_v3 = vpack.c.bf16 %v12243_v30, %v12245_v39 }
 0xcaf   :  { %v2486_v35 = vadd.f32 %v9629_v2, %v8611_v27  ;;  %v2480_v36 = vpop.f32.mrb[31].mxu0 }
 0xcb0   :  { %v2481_v26 = vadd.f32 %v8611_v27, %v2480_v36  ;;  %10373 = vmatprep.subr.bf16.mxu0 %v10372_v3 }
 0xcb1   :  { %10371 = vmatpush3.bf16.xpose.msk.msra.mxu1 %vm11907_vm2, %v10366_v62  ;;  %10375 = vmatpush3.bf16.msra.mxu0 %v10372_v3 }
 0xcb2   :  { %v10376_v62 = vpack.c.bf16 %v2486_v35, %v2481_v26  ;;  %v12253_v7 = vpack.i.bf16 %v2486_v35, %v2481_v26 }
 0xcb4   :  { %10377 = vmatprep.subr.bf16.mxu0 %v10376_v62 }
 0xcb5   :  { %10379 = vmatpush3.bf16.msra.mxu0 %v10376_v62 }
 0xcb8   :  { %9639 = vmatmul.mubr.msk.f32.vlgmr.msra.gmra.mrb[32].mxu1 %vm212_vm0, %v12220_v4 }
 0xcb9   :  { %9641 = vmatprep.mubr.msk.f32.mxu1 %vm212_vm0, %v12222_v5 }
 0xcbc   :  { %9642 = vmatmul.mubr.msk.f32.gmra.mrb[34].mxu1 %vm212_vm0, %v12228_v6 }
 0xd8b   :  { %v9640_v12 = vpop.f32.mrb[32].mxu1 }
 0xd8c   :  { %v2590_v14 = vadd.f32 %v9640_v12, %v11946_v13  ;;  %v2584_v46 = vpop.f32.mrb[33].mxu1 }
 0xd8d   :  { %v2585_v15 = vadd.f32 %v2584_v46, %v11944_v11 }
 0xd8e   :  { %v2606_v17 = vsel %vm325_vm1, %v2590_v14, -inf }
 0xd8f   :  { %2607 = vmax.xlane.f32.xlu1 %v2606_v17  ;;  %v9643_v44 = vpop.f32.mrb[34].mxu1  ;;  %v2603_v18 = vsel %vm325_vm1, %v2585_v15, -inf }
 0xd90   :  { %v2600_v19 = vadd.f32 %v9643_v44, %v11953_v20  ;;  %2604 = vmax.xlane.f32.xlu0 %v2603_v18  ;;  %v2594_v21 = vpop.f32.mrb[35].mxu1 }
 0xd91   :  { %v2595_v22 = vadd.f32 %v2594_v21, %v11949_v16 }
 0xd92   :  { %v2612_v23 = vsel %vm325_vm1, %v2600_v19, -inf }
 0xd93   :  { %2613 = vmax.xlane.f32.xlu1 %v2612_v23  ;;  %v2609_v24 = vsel %vm325_vm1, %v2595_v22, -inf }
 0xd94   :  { %2610 = vmax.xlane.f32.xlu0 %v2609_v24 }
 0xe1c   :  { %v2608_v25 = vpop.xlane.xlu1 %2607 }
 0xe1d   :  { %v2616_v45 = vsub.f32 %v2590_v14, %v2608_v25  ;;  %v2605_v53 = vpop.xlane.xlu0 %2604 }
 0xe1e   :  { %v2615_v1 = vsub.f32 %v2585_v15, %v2605_v53 }
 0xe1f   :  { %v2621_v40 = vmul.f32 1.442695, %v2616_v45 }
 0xe20   :  { %v2619_v47 = vmul.f32 1.442695, %v2615_v1  ;;  %v2614_v48 = vpop.xlane.xlu1 %2613 }
 0xe21   :  { %11081 = vpow2.f32 %v2621_v40  ;;  %v2618_v49 = vsub.f32 %v2600_v19, %v2614_v48  ;;  %v2611_v29 = vpop.xlane.xlu0 %2610 }
 0xe22   :  { %11083 = vpow2.f32 %v2619_v47  ;;  %v2617_v31 = vsub.f32 %v2595_v22, %v2611_v29 }
 0xe23   :  { %v2625_v51 = vmul.f32 1.442695, %v2618_v49 }
 0xe24   :  { %v2623_v52 = vmul.f32 1.442695, %v2617_v31 }
 0xe25   :  { %11085 = vpow2.f32 %v2625_v51 }
 0xe26   :  { %11087 = vpow2.f32 %v2623_v52 }
 0xe2b   :  { %v11082_v54 = vpop.eup %11081 }
 0xe2c   :  { %v11084_v55 = vpop.eup %11083  ;;  %v2630_v56 = vsel %vm325_vm1, %v11082_v54, 0.0 }
 0xe2d   :  { %2631 = vadd.xlane.f32.xlu1 %v2630_v56  ;;  %v2627_v57 = vsel %vm325_vm1, %v11084_v55, 0.0 }
 0xe2e   :  { %2628 = vadd.xlane.f32.xlu0 %v2627_v57 }
 0xe2f   :  { %v11086_v58 = vpop.eup %11085 }
 0xe30   :  { %v11088_v59 = vpop.eup %11087  ;;  %v2636_v60 = vsel %vm325_vm1, %v11086_v58, 0.0 }
 0xe31   :  { %2637 = vadd.xlane.f32.xlu1 %v2636_v60  ;;  %v2633_v61 = vsel %vm325_vm1, %v11088_v59, 0.0 }
 0xe32   :  { %2634 = vadd.xlane.f32.xlu0 %v2633_v61 }
 0xe42   :  { %10835 = vrot.lane.b32.xlu1 %v12214_v63, %s11539_s0 }
 0xe46   :  { %2744 = vrot.lane.b32.xlu1 %v12204_v50, %s11539_s0 }
 0xe48   :  { %10830 = vrot.lane.b32.xlu0 %v12208_v0, %s11539_s0 }
 0xe4a   :  { %2746 = vrot.lane.b32.xlu1 %v12220_v4, %s11539_s0 }
 0xe4c   :  { %2748 = vrot.lane.b32.xlu0 %v12222_v5, %s11539_s0 }
 0xe4e   :  { %2750 = vrot.lane.b32.xlu1 %v12228_v6, %s11539_s0 }
 0xe50   :  { %10840 = vrot.lane.b32.xlu0 %v12208_v0, %s11540_s22 }
 0xe52   :  { %10845 = vrot.lane.b32.xlu1 %v12214_v63, %s11540_s22 }
 0xe54   :  { %3212 = vrot.lane.b32.xlu0 %v12204_v50, %s11540_s22 }
 0xe56   :  { %3214 = vrot.lane.b32.xlu1 %v12220_v4, %s11540_s22 }
 0xe58   :  { %3216 = vrot.lane.b32.xlu0 %v12222_v5, %s11540_s22 }
 0xe5a   :  { %3218 = vrot.lane.b32.xlu1 %v12228_v6, %s11540_s22 }
 0xeba   :  { %v2632_v8 = vpop.xlane.xlu1 %2631 }
 0xebb   :  { %11089 = vrcp.f32 %v2632_v8  ;;  %v2629_v43 = vpop.xlane.xlu0 %2628 }
 0xebc   :  { %11091 = vrcp.f32 %v2629_v43 }
 0xebe   :  { %v2638_v9 = vpop.xlane.xlu1 %2637 }
 0xebf   :  { %11093 = vrcp.f32 %v2638_v9  ;;  %v2635_v42 = vpop.xlane.xlu0 %2634 }
 0xec0   :  { %11095 = vrcp.f32 %v2635_v42 }
 0xec2   :  { %v10836_v10 = vpop.permute.xlu1 %10835 }
 0xec3   :  { %v10831_v12 = vpop.permute.xlu0 %10830  ;;  %v10838_v44 = vunpack.i.h.bf16 %v10836_v10  ;;  %v10837_v18 = vunpack.i.l.bf16 %v10836_v10 }
 0xec4   :  { %v10833_v14 = vunpack.i.h.bf16 %v10831_v12  ;;  %v10832_v46 = vunpack.i.l.bf16 %v10831_v12 }
 0xec5   :  { %v11090_v15 = vpop.eup %11089  ;;  %v10386_v32 = vpack.c.bf16 %v10838_v44, %v10837_v18 }
 0xec6   :  { %v11092_v17 = vpop.eup %11091  ;;  %v10380_v19 = vpack.c.bf16 %v10833_v14, %v10832_v46  ;;  %v2745_v21 = vpop.permute.xlu1 %2744  ;;  %v2644_v24 = vmul.f32 %v11090_v15, %v11082_v54 }
 0xec7   :  { %v2749_v22 = vpop.permute.xlu0 %2748  ;;  %v2643_v23 = vmul.f32 %v11092_v17, %v11084_v55 }
 0xec8   :  { %10382 = vmatprep.subr.msk.bf16.mxu0 %vm11907_vm2, %v10380_v19 }
 0xec9   :  { %v11094_v27 = vpop.eup %11093  ;;  %9652 = vmatprep.mubr.msk.f32.mxu0 %vm325_vm1, %v2643_v23 }
 0xeca   :  { %v11096_v28 = vpop.eup %11095  ;;  %v2747_v2 = vpop.permute.xlu1 %2746  ;;  %9653 = vmatmul.mubr.msk.f32.vlgmr.msra.gmra.mrb[32].mxu0 %vm325_vm1, %v2644_v24  ;;  %v2646_v36 = vmul.f32 %v11094_v27, %v11086_v58 }
 0xecb   :  { %10385 = vmatpush3.bf16.xpose.msk.msra.mxu0 %vm11907_vm2, %v10380_v19  ;;  %v10841_v3 = vpop.permute.xlu0 %10840  ;;  %v2645_v35 = vmul.f32 %v11096_v28, %v11088_v59 }
 0xecc   :  { %10388 = vmatprep.subr.msk.bf16.mxu0 %vm11907_vm2, %v10386_v32  ;;  %v10843_v26 = vunpack.i.h.bf16 %v10841_v3  ;;  %v10842_v25 = vunpack.i.l.bf16 %v10841_v3 }
 0xecd   :  { %9655 = vmatprep.mubr.msk.f32.mxu0 %vm325_vm1, %v2645_v35 }
 0xece   :  { %v2751_v45 = vpop.permute.xlu1 %2750  ;;  %9656 = vmatmul.mubr.msk.f32.gmra.mrb[34].mxu0 %vm325_vm1, %v2646_v36  ;;  %v10400_v53 = vpack.c.bf16 %v10843_v26, %v10842_v25 }
 0xecf   :  { %9666 = vmatprep.mubr.msk.f32.mxu0 %vm212_vm0, %v2745_v21  ;;  %v3213_v49 = vpop.permute.xlu0 %3212 }
 0xed2   :  { %v10846_v1 = vpop.permute.xlu1 %10845 }
 0xed3   :  { %10391 = vmatpush3.bf16.xpose.msk.msra.mxu0 %vm11907_vm2, %v10386_v32  ;;  %v10848_v40 = vunpack.i.h.bf16 %v10846_v1  ;;  %v10847_v47 = vunpack.i.l.bf16 %v10846_v1  ;;  %v3217_v31 = vpop.permute.xlu0 %3216 }
 0xed4   :  { %10402 = vmatprep.subr.msk.bf16.mxu0 %vm11907_vm2, %v10400_v53 }
 0xed5   :  { %v10406_v48 = vpack.c.bf16 %v10848_v40, %v10847_v47  ;;  %v12335_v47 = vpack.i.bf16 %v12243_v30, %v12245_v39 }
 0xed6   :  { %v3215_v29 = vpop.permute.xlu1 %3214 }
 0xeda   :  { %9667 = vmatmul.mubr.msk.f32.vlgmr.msra.gmra.mrb[36].mxu0 %vm212_vm0, %v2747_v2  ;;  %v3219_v51 = vpop.permute.xlu1 %3218 }
 0xedb   :  { %9669 = vmatprep.mubr.msk.f32.mxu0 %vm212_vm0, %v2749_v22  ;;  %10405 = vmatpush3.bf16.xpose.msk.msra.mxu0 %vm11907_vm2, %v10400_v53 }
 0xedc   :  { %10408 = vmatprep.subr.msk.bf16.mxu0 %vm11907_vm2, %v10406_v48 }
 0xede   :  { %9670 = vmatmul.mubr.msk.f32.gmra.mrb[38].mxu0 %vm212_vm0, %v2751_v45 }
 0xedf   :  { %9710 = vmatprep.mubr.msk.f32.mxu0 %vm212_vm0, %v3213_v49 }
 0xee3   :  { %10411 = vmatpush3.bf16.xpose.msk.msra.mxu0 %vm11907_vm2, %v10406_v48 }
 0xeea   :  { %9711 = vmatmul.mubr.msk.f32.vlgmr.msra.gmra.mrb[40].mxu0 %vm212_vm0, %v3215_v29 }
 0xeeb   :  { %9713 = vmatprep.mubr.msk.f32.mxu0 %vm212_vm0, %v3217_v31 }
 0xeee   :  { %9714 = vmatmul.mubr.msk.f32.gmra.mrb[42].mxu0 %vm212_vm0, %v3219_v51 }
 0xf9d   :  { %v12307_v52 = vpop.f32.mrb[32].mxu0 }
 0xf9e   :  { %v12309_v54 = vpop.f32.mrb[33].mxu0 }
 0xfa1   :  { %v12311_v55 = vpop.f32.mrb[34].mxu0 }
 0xfa2   :  { %v12313_v56 = vpop.f32.mrb[35].mxu0 }
 0xfad   :  { %v9668_v57 = vpop.f32.mrb[36].mxu0 }
 0xfae   :  { %v2848_v58 = vadd.f32 %v9668_v57, %v11946_v13  ;;  %v2842_v59 = vpop.f32.mrb[37].mxu0 }
 0xfaf   :  { %v2843_v60 = vadd.f32 %v2842_v59, %v11944_v11 }
 0xfb0   :  { %v2864_v61 = vsel %vm325_vm1, %v2848_v58, -inf }
 0xfb1   :  { %2865 = vmax.xlane.f32.xlu1 %v2864_v61  ;;  %v9671_v62 = vpop.f32.mrb[38].mxu0  ;;  %v2861_v8 = vsel %vm325_vm1, %v2843_v60, -inf }
 0xfb2   :  { %v2852_v43 = vpop.f32.mrb[39].mxu0  ;;  %2862 = vmax.xlane.f32.xlu0 %v2861_v8  ;;  %v2858_v42 = vadd.f32 %v9671_v62, %v11953_v20 }
 0xfb3   :  { %v2853_v9 = vadd.f32 %v2852_v43, %v11949_v16 }
 0xfb4   :  { %v2870_v12 = vsel %vm325_vm1, %v2858_v42, -inf }
 0xfb5   :  { %v2867_v10 = vsel %vm325_vm1, %v2853_v9, -inf }
 0xfb6   :  { %2868 = vmax.xlane.f32.xlu0 %v2867_v10 }
 0xfba   :  { %2871 = vmax.xlane.f32.xlu0 %v2870_v12 }
 0xfbd   :  { %v9712_v14 = vpop.f32.mrb[40].mxu0 }
 0xfbe   :  { %v3310_v46 = vpop.f32.mrb[41].mxu0 }
 0xfbf   :  { %v12354_v30 = vadd.f32 %v3310_v46, %v11944_v11 }
 0xfc1   :  { %v9715_v15 = vpop.f32.mrb[42].mxu0 }
 0xfc2   :  { %v3320_v17 = vpop.f32.mrb[43].mxu0 }
0x103e   :  { %v2866_v44 = vpop.xlane.xlu1 %2865 }
0x103f   :  { %v2874_v18 = vsub.f32 %v2848_v58, %v2866_v44  ;;  %v2863_v19 = vpop.xlane.xlu0 %2862 }
0x1040   :  { %v2873_v21 = vsub.f32 %v2843_v60, %v2863_v19 }
0x1041   :  { %v2879_v22 = vmul.f32 1.442695, %v2874_v18 }
0x1042   :  { %v2877_v23 = vmul.f32 1.442695, %v2873_v21 }
0x1043   :  { %11097 = vpow2.f32 %v2879_v22  ;;  %v2869_v24 = vpop.xlane.xlu0 %2868 }
0x1044   :  { %11099 = vpow2.f32 %v2877_v23  ;;  %v2875_v27 = vsub.f32 %v2853_v9, %v2869_v24 }
0x1046   :  { %v2881_v28 = vmul.f32 1.442695, %v2875_v27 }
0x1047   :  { %v2872_v32 = vpop.xlane.xlu0 %2871 }
0x1048   :  { %11101 = vpow2.f32 %v2881_v28  ;;  %v2876_v2 = vsub.f32 %v2858_v42, %v2872_v32 }
0x104a   :  { %v2883_v3 = vmul.f32 1.442695, %v2876_v2 }
0x104c   :  { %11103 = vpow2.f32 %v2883_v3 }
0x104d   :  { %v12323_v35 = vpop.eup %11097 }
0x104e   :  { %v11100_v36 = vpop.eup %11099  ;;  %v2888_v26 = vsel %vm325_vm1, %v12323_v35, 0.0 }
0x104f   :  { %2889 = vadd.xlane.f32.xlu1 %v2888_v26  ;;  %v2885_v25 = vsel %vm325_vm1, %v11100_v36, 0.0 }
0x1050   :  { %2886 = vadd.xlane.f32.xlu0 %v2885_v25 }
0x1052   :  { %v11102_v45 = vpop.eup %11101 }
0x1053   :  { %v2891_v53 = vsel %vm325_vm1, %v11102_v45, 0.0 }
0x1054   :  { %2892 = vadd.xlane.f32.xlu0 %v2891_v53 }
0x1056   :  { %v12329_v1 = vpop.eup %11103 }
0x1057   :  { %v2894_v40 = vsel %vm325_vm1, %v12329_v1, 0.0 }
0x1058   :  { %2895 = vadd.xlane.f32.xlu1 %v2894_v40 }
0x1069   :  { %10855 = vrot.lane.b32.xlu1 %v12253_v7, %s11539_s0 }
0x106a   :  { %10850 = vrot.lane.b32.xlu0 %v12335_v47, %s11539_s0 }
0x106d   :  { %10860 = vrot.lane.b32.xlu1 %v12208_v0, %s11541_s3  ;;  %v12357_v0 = vadd.f32 %v3320_v17, %v11949_v16 }
0x106e   :  { %3583 = vrot.lane.b32.xlu0 %v12204_v50, %s11541_s3  ;;  %v3329_v50 = vsel %vm325_vm1, %v12354_v30, -inf }
0x1071   :  { %10865 = vrot.lane.b32.xlu1 %v12214_v63, %s11541_s3  ;;  %v12362_v63 = vadd.f32 %v9715_v15, %v11953_v20 }
0x1072   :  { %3587 = vrot.lane.b32.xlu0 %v12222_v5, %s11541_s3  ;;  %v3335_v5 = vsel %vm325_vm1, %v12357_v0, -inf }
0x1075   :  { %3585 = vrot.lane.b32.xlu1 %v12220_v4, %s11541_s3  ;;  %v12367_v4 = vadd.f32 %v9712_v14, %v11946_v13 }
0x1077   :  { %v3332_v39 = vsel %vm325_vm1, %v12367_v4, -inf }
0x1079   :  { %3589 = vrot.lane.b32.xlu1 %v12228_v6, %s11541_s3  ;;  %v3338_v6 = vsel %vm325_vm1, %v12362_v63, -inf }
0x1091   :  { %3330 = vmax.xlane.f32.xlu0 %v3329_v50 }
0x1095   :  { %3336 = vmax.xlane.f32.xlu0 %v3335_v5 }
0x1099   :  { %3339 = vmax.xlane.f32.xlu0 %v3338_v6 }
0x109d   :  { %3333 = vmax.xlane.f32.xlu1 %v3332_v39 }
0x10dc   :  { %v2890_v49 = vpop.xlane.xlu1 %2889 }
0x10dd   :  { %v2887_v48 = vpop.xlane.xlu0 %2886 }
0x10de   :  { %11105 = vrcp.f32 %v2887_v48 }
0x10df   :  { %11107 = vrcp.f32 %v2890_v49 }
0x10e1   :  { %v2893_v29 = vpop.xlane.xlu0 %2892 }
0x10e2   :  { %11109 = vrcp.f32 %v2893_v29 }
0x10e5   :  { %v2896_v31 = vpop.xlane.xlu1 %2895  ;;  %v10851_v51 = vpop.permute.xlu0 %10850 }
0x10e6   :  { %v10853_v57 = vunpack.i.h.bf16 %v10851_v51  ;;  %v10852_v58 = vunpack.i.l.bf16 %v10851_v51  ;;  %11111 = vrcp.f32 %v2896_v31  ;;  %v2489_v51 = vld [vmem:[%s13255_s10] sm:$0xff] }
0x10e8   :  { %v11106_v59 = vpop.eup %11105  ;;  %v10392_v60 = vpack.c.bf16 %v10853_v57, %v10852_v58 }
0x10e9   :  { %v10856_v61 = vpop.permute.xlu1 %10855  ;;  %v3584_v62 = vpop.permute.xlu0 %3583  ;;  %v2901_v8 = vmul.f32 %v11106_v59, %v11100_v36 }
0x10ea   :  { %v10858_v43 = vunpack.i.h.bf16 %v10856_v61  ;;  %v10857_v9 = vunpack.i.l.bf16 %v10856_v61  ;;  %10393 = vmatprep.subr.bf16.mxu1 %v10392_v60  ;;  %9746 = vmatprep.mubr.msk.f32.mxu0 %vm212_vm0, %v3584_v62  ;;  %v11108_v10 = vpop.eup %11107 }
0x10eb   :  { %10395 = vmatpush3.bf16.msra.mxu1 %v10392_v60  ;;  %9680 = vmatprep.mubr.msk.f32.mxu1 %vm325_vm1, %v2901_v8  ;;  %v2902_v17 = vmul.f32 %v11108_v10, %v12323_v35 }
0x10ec   :  { %v10396_v42 = vpack.c.bf16 %v10858_v43, %v10857_v9  ;;  %v11110_v14 = vpop.eup %11109 }
0x10ed   :  { %v10861_v12 = vpop.permute.xlu1 %10860  ;;  %v2903_v21 = vmul.f32 %v11110_v14, %v11102_v45  ;;  %v3588_v32 = vpop.permute.xlu0 %3587 }
0x10ee   :  { %v10863_v46 = vunpack.i.h.bf16 %v10861_v12  ;;  %v10862_v15 = vunpack.i.l.bf16 %v10861_v12  ;;  %10397 = vmatprep.subr.bf16.mxu1 %v10396_v42 }
0x10ef   :  { %10399 = vmatpush3.bf16.msra.mxu1 %v10396_v42 }
0x10f0   :  { %v10420_v44 = vpack.c.bf16 %v10863_v46, %v10862_v15  ;;  %v11112_v18 = vpop.eup %11111 }
0x10f1   :  { %v10866_v19 = vpop.permute.xlu1 %10865  ;;  %v2904_v27 = vmul.f32 %v11112_v18, %v12329_v1 }
0x10f2   :  { %v10868_v22 = vunpack.i.h.bf16 %v10866_v19  ;;  %v10867_v23 = vunpack.i.l.bf16 %v10866_v19  ;;  %9681 = vmatmul.mubr.msk.f32.vlgmr.msra.gmra.mrb[36].mxu1 %vm325_vm1, %v2902_v17  ;;  %10422 = vmatprep.subr.msk.bf16.mxu0 %vm11907_vm2, %v10420_v44 }
0x10f3   :  { %9683 = vmatprep.mubr.msk.f32.mxu1 %vm325_vm1, %v2903_v21  ;;  %10425 = vmatpush3.bf16.xpose.msk.msra.mxu0 %vm11907_vm2, %v10420_v44 }
0x10f4   :  { %v10426_v24 = vpack.c.bf16 %v10868_v22, %v10867_v23 }
0x10f5   :  { %v3586_v28 = vpop.permute.xlu1 %3585 }
0x10f6   :  { %9684 = vmatmul.mubr.msk.f32.gmra.mrb[38].mxu1 %vm325_vm1, %v2904_v27  ;;  %10428 = vmatprep.subr.msk.bf16.mxu0 %vm11907_vm2, %v10426_v24 }
0x10f9   :  { %v3590_v2 = vpop.permute.xlu1 %3589 }
0x10fb   :  { %10431 = vmatpush3.bf16.xpose.msk.msra.mxu0 %vm11907_vm2, %v10426_v24 }
0x1102   :  { %9747 = vmatmul.mubr.msk.f32.vlgmr.msra.gmra.mrb[44].mxu0 %vm212_vm0, %v3586_v28 }
0x1103   :  { %9749 = vmatprep.mubr.msk.f32.mxu0 %vm212_vm0, %v3588_v32 }
0x1106   :  { %9750 = vmatmul.mubr.msk.f32.gmra.mrb[46].mxu0 %vm212_vm0, %v3590_v2 }
0x111e   :  { %v3331_v3 = vpop.xlane.xlu0 %3330 }
0x111f   :  { %v3341_v35 = vsub.f32 %v12354_v30, %v3331_v3 }
0x1121   :  { %v3345_v36 = vmul.f32 1.442695, %v3341_v35 }
0x1122   :  { %v3337_v26 = vpop.xlane.xlu0 %3336 }
0x1123   :  { %11113 = vpow2.f32 %v3345_v36  ;;  %v3343_v25 = vsub.f32 %v12357_v0, %v3337_v26 }
0x1125   :  { %v3349_v45 = vmul.f32 1.442695, %v3343_v25 }
0x1126   :  { %v3340_v53 = vpop.xlane.xlu0 %3339 }
0x1127   :  { %11115 = vpow2.f32 %v3349_v45  ;;  %v3344_v1 = vsub.f32 %v12362_v63, %v3340_v53  ;;  %v2491_v45 = vld [vmem:[%s13255_s10 + $0x10] sm:$0xff] }
0x1129   :  { %v3351_v6 = vmul.f32 1.442695, %v3344_v1 }
0x112a   :  { %v3334_v40 = vpop.xlane.xlu1 %3333 }
0x112b   :  { %v3342_v50 = vsub.f32 %v12367_v4, %v3334_v40  ;;  %v2490_v4 = vld [vmem:[%s13255_s10 + $0x8] sm:$0xff] }
0x112c   :  { %9686 = vmatprep.subr.mxu1 %v2490_v4 }
0x112d   :  { %v11114_v5 = vpop.eup %11113  ;;  %v3347_v39 = vmul.f32 1.442695, %v3342_v50  ;;  %9687 = vmatpush3.msra.mxu1 %v2490_v4 }
0x112e   :  { %v3353_v48 = vsel %vm325_vm1, %v11114_v5, 0.0  ;;  %9694 = vmatprep.subr.mxu1 %v2489_v51 }
0x112f   :  { %11117 = vpow2.f32 %v3347_v39  ;;  %3354 = vadd.xlane.f32.xlu0 %v3353_v48 }
0x1130   :  { %11119 = vpow2.f32 %v3351_v6 }
0x1131   :  { %v11116_v30 = vpop.eup %11115 }
0x1132   :  { %v3359_v49 = vsel %vm325_vm1, %v11116_v30, 0.0 }
0x1133   :  { %3360 = vadd.xlane.f32.xlu0 %v3359_v49 }
0x1139   :  { %v11118_v0 = vpop.eup %11117 }
0x113a   :  { %v3356_v29 = vsel %vm325_vm1, %v11118_v0, 0.0  ;;  %v12398_v31 = vpop.eup %11119 }
0x113b   :  { %3357 = vadd.xlane.f32.xlu1 %v3356_v29  ;;  %v3362_v63 = vsel %vm325_vm1, %v12398_v31, 0.0 }
0x113f   :  { %3363 = vadd.xlane.f32.xlu1 %v3362_v63 }
0x1149   :  { %10870 = vrot.lane.b32.xlu0 %v12335_v47, %s11540_s22 }
0x1150   :  { %10875 = vrot.lane.b32.xlu1 %v12253_v7, %s11540_s22 }
0x11bc   :  { %v3355_v57 = vpop.xlane.xlu0 %3354 }
0x11bd   :  { %11121 = vrcp.f32 %v3355_v57 }
0x11c0   :  { %v3361_v58 = vpop.xlane.xlu0 %3360 }
0x11c4   :  { %v10871_v59 = vpop.permute.xlu0 %10870 }
0x11c5   :  { %v10873_v60 = vunpack.i.h.bf16 %v10871_v59  ;;  %v10872_v61 = vunpack.i.l.bf16 %v10871_v59  ;;  %v9682_v62 = vpop.f32.mrb[36].mxu1 }
0x11c6   :  { %v2999_v8 = vpop.f32.mrb[37].mxu1 }
0x11c7   :  { %9688 = vmatprep.mubr.msk.f32.mxu1 %vm212_vm0, %v2999_v8  ;;  %v10412_v43 = vpack.c.bf16 %v10873_v60, %v10872_v61  ;;  %v11122_v14 = vpop.eup %11121 }
0x11c8   :  { %v3358_v9 = vpop.xlane.xlu1 %3357  ;;  %9689 = vmatmul.mubr.msk.f32.vlgmr.msra.gmra.mrb[40].mxu1 %vm212_vm0, %v9682_v62  ;;  %v3369_v18 = vmul.f32 %v11122_v14, %v11114_v5 }
0x11c9   :  { %9695 = vmatpush3.msra.mxu1 %v2489_v51  ;;  %v9685_v42 = vpop.f32.mrb[38].mxu1  ;;  %11123 = vrcp.f32 %v3358_v9 }
0x11ca   :  { %10413 = vmatprep.subr.bf16.mxu1 %v10412_v43  ;;  %v3009_v10 = vpop.f32.mrb[39].mxu1  ;;  %11125 = vrcp.f32 %v3361_v58 }
0x11cb   :  { %9691 = vmatprep.mubr.msk.f32.mxu1 %vm212_vm0, %v3009_v10 }
0x11cc   :  { %v3364_v12 = vpop.xlane.xlu1 %3363  ;;  %9692 = vmatmul.mubr.msk.f32.gmra.mrb[42].mxu1 %vm212_vm0, %v9685_v42 }
0x11cd   :  { %9696 = vmatprep.mubr.msk.f32.mxu1 %vm212_vm0, %v12309_v54  ;;  %11127 = vrcp.f32 %v3364_v12 }
0x11d0   :  { %v10876_v46 = vpop.permute.xlu1 %10875  ;;  %9697 = vmatmul.mubr.msk.f32.vlgmr.msra.gmra.mrb[40].mxu1 %vm212_vm0, %v12307_v52 }
0x11d1   :  { %v10878_v15 = vunpack.i.h.bf16 %v10876_v46  ;;  %v10877_v17 = vunpack.i.l.bf16 %v10876_v46  ;;  %10415 = vmatpush3.bf16.msra.mxu1 %v10412_v43  ;;  %9699 = vmatprep.mubr.msk.f32.mxu1 %vm212_vm0, %v12313_v56 }
0x11d3   :  { %v10416_v44 = vpack.c.bf16 %v10878_v15, %v10877_v17  ;;  %v11124_v19 = vpop.eup %11123 }
0x11d4   :  { %9700 = vmatmul.mubr.msk.f32.gmra.mrb[42].mxu1 %vm212_vm0, %v12311_v55  ;;  %v11126_v21 = vpop.eup %11125  ;;  %v3370_v23 = vmul.f32 %v11124_v19, %v11118_v0 }
0x11d5   :  { %10417 = vmatprep.subr.bf16.mxu1 %v10416_v44  ;;  %9724 = vmatprep.mubr.msk.f32.mxu1 %vm325_vm1, %v3369_v18  ;;  %v9748_v54 = vpop.f32.mrb[44].mxu0  ;;  %v3371_v28 = vmul.f32 %v11126_v21, %v11116_v30 }
0x11d6   :  { %v3687_v22 = vadd.f32 %v9748_v54, %v11946_v13  ;;  %10419 = vmatpush3.bf16.msra.mxu1 %v10416_v44  ;;  %v3681_v52 = vpop.f32.mrb[45].mxu0 }
0x11d7   :  { %v3682_v24 = vadd.f32 %v3681_v52, %v11944_v11  ;;  %v11128_v27 = vpop.eup %11127  ;;  %9730 = vmatprep.subr.mxu1 %v2491_v45 }
0x11d8   :  { %v3703_v56 = vsel %vm325_vm1, %v3687_v22, -inf  ;;  %v3372_v36 = vmul.f32 %v11128_v27, %v12398_v31 }
0x11d9   :  { %v9751_v32 = vpop.f32.mrb[46].mxu0  ;;  %3704 = vmax.xlane.f32.xlu0 %v3703_v56  ;;  %9725 = vmatmul.mubr.msk.f32.vlgmr.msra.gmra.mrb[44].mxu1 %vm325_vm1, %v3370_v23  ;;  %v3700_v55 = vsel %vm325_vm1, %v3682_v24, -inf }
0x11da   :  { %v3697_v2 = vadd.f32 %v9751_v32, %v11953_v20  ;;  %v3691_v3 = vpop.f32.mrb[47].mxu0  ;;  %3701 = vmax.xlane.f32.xlu1 %v3700_v55  ;;  %9727 = vmatprep.mubr.msk.f32.mxu1 %vm325_vm1, %v3371_v28 }
0x11db   :  { %v3692_v35 = vadd.f32 %v3691_v3, %v11949_v16  ;;  %9731 = vmatpush3.msra.mxu1 %v2491_v45  ;;  %v8680_v3 = vld [vmem:[%s13256_s11] ss:$0 sm:$0xff] }
0x11dc   :  { %v3709_v26 = vsel %vm325_vm1, %v3697_v2, -inf }
0x11dd   :  { %9728 = vmatmul.mubr.msk.f32.gmra.mrb[46].mxu1 %vm325_vm1, %v3372_v36  ;;  %v3706_v25 = vsel %vm325_vm1, %v3692_v35, -inf }
0x11de   :  { %3707 = vmax.xlane.f32.xlu0 %v3706_v25  ;;  %3710 = vmax.xlane.f32.xlu1 %v3709_v26 }
0x1266   :  { %v3705_v53 = vpop.xlane.xlu0 %3704 }
0x1267   :  { %v3713_v1 = vsub.f32 %v3687_v22, %v3705_v53  ;;  %v3702_v40 = vpop.xlane.xlu1 %3701  ;;  %v2492_v22 = vld [vmem:[%s13255_s10 + $0x18] sm:$0xff] }
0x1268   :  { %v3712_v50 = vsub.f32 %v3682_v24, %v3702_v40 }
0x1269   :  { %v3718_v5 = vmul.f32 1.442695, %v3713_v1 }
0x126a   :  { %v3716_v6 = vmul.f32 1.442695, %v3712_v50 }
0x126b   :  { %11129 = vpow2.f32 %v3718_v5  ;;  %v3711_v39 = vpop.xlane.xlu1 %3710  ;;  %v3708_v48 = vpop.xlane.xlu0 %3707 }
0x126c   :  { %11131 = vpow2.f32 %v3716_v6  ;;  %v3715_v30 = vsub.f32 %v3697_v2, %v3711_v39  ;;  %v3714_v49 = vsub.f32 %v3692_v35, %v3708_v48 }
0x126e   :  { %v3722_v0 = vmul.f32 1.442695, %v3715_v30  ;;  %v3720_v29 = vmul.f32 1.442695, %v3714_v49 }
0x1270   :  { %11133 = vpow2.f32 %v3722_v0 }
0x1271   :  { %11135 = vpow2.f32 %v3720_v29 }
0x1275   :  { %v11130_v31 = vpop.eup %11129 }
0x1276   :  { %v11132_v63 = vpop.eup %11131  ;;  %v3727_v4 = vsel %vm325_vm1, %v11130_v31, 0.0 }
0x1277   :  { %3728 = vadd.xlane.f32.xlu1 %v3727_v4  ;;  %v3724_v51 = vsel %vm325_vm1, %v11132_v63, 0.0 }
0x1278   :  { %3725 = vadd.xlane.f32.xlu0 %v3724_v51 }
0x127a   :  { %v11134_v57 = vpop.eup %11133 }
0x127b   :  { %v11136_v58 = vpop.eup %11135  ;;  %v3733_v59 = vsel %vm325_vm1, %v11134_v57, 0.0 }
0x127c   :  { %3734 = vadd.xlane.f32.xlu1 %v3733_v59  ;;  %v3730_v60 = vsel %vm325_vm1, %v11136_v58, 0.0 }
0x127d   :  { %3731 = vadd.xlane.f32.xlu0 %v3730_v60 }
0x128d   :  { %10885 = vrot.lane.b32.xlu1 %v12253_v7, %s11541_s3 }
0x1293   :  { %10880 = vrot.lane.b32.xlu0 %v12335_v47, %s11541_s3 }
0x12ac   :  { %v9726_v61 = vpop.f32.mrb[44].mxu1 }
0x12ad   :  { %v3463_v62 = vpop.f32.mrb[45].mxu1 }
0x12ae   :  { %9732 = vmatprep.mubr.msk.f32.mxu1 %vm212_vm0, %v3463_v62 }
0x12af   :  { %9733 = vmatmul.mubr.msk.f32.vlgmr.msra.gmra.mrb[40].mxu1 %vm212_vm0, %v9726_v61 }
0x12b0   :  { %v9729_v8 = vpop.f32.mrb[46].mxu1 }
0x12b1   :  { %v3473_v43 = vpop.f32.mrb[47].mxu1 }
0x12b2   :  { %9735 = vmatprep.mubr.msk.f32.mxu1 %vm212_vm0, %v3473_v43 }
0x12b3   :  { %9736 = vmatmul.mubr.msk.f32.gmra.mrb[42].mxu1 %vm212_vm0, %v9729_v8 }
0x1304   :  { %v3729_v9 = vpop.xlane.xlu1 %3728 }
0x1305   :  { %v3726_v42 = vpop.xlane.xlu0 %3725 }
0x1306   :  { %11137 = vrcp.f32 %v3726_v42 }
0x1307   :  { %11139 = vrcp.f32 %v3729_v9 }
0x1309   :  { %v3735_v10 = vpop.xlane.xlu1 %3734 }
0x130a   :  { %v3732_v7 = vpop.xlane.xlu0 %3731 }
0x130b   :  { %11141 = vrcp.f32 %v3732_v7  ;;  %v4044_v7 = vld [vmem:[#allocation7] sm:$0xff] }
0x130c   :  { %11143 = vrcp.f32 %v3735_v10 }
0x130d   :  { %v10886_v47 = vpop.permute.xlu1 %10885 }
0x130e   :  { %v10881_v12 = vpop.permute.xlu0 %10880  ;;  %v10888_v14 = vunpack.i.h.bf16 %v10886_v47  ;;  %v10887_v46 = vunpack.i.l.bf16 %v10886_v47  ;;  %v4045_v47 = vld [vmem:[#allocation7 + $0x8] sm:$0xff] }
0x130f   :  { %v10883_v15 = vunpack.i.h.bf16 %v10881_v12  ;;  %v10882_v17 = vunpack.i.l.bf16 %v10881_v12  ;;  %v10440_v12 = vpack.c.bf16 %v4045_v47, %v4044_v7 }
0x1310   :  { %v11138_v44 = vpop.eup %11137  ;;  %v10436_v21 = vpack.c.bf16 %v10888_v14, %v10887_v46  ;;  %v4046_v14 = vld [vmem:[#allocation7 + $0x10] sm:$0xff]  ;;  %v4047_v46 = vld [vmem:[#allocation7 + $0x18] sm:$0xff] }
0x1311   :  { %v10432_v18 = vpack.c.bf16 %v10883_v15, %v10882_v17  ;;  %v3740_v19 = vmul.f32 %v11138_v44, %v11132_v63  ;;  %v11140_v54 = vpop.eup %11139  ;;  %10441 = vmatprep.subr.bf16.mxu0 %v10440_v12  ;;  %v10444_v15 = vpack.c.bf16 %v4047_v46, %v4046_v14  ;;  %v4156_v17 = vld [vmem:[%s13259_s14] sm:$0xff]  ;;  %v4157_v44 = vld [vmem:[%s13259_s14 + $0x8] sm:$0xff] }
0x1312   :  { %v3741_v23 = vmul.f32 %v11140_v54, %v11130_v31  ;;  %10443 = vmatpush3.bf16.msra.mxu0 %v10440_v12  ;;  %v8688_v12 = vld [vmem:[#allocation10] ss:$0 sm:$0xff] }
0x1313   :  { %10433 = vmatprep.subr.bf16.mxu1 %v10432_v18  ;;  %9760 = vmatprep.mubr.msk.f32.mxu1 %vm325_vm1, %v3740_v19 }
0x1314   :  { %10435 = vmatpush3.bf16.msra.mxu1 %v10432_v18  ;;  %10445 = vmatprep.subr.bf16.mxu0 %v10444_v15  ;;  %v10448_v18 = vpack.c.bf16 %v4157_v44, %v4156_v17 }
0x1315   :  { %10437 = vmatprep.subr.bf16.mxu1 %v10436_v21  ;;  %v11142_v52 = vpop.eup %11141 }
0x1316   :  { %v11144_v24 = vpop.eup %11143  ;;  %v3742_v27 = vmul.f32 %v11142_v52, %v11136_v58  ;;  %10447 = vmatpush3.bf16.msra.mxu0 %v10444_v15 }
0x1317   :  { %v3743_v56 = vmul.f32 %v11144_v24, %v11134_v57  ;;  %10449 = vmatprep.subr.bf16.mxu0 %v10448_v18 }
0x1318   :  { %10439 = vmatpush3.bf16.msra.mxu1 %v10436_v21 }
0x1319   :  { %9766 = vmatprep.subr.mxu1 %v2492_v22 }
0x131b   :  { %9761 = vmatmul.mubr.msk.f32.vlgmr.msra.gmra.mrb[48].mxu1 %vm325_vm1, %v3741_v23 }
0x131c   :  { %9763 = vmatprep.mubr.msk.f32.mxu1 %vm325_vm1, %v3742_v27  ;;  %9767 = vmatpush3.msra.mxu1 %v2492_v22 }
0x131f   :  { %9764 = vmatmul.mubr.msk.f32.gmra.mrb[50].mxu1 %vm325_vm1, %v3743_v56 }
0x13ee   :  { %v9762_v28 = vpop.f32.mrb[48].mxu1 }
0x13ef   :  { %v3834_v32 = vpop.f32.mrb[49].mxu1 }
0x13f0   :  { %9768 = vmatprep.mubr.msk.f32.mxu1 %vm212_vm0, %v3834_v32 }
0x13f1   :  { %9769 = vmatmul.mubr.msk.f32.vlgmr.msra.gmra.mrb[40].mxu1 %vm212_vm0, %v9762_v28 }
0x13f2   :  { %v9765_v55 = vpop.f32.mrb[50].mxu1 }
0x13f3   :  { %v3844_v2 = vpop.f32.mrb[51].mxu1 }
0x13f4   :  { %9771 = vmatprep.mubr.msk.f32.mxu1 %vm212_vm0, %v3844_v2 }
0x13f5   :  { %9772 = vmatmul.mubr.msk.f32.gmra.mrb[42].mxu1 %vm212_vm0, %v9765_v55 }
0x14c4   :  { %v9770_v35 = vpop.f32.mrb[40].mxu1 }
0x14c5   :  { %v3961_v36 = vadd.f32 %v9770_v35, %v8680_v3  ;;  %v3931_v26 = vpop.f32.mrb[41].mxu1 }
0x14c6   :  { %v3960_v25 = vadd.f32 %v8680_v3, %v3931_v26 }
0x14c7   :  { %v3965_v45 = vadd.f32 %v3961_v36, %v12186_v33 }
0x14c8   :  { %v3964_v53 = vadd.f32 %v3960_v25, %v12184_v34  ;;  %v9773_v1 = vpop.f32.mrb[42].mxu1  ;;  %v8682_v25 = vld [vmem:[#allocation13 + $0x1] ss:$0 sm:$0xff] }
0x14c9   :  { %v3963_v40 = vadd.f32 %v9773_v1, %v8680_v3  ;;  %v3941_v50 = vpop.f32.mrb[43].mxu1  ;;  %v3975_v5 = vsel %vm325_vm1, %v3965_v45, 0.0  ;;  %v4158_v1 = vld [vmem:[%s13259_s14 + $0x10] sm:$0xff] }
0x14ca   :  { %v3962_v6 = vadd.f32 %v8680_v3, %v3941_v50  ;;  %3976 = vadd.xlane.f32.xlu0 %v3975_v5  ;;  %v3972_v39 = vsel %vm325_vm1, %v3964_v53, 0.0  ;;  %v8681_v3 = vld [vmem:[#allocation12 + $0x1] ss:$0 sm:$0xff] }
0x14cb   :  { %v3967_v48 = vadd.f32 %v3963_v40, %v12192_v37  ;;  %3973 = vadd.xlane.f32.xlu1 %v3972_v39  ;;  %v4159_v40 = vld [vmem:[%s13259_s14 + $0x18] sm:$0xff] }
0x14cc   :  { %v3966_v30 = vadd.f32 %v3962_v6, %v12194_v38 }
0x14cd   :  { %v3981_v49 = vsel %vm325_vm1, %v3967_v48, 0.0 }
0x14ce   :  { %v3978_v33 = vsel %vm325_vm1, %v3966_v30, 0.0 }
0x14cf   :  { %3982 = vadd.xlane.f32.xlu1 %v3981_v49  ;;  %3979 = vadd.xlane.f32.xlu0 %v3978_v33  ;;  %v10452_v49 = vpack.c.bf16 %v4159_v40, %v4158_v1 }
0x1557   :  { %v3977_v34 = vpop.xlane.xlu0 %3976 }
0x1558   :  { %v3985_v0 = vmul.f32 0.03125, %v3977_v34  ;;  %v3974_v29 = vpop.xlane.xlu1 %3973 }
0x1559   :  { %v3984_v31 = vmul.f32 0.03125, %v3974_v29  ;;  %v4161_v29 = vld [vmem:[%s13259_s14 + $0x28] sm:$0xff] }
0x155a   :  { %v3989_v63 = vsub.f32 %v3965_v45, %v3985_v0  ;;  %v4160_v0 = vld [vmem:[%s13259_s14 + $0x20] sm:$0xff] }
0x155b   :  { %v3988_v4 = vsub.f32 %v3964_v53, %v3984_v31 }
0x155c   :  { %v3983_v51 = vpop.xlane.xlu1 %3982  ;;  %v3980_v57 = vpop.xlane.xlu0 %3979  ;;  %v3993_v58 = vmul.f32 %v3989_v63, %v3989_v63 }
0x155d   :  { %v3987_v59 = vmul.f32 0.03125, %v3983_v51  ;;  %v3986_v37 = vmul.f32 0.03125, %v3980_v57  ;;  %v3992_v60 = vmul.f32 %v3988_v4, %v3988_v4  ;;  %v4162_v51 = vld [vmem:[%s13259_s14 + $0x30] sm:$0xff]  ;;  %v4163_v57 = vld [vmem:[%s13259_s14 + $0x38] sm:$0xff] }
0x155e   :  { %v3999_v38 = vsel %vm325_vm1, %v3993_v58, 0.0  ;;  %v10460_v58 = vpack.c.bf16 %v4163_v57, %v4162_v51  ;;  %v8697_v51 = vld [vmem:[%s13279_s30 + $0x70] sm:$0xff]  ;;  %v8698_v57 = vld [vmem:[%s13279_s30 + $0x78] sm:$0xff] }
0x155f   :  { %v3991_v61 = vsub.f32 %v3967_v48, %v3987_v59  ;;  %v3990_v62 = vsub.f32 %v3966_v30, %v3986_v37  ;;  %4000 = vadd.xlane.f32.xlu1 %v3999_v38  ;;  %v3996_v8 = vsel %vm325_vm1, %v3992_v60, 0.0  ;;  %v8683_v59 = vld [vmem:[#allocation9] ss:$0 sm:$0xff] }
0x1560   :  { %3997 = vadd.xlane.f32.xlu0 %v3996_v8 }
0x1561   :  { %v3995_v43 = vmul.f32 %v3991_v61, %v3991_v61  ;;  %v3994_v9 = vmul.f32 %v3990_v62, %v3990_v62 }
0x1563   :  { %v4005_v42 = vsel %vm325_vm1, %v3995_v43, 0.0  ;;  %v4002_v10 = vsel %vm325_vm1, %v3994_v9, 0.0 }
0x1564   :  { %4006 = vadd.xlane.f32.xlu1 %v4005_v42  ;;  %4003 = vadd.xlane.f32.xlu0 %v4002_v10 }
0x15ec   :  { %v4001_v19 = vpop.xlane.xlu1 %4000 }
0x15ed   :  { %v4009_v21 = vmul.f32 0.03125, %v4001_v19  ;;  %v3998_v54 = vpop.xlane.xlu0 %3997 }
0x15ee   :  { %v4008_v22 = vmul.f32 0.03125, %v3998_v54 }
0x15ef   :  { %v4013_v52 = vadd.f32 1e-05, %v4009_v21 }
0x15f0   :  { %v4012_v23 = vadd.f32 1e-05, %v4008_v22 }
0x15f1   :  { %11145 = vrsqrt.f32 %v4013_v52  ;;  %v4007_v24 = vpop.xlane.xlu1 %4006  ;;  %v4004_v27 = vpop.xlane.xlu0 %4003 }
0x15f2   :  { %11147 = vrsqrt.f32 %v4012_v23  ;;  %v4011_v56 = vmul.f32 0.03125, %v4007_v24  ;;  %v4010_v28 = vmul.f32 0.03125, %v4004_v27 }
0x15f4   :  { %v4015_v32 = vadd.f32 1e-05, %v4011_v56  ;;  %v4014_v55 = vadd.f32 1e-05, %v4010_v28 }
0x15f6   :  { %11149 = vrsqrt.f32 %v4015_v32 }
0x15f7   :  { %11151 = vrsqrt.f32 %v4014_v55 }
0x15fb   :  { %v11146_v2 = vpop.eup %11145 }
0x15fc   :  { %v11148_v35 = vpop.eup %11147  ;;  %v4021_v36 = vmul.f32 %v11146_v2, %v3989_v63 }
0x15fd   :  { %v4020_v26 = vmul.f32 %v11148_v35, %v3988_v4  ;;  %v10456_v4 = vpack.c.bf16 %v4161_v29, %v4160_v0  ;;  %v8696_v0 = vld [vmem:[%s13279_s30 + $0x68] sm:$0xff]  ;;  %v8715_v29 = vld [vmem:[%s13279_s30 + $0xa0] sm:$0xff] }
0x15fe   :  { %v4031_v45 = vmul.f32 %v8681_v3, %v4021_v36 }
0x15ff   :  { %v4030_v53 = vmul.f32 %v8681_v3, %v4020_v26 }
0x1600   :  { %v11150_v50 = vpop.eup %11149  ;;  %v4041_v48 = vadd.f32 %v8682_v25, %v4031_v45 }
0x1601   :  { %v11152_v5 = vpop.eup %11151  ;;  %v4040_v6 = vadd.f32 %v8682_v25, %v4030_v53  ;;  %v4023_v39 = vmul.f32 %v11150_v50, %v3991_v61 }
0x1602   :  { %v4022_v30 = vmul.f32 %v11152_v5, %v3990_v62 }
0x1603   :  { %9782 = vmatprep.mubr.msk.f32.mxu0 %vm325_vm1, %v4040_v6  ;;  %v4033_v33 = vmul.f32 %v8681_v3, %v4023_v39 }
0x1604   :  { %9783 = vmatmul.mubr.msk.f32.vlgmr.msra.gmra.mrb[48].mxu0 %vm325_vm1, %v4041_v48  ;;  %v4032_v34 = vmul.f32 %v8681_v3, %v4022_v30 }
0x1605   :  { %v4043_v31 = vadd.f32 %v8682_v25, %v4033_v33  ;;  %10451 = vmatpush3.bf16.msra.mxu0 %v10448_v18 }
0x1606   :  { %v4042_v63 = vadd.f32 %v8682_v25, %v4032_v34  ;;  %10453 = vmatprep.subr.bf16.mxu0 %v10452_v49  ;;  %v8695_v34 = vld [vmem:[%s13279_s30 + $0x60] sm:$0xff] }
0x1608   :  { %9785 = vmatprep.mubr.msk.f32.mxu0 %vm325_vm1, %v4042_v63 }
0x1609   :  { %9786 = vmatmul.mubr.msk.f32.gmra.mrb[50].mxu0 %vm325_vm1, %v4043_v31 }
0x160a   :  { %10455 = vmatpush3.bf16.msra.mxu0 %v10452_v49 }
0x160b   :  { %10457 = vmatprep.subr.bf16.mxu0 %v10456_v4 }
0x160e   :  { %10459 = vmatpush3.bf16.msra.mxu0 %v10456_v4 }
0x160f   :  { %10461 = vmatprep.subr.bf16.mxu0 %v10460_v58 }
0x1612   :  { %10463 = vmatpush3.bf16.msra.mxu0 %v10460_v58  ;;  %v8717_v58 = vld [vmem:[%s13279_s30 + $0xb0] sm:$0xff] }
0x16d7   :  { %v9784_v37 = vpop.f32.mrb[48].mxu0 }
0x16d8   :  { %v4139_v60 = vadd.f32 %v9784_v37, %v8683_v59  ;;  %v4133_v38 = vpop.f32.mrb[49].mxu0  ;;  %v8718_v37 = vld [vmem:[%s13279_s30 + $0xb8] sm:$0xff] }
0x16d9   :  { %v4134_v61 = vadd.f32 %v8683_v59, %v4133_v38  ;;  %v8705_v38 = vld [vmem:[%s13279_s30 + $0x80] sm:$0xff] }
0x16da   :  { %v4153_v8 = vmax.f32 %v4139_v60, 0.0  ;;  %v10484_v60 = vpack.c.bf16 %v8718_v37, %v8717_v58 }
0x16db   :  { %v4152_v62 = vmax.f32 %v4134_v61, 0.0  ;;  %v8706_v61 = vld [vmem:[%s13279_s30 + $0x88] sm:$0xff] }
0x16dc   :  { %v9787_v43 = vpop.f32.mrb[50].mxu0 }
0x16dd   :  { %v4149_v9 = vadd.f32 %v9787_v43, %v8683_v59  ;;  %v4143_v42 = vpop.f32.mrb[51].mxu0  ;;  %9804 = vmatprep.mubr.msk.f32.mxu0 %vm4171_vm7, %v4152_v62  ;;  %v10472_v62 = vpack.c.bf16 %v8706_v61, %v8705_v38 }
0x16de   :  { %v4144_v10 = vadd.f32 %v8683_v59, %v4143_v42  ;;  %9805 = vmatmul.mubr.msk.f32.vlgmr.msra.gmra.mrb[52].mxu0 %vm4171_vm7, %v4153_v8  ;;  %v10468_v59 = vpack.c.bf16 %v8698_v57, %v8697_v51  ;;  %v8710_v51 = vld [vmem:[%s13250_s5 + $0x4] ss:$0 sm:$0xff] }
0x16df   :  { %v4155_v47 = vmax.f32 %v4149_v9, 0.0 }
0x16e0   :  { %v4154_v7 = vmax.f32 %v4144_v10, 0.0 }
0x16e2   :  { %9807 = vmatprep.mubr.msk.f32.mxu0 %vm4171_vm7, %v4154_v7 }
0x16e3   :  { %9808 = vmatmul.mubr.msk.f32.gmra.mrb[54].mxu0 %vm4171_vm7, %v4155_v47 }
0x17b1   :  { %v9806_v14 = vpop.f32.mrb[52].mxu0 }
0x17b2   :  { %v4256_v46 = vadd.f32 %v9806_v14, %v8688_v12  ;;  %v4250_v15 = vpop.f32.mrb[53].mxu0 }
0x17b3   :  { %v4251_v17 = vadd.f32 %v8688_v12, %v4250_v15 }
0x17b4   :  { %v4270_v44 = vadd.f32 %v4256_v46, %v4041_v48 }
0x17b5   :  { %v4269_v18 = vadd.f32 %v4251_v17, %v4040_v6 }
0x17b6   :  { %v9809_v19 = vpop.f32.mrb[54].mxu0  ;;  %v4280_v21 = vsel %vm325_vm1, %v4270_v44, 0.0 }
0x17b7   :  { %v4266_v54 = vadd.f32 %v9809_v19, %v8688_v12  ;;  %v4260_v22 = vpop.f32.mrb[55].mxu0  ;;  %4281 = vadd.xlane.f32.xlu1 %v4280_v21  ;;  %v4277_v52 = vsel %vm325_vm1, %v4269_v18, 0.0 }
0x17b8   :  { %v4261_v23 = vadd.f32 %v8688_v12, %v4260_v22  ;;  %4278 = vadd.xlane.f32.xlu0 %v4277_v52  ;;  %v8694_v22 = vld [vmem:[#allocation13 + $0x2] ss:$0 sm:$0xff] }
0x17b9   :  { %v4272_v24 = vadd.f32 %v4266_v54, %v4043_v31  ;;  %v10464_v31 = vpack.c.bf16 %v8696_v0, %v8695_v34 }
0x17ba   :  { %v4271_v27 = vadd.f32 %v4261_v23, %v4042_v63  ;;  %v8716_v63 = vld [vmem:[%s13279_s30 + $0xa8] sm:$0xff] }
0x17bb   :  { %v4286_v56 = vsel %vm325_vm1, %v4272_v24, 0.0  ;;  %v10480_v4 = vpack.c.bf16 %v8716_v63, %v8715_v29  ;;  %10465 = vmatprep.subr.bf16.mxu1 %v10464_v31 }
0x17bc   :  { %4287 = vadd.xlane.f32.xlu1 %v4286_v56  ;;  %v4283_v28 = vsel %vm325_vm1, %v4271_v27, 0.0  ;;  %10467 = vmatpush3.bf16.msra.mxu1 %v10464_v31 }
0x17bd   :  { %4284 = vadd.xlane.f32.xlu0 %v4283_v28  ;;  %10481 = vmatprep.subr.bf16.mxu0 %v10480_v4 }
0x17be   :  { %10483 = vmatpush3.bf16.msra.mxu0 %v10480_v4  ;;  %10469 = vmatprep.subr.bf16.mxu1 %v10468_v59 }
0x17bf   :  { %10485 = vmatprep.subr.bf16.mxu0 %v10484_v60 }
0x17c0   :  { %10471 = vmatpush3.bf16.msra.mxu1 %v10468_v59 }
0x17c1   :  { %10473 = vmatprep.subr.bf16.mxu1 %v10472_v62 }
0x17c2   :  { %10487 = vmatpush3.bf16.msra.mxu0 %v10484_v60 }
0x1844   :  { %v4282_v32 = vpop.xlane.xlu1 %4281 }
0x1845   :  { %v4290_v55 = vmul.f32 0.03125, %v4282_v32  ;;  %v4279_v2 = vpop.xlane.xlu0 %4278 }
0x1846   :  { %v4289_v3 = vmul.f32 0.03125, %v4279_v2 }
0x1847   :  { %v12514_v35 = vsub.f32 %v4270_v44, %v4290_v55 }
0x1848   :  { %v12516_v36 = vsub.f32 %v4269_v18, %v4289_v3  ;;  %v8693_v18 = vld [vmem:[#allocation12 + $0x2] ss:$0 sm:$0xff] }
0x1849   :  { %v4288_v26 = vpop.xlane.xlu1 %4287  ;;  %v4298_v25 = vmul.f32 %v12514_v35, %v12514_v35 }
0x184a   :  { %v4292_v45 = vmul.f32 0.03125, %v4288_v26  ;;  %v4285_v53 = vpop.xlane.xlu0 %4284  ;;  %v4297_v1 = vmul.f32 %v12516_v36, %v12516_v36 }
0x184b   :  { %v4291_v40 = vmul.f32 0.03125, %v4285_v53  ;;  %v4304_v50 = vsel %vm325_vm1, %v4298_v25, 0.0  ;;  %v8720_v53 = vld [vmem:[%s13250_s5 + $0x5] ss:$0 sm:$0xff] }
0x184c   :  { %v12523_v5 = vsub.f32 %v4272_v24, %v4292_v45  ;;  %4305 = vadd.xlane.f32.xlu1 %v4304_v50  ;;  %v4301_v6 = vsel %vm325_vm1, %v4297_v1, 0.0  ;;  %v8707_v24 = vld [vmem:[%s13279_s30 + $0x90] sm:$0xff]  ;;  %v8700_v1 = vld [vmem:[%s13250_s5 + $0x3] ss:$0 sm:$0xff] }
0x184d   :  { %v12526_v39 = vsub.f32 %v4271_v27, %v4291_v40  ;;  %4302 = vadd.xlane.f32.xlu0 %v4301_v6  ;;  %v8708_v27 = vld [vmem:[%s13279_s30 + $0x98] sm:$0xff] }
0x184e   :  { %v4300_v48 = vmul.f32 %v12523_v5, %v12523_v5 }
0x184f   :  { %v4299_v30 = vmul.f32 %v12526_v39, %v12526_v39 }
0x1850   :  { %v4310_v49 = vsel %vm325_vm1, %v4300_v48, 0.0 }
0x1851   :  { %4311 = vadd.xlane.f32.xlu1 %v4310_v49  ;;  %v4307_v33 = vsel %vm325_vm1, %v4299_v30, 0.0 }
0x1852   :  { %4308 = vadd.xlane.f32.xlu0 %v4307_v33 }
0x18d9   :  { %v4306_v8 = vpop.xlane.xlu1 %4305 }
0x18da   :  { %v4314_v43 = vmul.f32 0.03125, %v4306_v8  ;;  %v4303_v9 = vpop.xlane.xlu0 %4302 }
0x18db   :  { %v4313_v42 = vmul.f32 0.03125, %v4303_v9 }
0x18dc   :  { %v4318_v10 = vadd.f32 1e-05, %v4314_v43 }
0x18dd   :  { %v4317_v7 = vadd.f32 1e-05, %v4313_v42 }
0x18de   :  { %11153 = vrsqrt.f32 %v4318_v10  ;;  %v4312_v47 = vpop.xlane.xlu1 %4311 }
0x18df   :  { %11155 = vrsqrt.f32 %v4317_v7  ;;  %v4316_v12 = vmul.f32 0.03125, %v4312_v47  ;;  %v4309_v14 = vpop.xlane.xlu0 %4308 }
0x18e0   :  { %v4315_v46 = vmul.f32 0.03125, %v4309_v14 }
0x18e1   :  { %v4320_v15 = vadd.f32 1e-05, %v4316_v12 }
0x18e2   :  { %v4319_v17 = vadd.f32 1e-05, %v4315_v46 }
0x18e3   :  { %11157 = vrsqrt.f32 %v4320_v15 }
0x18e4   :  { %11159 = vrsqrt.f32 %v4319_v17 }
0x18e8   :  { %v11154_v44 = vpop.eup %11153 }
0x18e9   :  { %v11156_v19 = vpop.eup %11155  ;;  %v4326_v21 = vmul.f32 %v11154_v44, %v12514_v35  ;;  %v10476_v35 = vpack.c.bf16 %v8708_v27, %v8707_v24 }
0x18ea   :  { %v4325_v54 = vmul.f32 %v11156_v19, %v12516_v36 }
0x18eb   :  { %v4336_v52 = vmul.f32 %v8693_v18, %v4326_v21 }
0x18ec   :  { %v4335_v23 = vmul.f32 %v8693_v18, %v4325_v54 }
0x18ed   :  { %v11158_v56 = vpop.eup %11157  ;;  %v12575_v2 = vadd.f32 %v8694_v22, %v4336_v52 }
0x18ee   :  { %v11160_v28 = vpop.eup %11159  ;;  %v12572_v32 = vadd.f32 %v8694_v22, %v4335_v23  ;;  %v4328_v55 = vmul.f32 %v11158_v56, %v12523_v5 }
0x18ef   :  { %v4327_v3 = vmul.f32 %v11160_v28, %v12526_v39 }
0x18f0   :  { %9818 = vmatprep.mubr.msk.f32.mxu1 %vm325_vm1, %v12572_v32  ;;  %9846 = vmatprep.mubr.msk.f32.mxu0 %vm325_vm1, %v12572_v32  ;;  %v4338_v36 = vmul.f32 %v8693_v18, %v4328_v55 }
0x18f1   :  { %9819 = vmatmul.mubr.msk.f32.vlgmr.msra.gmra.mrb[52].mxu1 %vm325_vm1, %v12575_v2  ;;  %9847 = vmatmul.mubr.msk.f32.vlgmr.msra.gmra.mrb[56].mxu0 %vm325_vm1, %v12575_v2  ;;  %v4337_v26 = vmul.f32 %v8693_v18, %v4327_v3 }
0x18f2   :  { %10475 = vmatpush3.bf16.msra.mxu1 %v10472_v62  ;;  %v12588_v45 = vadd.f32 %v8694_v22, %v4338_v36 }
0x18f3   :  { %v12586_v25 = vadd.f32 %v8694_v22, %v4337_v26  ;;  %10477 = vmatprep.subr.bf16.mxu1 %v10476_v35 }
0x18f5   :  { %9821 = vmatprep.mubr.msk.f32.mxu1 %vm325_vm1, %v12586_v25  ;;  %9849 = vmatprep.mubr.msk.f32.mxu0 %vm325_vm1, %v12586_v25 }
0x18f6   :  { %9822 = vmatmul.mubr.msk.f32.gmra.mrb[54].mxu1 %vm325_vm1, %v12588_v45  ;;  %9850 = vmatmul.mubr.msk.f32.gmra.mrb[58].mxu0 %vm325_vm1, %v12588_v45 }
0x18f7   :  { %10479 = vmatpush3.bf16.msra.mxu1 %v10476_v35  ;;  %9832 = vmatprep.mubr.msk.f32.mxu1 %vm325_vm1, %v12572_v32 }
0x18fa   :  { %9833 = vmatmul.mubr.msk.f32.vlgmr.msra.gmra.mrb[56].mxu1 %vm325_vm1, %v12575_v2 }
0x18fb   :  { %9835 = vmatprep.mubr.msk.f32.mxu1 %vm325_vm1, %v12586_v25 }
0x18fe   :  { %9836 = vmatmul.mubr.msk.f32.gmra.mrb[58].mxu1 %vm325_vm1, %v12588_v45 }
0x19c4   :  { %v9820_v40 = vpop.f32.mrb[52].mxu1  ;;  %v9848_v50 = vpop.f32.mrb[56].mxu0 }
0x19c5   :  { %v4642_v5 = vadd.f32 %v9848_v50, %v8720_v53  ;;  %v4440_v6 = vpop.f32.mrb[53].mxu1  ;;  %v4636_v39 = vpop.f32.mrb[57].mxu0  ;;  %v12635_v47 = vadd.f32 %v9820_v40, %v8700_v1 }
0x19c6   :  { %v12612_v48 = vadd.f32 %v8700_v1, %v4440_v6  ;;  %v4637_v30 = vadd.f32 %v8720_v53, %v4636_v39 }
0x19c8   :  { %9860 = vmatprep.mubr.msk.f32.mxu1 %vm212_vm0, %v12612_v48  ;;  %v10500_v49 = vpack.c.bf16 %v4642_v5, %v4637_v30  ;;  %v12616_v33 = vpack.i.bf16 %v4642_v5, %v4637_v30 }
0x19c9   :  { %v9823_v34 = vpop.f32.mrb[54].mxu1  ;;  %v9851_v0 = vpop.f32.mrb[58].mxu0 }
0x19ca   :  { %v4652_v29 = vadd.f32 %v9851_v0, %v8720_v53  ;;  %v4450_v31 = vpop.f32.mrb[55].mxu1  ;;  %v4646_v63 = vpop.f32.mrb[59].mxu0  ;;  %10501 = vmatprep.subr.bf16.mxu0 %v10500_v49  ;;  %v12643_v14 = vadd.f32 %v9823_v34, %v8700_v1 }
0x19cb   :  { %v4647_v4 = vadd.f32 %v8720_v53, %v4646_v63  ;;  %10503 = vmatpush3.bf16.msra.mxu0 %v10500_v49  ;;  %v12637_v12 = vadd.f32 %v8700_v1, %v4450_v31 }
0x19cd   :  { %v9834_v57 = vpop.f32.mrb[56].mxu1  ;;  %v10504_v58 = vpack.c.bf16 %v4652_v29, %v4647_v4  ;;  %v12621_v59 = vpack.i.bf16 %v4652_v29, %v4647_v4 }
0x19ce   :  { %v4544_v37 = vadd.f32 %v9834_v57, %v8710_v51  ;;  %v4538_v60 = vpop.f32.mrb[57].mxu1 }
0x19cf   :  { %v4539_v38 = vadd.f32 %v8710_v51, %v4538_v60  ;;  %10505 = vmatprep.subr.bf16.mxu0 %v10504_v58 }
0x19d0   :  { %10507 = vmatpush3.bf16.msra.mxu0 %v10504_v58 }
0x19d1   :  { %v9837_v61 = vpop.f32.mrb[58].mxu1  ;;  %v10488_v62 = vpack.c.bf16 %v4544_v37, %v4539_v38  ;;  %v12623_v8 = vpack.i.bf16 %v4544_v37, %v4539_v38 }
0x19d2   :  { %v4554_v43 = vadd.f32 %v9837_v61, %v8710_v51  ;;  %v4548_v9 = vpop.f32.mrb[59].mxu1 }
0x19d3   :  { %v4549_v42 = vadd.f32 %v8710_v51, %v4548_v9  ;;  %10490 = vmatprep.subr.msk.bf16.mxu1 %vm11907_vm2, %v10488_v62 }
0x19d4   :  { %10493 = vmatpush3.bf16.xpose.msk.msra.mxu1 %vm11907_vm2, %v10488_v62 }
0x19d5   :  { %v10494_v10 = vpack.c.bf16 %v4554_v43, %v4549_v42  ;;  %v12629_v7 = vpack.i.bf16 %v4554_v43, %v4549_v42 }
0x19d7   :  { %10496 = vmatprep.subr.msk.bf16.mxu1 %vm11907_vm2, %v10494_v10 }
0x19dc   :  { %10499 = vmatpush3.bf16.xpose.msk.msra.mxu1 %vm11907_vm2, %v10494_v10 }
0x19e3   :  { %9861 = vmatmul.mubr.msk.f32.vlgmr.msra.gmra.mrb[60].mxu1 %vm212_vm0, %v12635_v47 }
0x19e4   :  { %9863 = vmatprep.mubr.msk.f32.mxu1 %vm212_vm0, %v12637_v12 }
0x19e7   :  { %9864 = vmatmul.mubr.msk.f32.gmra.mrb[62].mxu1 %vm212_vm0, %v12643_v14 }
0x1ab6   :  { %v9862_v46 = vpop.f32.mrb[60].mxu1 }
0x1ab7   :  { %v4758_v15 = vadd.f32 %v9862_v46, %v11946_v13  ;;  %v4752_v17 = vpop.f32.mrb[61].mxu1 }
0x1ab8   :  { %v4753_v44 = vadd.f32 %v4752_v17, %v11944_v11 }
0x1ab9   :  { %v4774_v18 = vsel %vm325_vm1, %v4758_v15, -inf }
0x1aba   :  { %4775 = vmax.xlane.f32.xlu1 %v4774_v18  ;;  %v9865_v19 = vpop.f32.mrb[62].mxu1  ;;  %v4771_v21 = vsel %vm325_vm1, %v4753_v44, -inf }
0x1abb   :  { %v4768_v54 = vadd.f32 %v9865_v19, %v11953_v20  ;;  %4772 = vmax.xlane.f32.xlu0 %v4771_v21  ;;  %v4762_v22 = vpop.f32.mrb[63].mxu1 }
0x1abc   :  { %v4763_v52 = vadd.f32 %v4762_v22, %v11949_v16 }
0x1abd   :  { %v4780_v23 = vsel %vm325_vm1, %v4768_v54, -inf }
0x1abe   :  { %4781 = vmax.xlane.f32.xlu1 %v4780_v23  ;;  %v4777_v24 = vsel %vm325_vm1, %v4763_v52, -inf }
0x1abf   :  { %4778 = vmax.xlane.f32.xlu0 %v4777_v24 }
0x1b47   :  { %v4776_v27 = vpop.xlane.xlu1 %4775 }
0x1b48   :  { %v4784_v56 = vsub.f32 %v4758_v15, %v4776_v27  ;;  %v4773_v28 = vpop.xlane.xlu0 %4772 }
0x1b49   :  { %v4783_v55 = vsub.f32 %v4753_v44, %v4773_v28 }
0x1b4a   :  { %v4789_v3 = vmul.f32 1.442695, %v4784_v56 }
0x1b4b   :  { %v4787_v35 = vmul.f32 1.442695, %v4783_v55  ;;  %v4782_v36 = vpop.xlane.xlu1 %4781 }
0x1b4c   :  { %11161 = vpow2.f32 %v4789_v3  ;;  %v4786_v26 = vsub.f32 %v4768_v54, %v4782_v36  ;;  %v4779_v53 = vpop.xlane.xlu0 %4778 }
0x1b4d   :  { %11163 = vpow2.f32 %v4787_v35  ;;  %v4785_v1 = vsub.f32 %v4763_v52, %v4779_v53 }
0x1b4e   :  { %v4793_v40 = vmul.f32 1.442695, %v4786_v26 }
0x1b4f   :  { %v4791_v50 = vmul.f32 1.442695, %v4785_v1 }
0x1b50   :  { %11165 = vpow2.f32 %v4793_v40 }
0x1b51   :  { %11167 = vpow2.f32 %v4791_v50 }
0x1b56   :  { %v11162_v5 = vpop.eup %11161 }
0x1b57   :  { %v11164_v6 = vpop.eup %11163  ;;  %v4798_v39 = vsel %vm325_vm1, %v11162_v5, 0.0 }
0x1b58   :  { %4799 = vadd.xlane.f32.xlu1 %v4798_v39  ;;  %v4795_v30 = vsel %vm325_vm1, %v11164_v6, 0.0 }
0x1b59   :  { %4796 = vadd.xlane.f32.xlu0 %v4795_v30 }
0x1b5a   :  { %v11166_v49 = vpop.eup %11165 }
0x1b5b   :  { %v11168_v34 = vpop.eup %11167  ;;  %v4804_v0 = vsel %vm325_vm1, %v11166_v49, 0.0 }
0x1b5c   :  { %4805 = vadd.xlane.f32.xlu1 %v4804_v0  ;;  %v4801_v29 = vsel %vm325_vm1, %v11168_v34, 0.0 }
0x1b5d   :  { %4802 = vadd.xlane.f32.xlu0 %v4801_v29 }
0x1b6d   :  { %10895 = vrot.lane.b32.xlu1 %v12629_v7, %s11539_s0 }
0x1b71   :  { %4912 = vrot.lane.b32.xlu1 %v12612_v48, %s11539_s0 }
0x1b73   :  { %10890 = vrot.lane.b32.xlu0 %v12623_v8, %s11539_s0 }
0x1b75   :  { %4914 = vrot.lane.b32.xlu1 %v12635_v47, %s11539_s0 }
0x1b77   :  { %4916 = vrot.lane.b32.xlu0 %v12637_v12, %s11539_s0 }
0x1b79   :  { %4918 = vrot.lane.b32.xlu1 %v12643_v14, %s11539_s0 }
0x1b7b   :  { %10900 = vrot.lane.b32.xlu0 %v12623_v8, %s11540_s22 }
0x1b7d   :  { %10905 = vrot.lane.b32.xlu1 %v12629_v7, %s11540_s22 }
0x1b7f   :  { %5380 = vrot.lane.b32.xlu0 %v12612_v48, %s11540_s22 }
0x1b81   :  { %5382 = vrot.lane.b32.xlu1 %v12635_v47, %s11540_s22 }
0x1b83   :  { %5384 = vrot.lane.b32.xlu0 %v12637_v12, %s11540_s22 }
0x1b85   :  { %5386 = vrot.lane.b32.xlu1 %v12643_v14, %s11540_s22 }
0x1be5   :  { %v4800_v31 = vpop.xlane.xlu1 %4799 }
0x1be6   :  { %11169 = vrcp.f32 %v4800_v31  ;;  %v4797_v63 = vpop.xlane.xlu0 %4796 }
0x1be7   :  { %11171 = vrcp.f32 %v4797_v63 }
0x1be9   :  { %v4806_v4 = vpop.xlane.xlu1 %4805 }
0x1bea   :  { %11173 = vrcp.f32 %v4806_v4  ;;  %v4803_v51 = vpop.xlane.xlu0 %4802 }
0x1beb   :  { %11175 = vrcp.f32 %v4803_v51 }
0x1bed   :  { %v10896_v57 = vpop.permute.xlu1 %10895 }
0x1bee   :  { %v10891_v58 = vpop.permute.xlu0 %10890  ;;  %v10898_v62 = vunpack.i.h.bf16 %v10896_v57  ;;  %v10897_v43 = vunpack.i.l.bf16 %v10896_v57 }
0x1bef   :  { %v10893_v37 = vunpack.i.h.bf16 %v10891_v58  ;;  %v10892_v60 = vunpack.i.l.bf16 %v10891_v58 }
0x1bf0   :  { %v11170_v38 = vpop.eup %11169  ;;  %v10514_v18 = vpack.c.bf16 %v10898_v62, %v10897_v43 }
0x1bf1   :  { %v11172_v61 = vpop.eup %11171  ;;  %v10508_v9 = vpack.c.bf16 %v10893_v37, %v10892_v60  ;;  %v4913_v42 = vpop.permute.xlu1 %4912  ;;  %v4812_v15 = vmul.f32 %v11170_v38, %v11162_v5 }
0x1bf2   :  { %v4917_v10 = vpop.permute.xlu0 %4916  ;;  %v4811_v46 = vmul.f32 %v11172_v61, %v11164_v6 }
0x1bf3   :  { %10510 = vmatprep.subr.msk.bf16.mxu0 %vm11907_vm2, %v10508_v9 }
0x1bf4   :  { %v11174_v17 = vpop.eup %11173  ;;  %9874 = vmatprep.mubr.msk.f32.mxu0 %vm325_vm1, %v4811_v46 }
0x1bf5   :  { %v11176_v44 = vpop.eup %11175  ;;  %v4915_v19 = vpop.permute.xlu1 %4914  ;;  %9875 = vmatmul.mubr.msk.f32.vlgmr.msra.gmra.mrb[60].mxu0 %vm325_vm1, %v4812_v15  ;;  %v4814_v22 = vmul.f32 %v11174_v17, %v11166_v49 }
0x1bf6   :  { %10513 = vmatpush3.bf16.xpose.msk.msra.mxu0 %vm11907_vm2, %v10508_v9  ;;  %v10901_v21 = vpop.permute.xlu0 %10900  ;;  %v4813_v54 = vmul.f32 %v11176_v44, %v11168_v34 }
0x1bf7   :  { %10516 = vmatprep.subr.msk.bf16.mxu0 %vm11907_vm2, %v10514_v18  ;;  %v10903_v52 = vunpack.i.h.bf16 %v10901_v21  ;;  %v10902_v23 = vunpack.i.l.bf16 %v10901_v21 }
0x1bf8   :  { %9877 = vmatprep.mubr.msk.f32.mxu0 %vm325_vm1, %v4813_v54 }
0x1bf9   :  { %v4919_v24 = vpop.permute.xlu1 %4918  ;;  %9878 = vmatmul.mubr.msk.f32.gmra.mrb[62].mxu0 %vm325_vm1, %v4814_v22  ;;  %v10528_v27 = vpack.c.bf16 %v10903_v52, %v10902_v23 }
0x1bfa   :  { %9888 = vmatprep.mubr.msk.f32.mxu0 %vm212_vm0, %v4913_v42  ;;  %v5381_v35 = vpop.permute.xlu0 %5380 }
0x1bfd   :  { %v10906_v56 = vpop.permute.xlu1 %10905 }
0x1bfe   :  { %10519 = vmatpush3.bf16.xpose.msk.msra.mxu0 %vm11907_vm2, %v10514_v18  ;;  %v10908_v28 = vunpack.i.h.bf16 %v10906_v56  ;;  %v10907_v55 = vunpack.i.l.bf16 %v10906_v56  ;;  %v5385_v26 = vpop.permute.xlu0 %5384 }
0x1bff   :  { %10530 = vmatprep.subr.msk.bf16.mxu0 %vm11907_vm2, %v10528_v27 }
0x1c00   :  { %v10534_v3 = vpack.c.bf16 %v10908_v28, %v10907_v55 }
0x1c01   :  { %v5383_v36 = vpop.permute.xlu1 %5382 }
0x1c05   :  { %9889 = vmatmul.mubr.msk.f32.vlgmr.msra.gmra.mrb[64].mxu0 %vm212_vm0, %v4915_v19  ;;  %v5387_v53 = vpop.permute.xlu1 %5386 }
0x1c06   :  { %9891 = vmatprep.mubr.msk.f32.mxu0 %vm212_vm0, %v4917_v10  ;;  %10533 = vmatpush3.bf16.xpose.msk.msra.mxu0 %vm11907_vm2, %v10528_v27 }
0x1c07   :  { %10536 = vmatprep.subr.msk.bf16.mxu0 %vm11907_vm2, %v10534_v3 }
0x1c09   :  { %9892 = vmatmul.mubr.msk.f32.gmra.mrb[66].mxu0 %vm212_vm0, %v4919_v24 }
0x1c0a   :  { %9932 = vmatprep.mubr.msk.f32.mxu0 %vm212_vm0, %v5381_v35 }
0x1c0e   :  { %10539 = vmatpush3.bf16.xpose.msk.msra.mxu0 %vm11907_vm2, %v10534_v3 }
0x1c15   :  { %9933 = vmatmul.mubr.msk.f32.vlgmr.msra.gmra.mrb[68].mxu0 %vm212_vm0, %v5383_v36 }
0x1c16   :  { %9935 = vmatprep.mubr.msk.f32.mxu0 %vm212_vm0, %v5385_v26 }
0x1c19   :  { %9936 = vmatmul.mubr.msk.f32.gmra.mrb[70].mxu0 %vm212_vm0, %v5387_v53 }
0x1cc8   :  { %v12711_v1 = vpop.f32.mrb[60].mxu0 }
0x1cc9   :  { %v12713_v40 = vpop.f32.mrb[61].mxu0 }
0x1ccc   :  { %v12715_v50 = vpop.f32.mrb[62].mxu0 }
0x1ccd   :  { %v12717_v5 = vpop.f32.mrb[63].mxu0 }
0x1cd8   :  { %v9890_v6 = vpop.f32.mrb[64].mxu0 }
0x1cd9   :  { %v5016_v39 = vadd.f32 %v9890_v6, %v11946_v13  ;;  %v5010_v30 = vpop.f32.mrb[65].mxu0 }
0x1cda   :  { %v5011_v49 = vadd.f32 %v5010_v30, %v11944_v11 }
0x1cdb   :  { %v5032_v34 = vsel %vm325_vm1, %v5016_v39, -inf }
0x1cdc   :  { %5033 = vmax.xlane.f32.xlu1 %v5032_v34  ;;  %v9893_v0 = vpop.f32.mrb[66].mxu0  ;;  %v5029_v29 = vsel %vm325_vm1, %v5011_v49, -inf }
0x1cdd   :  { %v5020_v31 = vpop.f32.mrb[67].mxu0  ;;  %5030 = vmax.xlane.f32.xlu0 %v5029_v29  ;;  %v5026_v4 = vadd.f32 %v9893_v0, %v11953_v20 }
0x1cde   :  { %v5021_v63 = vadd.f32 %v5020_v31, %v11949_v16 }
0x1cdf   :  { %v5038_v57 = vsel %vm325_vm1, %v5026_v4, -inf }
0x1ce0   :  { %v5035_v51 = vsel %vm325_vm1, %v5021_v63, -inf }
0x1ce1   :  { %5036 = vmax.xlane.f32.xlu0 %v5035_v51 }
0x1ce5   :  { %5039 = vmax.xlane.f32.xlu0 %v5038_v57 }
0x1ce8   :  { %v9934_v58 = vpop.f32.mrb[68].mxu0 }
0x1ce9   :  { %v5478_v37 = vpop.f32.mrb[69].mxu0 }
0x1cea   :  { %v12751_v28 = vadd.f32 %v5478_v37, %v11944_v11 }
0x1cec   :  { %v9937_v60 = vpop.f32.mrb[70].mxu0 }
0x1ced   :  { %v5488_v38 = vpop.f32.mrb[71].mxu0 }
0x1d69   :  { %v5034_v61 = vpop.xlane.xlu1 %5033 }
0x1d6a   :  { %v5042_v62 = vsub.f32 %v5016_v39, %v5034_v61  ;;  %v5031_v43 = vpop.xlane.xlu0 %5030 }
0x1d6b   :  { %v5041_v9 = vsub.f32 %v5011_v49, %v5031_v43 }
0x1d6c   :  { %v5047_v42 = vmul.f32 1.442695, %v5042_v62 }
0x1d6d   :  { %v5045_v10 = vmul.f32 1.442695, %v5041_v9 }
0x1d6e   :  { %11177 = vpow2.f32 %v5047_v42  ;;  %v5037_v46 = vpop.xlane.xlu0 %5036 }
0x1d6f   :  { %11179 = vpow2.f32 %v5045_v10  ;;  %v5043_v15 = vsub.f32 %v5021_v63, %v5037_v46 }
0x1d71   :  { %v5049_v17 = vmul.f32 1.442695, %v5043_v15 }
0x1d72   :  { %v5040_v44 = vpop.xlane.xlu0 %5039 }
0x1d73   :  { %11181 = vpow2.f32 %v5049_v17  ;;  %v5044_v18 = vsub.f32 %v5026_v4, %v5040_v44 }
0x1d75   :  { %v5051_v19 = vmul.f32 1.442695, %v5044_v18 }
0x1d77   :  { %11183 = vpow2.f32 %v5051_v19 }
0x1d78   :  { %v11178_v21 = vpop.eup %11177 }
0x1d79   :  { %v11180_v54 = vpop.eup %11179  ;;  %v5056_v22 = vsel %vm325_vm1, %v11178_v21, 0.0 }
0x1d7a   :  { %5057 = vadd.xlane.f32.xlu1 %v5056_v22  ;;  %v5053_v52 = vsel %vm325_vm1, %v11180_v54, 0.0 }
0x1d7b   :  { %5054 = vadd.xlane.f32.xlu0 %v5053_v52 }
0x1d7d   :  { %v11182_v23 = vpop.eup %11181 }
0x1d7e   :  { %v5059_v24 = vsel %vm325_vm1, %v11182_v23, 0.0 }
0x1d7f   :  { %5060 = vadd.xlane.f32.xlu0 %v5059_v24 }
0x1d81   :  { %v12730_v27 = vpop.eup %11183 }
0x1d82   :  { %v5062_v56 = vsel %vm325_vm1, %v12730_v27, 0.0 }
0x1d83   :  { %5063 = vadd.xlane.f32.xlu1 %v5062_v56 }
0x1d94   :  { %10915 = vrot.lane.b32.xlu1 %v12621_v59, %s11539_s0 }
0x1d95   :  { %10910 = vrot.lane.b32.xlu0 %v12616_v33, %s11539_s0 }
0x1d98   :  { %10920 = vrot.lane.b32.xlu1 %v12623_v8, %s11541_s3  ;;  %v12754_v8 = vadd.f32 %v5488_v38, %v11949_v16 }
0x1d99   :  { %5751 = vrot.lane.b32.xlu0 %v12612_v48, %s11541_s3  ;;  %v5497_v48 = vsel %vm325_vm1, %v12751_v28, -inf }
0x1d9c   :  { %10925 = vrot.lane.b32.xlu1 %v12629_v7, %s11541_s3  ;;  %v12759_v7 = vadd.f32 %v9937_v60, %v11953_v20 }
0x1d9d   :  { %5755 = vrot.lane.b32.xlu0 %v12637_v12, %s11541_s3  ;;  %v5503_v12 = vsel %vm325_vm1, %v12754_v8, -inf }
0x1da0   :  { %5753 = vrot.lane.b32.xlu1 %v12635_v47, %s11541_s3  ;;  %v12764_v47 = vadd.f32 %v9934_v58, %v11946_v13 }
0x1da2   :  { %v5500_v55 = vsel %vm325_vm1, %v12764_v47, -inf }
0x1da4   :  { %5757 = vrot.lane.b32.xlu1 %v12643_v14, %s11541_s3  ;;  %v5506_v14 = vsel %vm325_vm1, %v12759_v7, -inf }
0x1dbc   :  { %5498 = vmax.xlane.f32.xlu0 %v5497_v48 }
0x1dc0   :  { %5504 = vmax.xlane.f32.xlu0 %v5503_v12 }
0x1dc4   :  { %5507 = vmax.xlane.f32.xlu0 %v5506_v14 }
0x1dc8   :  { %5501 = vmax.xlane.f32.xlu1 %v5500_v55 }
0x1e07   :  { %v5058_v35 = vpop.xlane.xlu1 %5057 }
0x1e08   :  { %v5055_v3 = vpop.xlane.xlu0 %5054 }
0x1e09   :  { %11185 = vrcp.f32 %v5055_v3 }
0x1e0a   :  { %11187 = vrcp.f32 %v5058_v35 }
0x1e0c   :  { %v5061_v36 = vpop.xlane.xlu0 %5060 }
0x1e0d   :  { %11189 = vrcp.f32 %v5061_v36 }
0x1e10   :  { %v5064_v26 = vpop.xlane.xlu1 %5063  ;;  %v10911_v53 = vpop.permute.xlu0 %10910 }
0x1e11   :  { %v10913_v6 = vunpack.i.h.bf16 %v10911_v53  ;;  %v10912_v39 = vunpack.i.l.bf16 %v10911_v53  ;;  %11191 = vrcp.f32 %v5064_v26  ;;  %v8725_v53 = vld [vmem:[%s13251_s6 + $0x20] sm:$0xff] }
0x1e13   :  { %v11186_v30 = vpop.eup %11185  ;;  %v10520_v49 = vpack.c.bf16 %v10913_v6, %v10912_v39 }
0x1e14   :  { %v10916_v34 = vpop.permute.xlu1 %10915  ;;  %v5752_v0 = vpop.permute.xlu0 %5751  ;;  %v5069_v29 = vmul.f32 %v11186_v30, %v11180_v54 }
0x1e15   :  { %v10918_v31 = vunpack.i.h.bf16 %v10916_v34  ;;  %v10917_v63 = vunpack.i.l.bf16 %v10916_v34  ;;  %10521 = vmatprep.subr.bf16.mxu1 %v10520_v49  ;;  %9968 = vmatprep.mubr.msk.f32.mxu0 %vm212_vm0, %v5752_v0  ;;  %v11188_v51 = vpop.eup %11187 }
0x1e16   :  { %10523 = vmatpush3.bf16.msra.mxu1 %v10520_v49  ;;  %9902 = vmatprep.mubr.msk.f32.mxu1 %vm325_vm1, %v5069_v29  ;;  %v5070_v38 = vmul.f32 %v11188_v51, %v11178_v21 }
0x1e17   :  { %v10524_v4 = vpack.c.bf16 %v10918_v31, %v10917_v63  ;;  %v11190_v58 = vpop.eup %11189 }
0x1e18   :  { %v10921_v57 = vpop.permute.xlu1 %10920  ;;  %v5071_v9 = vmul.f32 %v11190_v58, %v11182_v23  ;;  %v5756_v44 = vpop.permute.xlu0 %5755 }
0x1e19   :  { %v10923_v37 = vunpack.i.h.bf16 %v10921_v57  ;;  %v10922_v60 = vunpack.i.l.bf16 %v10921_v57  ;;  %10525 = vmatprep.subr.bf16.mxu1 %v10524_v4 }
0x1e1a   :  { %10527 = vmatpush3.bf16.msra.mxu1 %v10524_v4 }
0x1e1b   :  { %v10548_v61 = vpack.c.bf16 %v10923_v37, %v10922_v60  ;;  %v11192_v62 = vpop.eup %11191 }
0x1e1c   :  { %v10926_v43 = vpop.permute.xlu1 %10925  ;;  %v5072_v15 = vmul.f32 %v11192_v62, %v12730_v27 }
0x1e1d   :  { %v10928_v42 = vunpack.i.h.bf16 %v10926_v43  ;;  %v10927_v10 = vunpack.i.l.bf16 %v10926_v43  ;;  %9903 = vmatmul.mubr.msk.f32.vlgmr.msra.gmra.mrb[64].mxu1 %vm325_vm1, %v5070_v38  ;;  %10550 = vmatprep.subr.msk.bf16.mxu0 %vm11907_vm2, %v10548_v61 }
0x1e1e   :  { %9905 = vmatprep.mubr.msk.f32.mxu1 %vm325_vm1, %v5071_v9  ;;  %10553 = vmatpush3.bf16.xpose.msk.msra.mxu0 %vm11907_vm2, %v10548_v61 }
0x1e1f   :  { %v10554_v46 = vpack.c.bf16 %v10928_v42, %v10927_v10 }
0x1e20   :  { %v5754_v17 = vpop.permute.xlu1 %5753 }
0x1e21   :  { %9906 = vmatmul.mubr.msk.f32.gmra.mrb[66].mxu1 %vm325_vm1, %v5072_v15  ;;  %10556 = vmatprep.subr.msk.bf16.mxu0 %vm11907_vm2, %v10554_v46 }
0x1e24   :  { %v5758_v18 = vpop.permute.xlu1 %5757 }
0x1e26   :  { %10559 = vmatpush3.bf16.xpose.msk.msra.mxu0 %vm11907_vm2, %v10554_v46 }
0x1e2d   :  { %9969 = vmatmul.mubr.msk.f32.vlgmr.msra.gmra.mrb[72].mxu0 %vm212_vm0, %v5754_v17 }
0x1e2e   :  { %9971 = vmatprep.mubr.msk.f32.mxu0 %vm212_vm0, %v5756_v44 }
0x1e31   :  { %9972 = vmatmul.mubr.msk.f32.gmra.mrb[74].mxu0 %vm212_vm0, %v5758_v18 }
0x1e49   :  { %v5499_v19 = vpop.xlane.xlu0 %5498 }
0x1e4a   :  { %v5509_v21 = vsub.f32 %v12751_v28, %v5499_v19 }
0x1e4c   :  { %v5513_v54 = vmul.f32 1.442695, %v5509_v21 }
0x1e4d   :  { %v5505_v22 = vpop.xlane.xlu0 %5504 }
0x1e4e   :  { %11193 = vpow2.f32 %v5513_v54  ;;  %v5511_v52 = vsub.f32 %v12754_v8, %v5505_v22 }
0x1e50   :  { %v5517_v23 = vmul.f32 1.442695, %v5511_v52 }
0x1e51   :  { %v5508_v24 = vpop.xlane.xlu0 %5507 }
0x1e52   :  { %11195 = vpow2.f32 %v5517_v23  ;;  %v5512_v27 = vsub.f32 %v12759_v7, %v5508_v24  ;;  %v8727_v23 = vld [vmem:[%s13251_s6 + $0x30] sm:$0xff] }
0x1e54   :  { %v5519_v14 = vmul.f32 1.442695, %v5512_v27 }
0x1e55   :  { %v5502_v56 = vpop.xlane.xlu1 %5501 }
0x1e56   :  { %v5510_v48 = vsub.f32 %v12764_v47, %v5502_v56  ;;  %v8726_v47 = vld [vmem:[%s13251_s6 + $0x28] sm:$0xff] }
0x1e57   :  { %9908 = vmatprep.subr.mxu1 %v8726_v47 }
0x1e58   :  { %v11194_v12 = vpop.eup %11193  ;;  %v5515_v55 = vmul.f32 1.442695, %v5510_v48  ;;  %9909 = vmatpush3.msra.mxu1 %v8726_v47 }
0x1e59   :  { %v5521_v3 = vsel %vm325_vm1, %v11194_v12, 0.0  ;;  %9916 = vmatprep.subr.mxu1 %v8725_v53 }
0x1e5a   :  { %11197 = vpow2.f32 %v5515_v55  ;;  %5522 = vadd.xlane.f32.xlu0 %v5521_v3 }
0x1e5b   :  { %11199 = vpow2.f32 %v5519_v14 }
0x1e5c   :  { %v11196_v28 = vpop.eup %11195 }
0x1e5d   :  { %v5527_v35 = vsel %vm325_vm1, %v11196_v28, 0.0 }
0x1e5e   :  { %5528 = vadd.xlane.f32.xlu0 %v5527_v35 }
0x1e64   :  { %v11198_v8 = vpop.eup %11197 }
0x1e65   :  { %v5524_v36 = vsel %vm325_vm1, %v11198_v8, 0.0  ;;  %v12794_v26 = vpop.eup %11199 }
0x1e66   :  { %5525 = vadd.xlane.f32.xlu1 %v5524_v36  ;;  %v5530_v7 = vsel %vm325_vm1, %v12794_v26, 0.0 }
0x1e6a   :  { %5531 = vadd.xlane.f32.xlu1 %v5530_v7 }
0x1e74   :  { %10930 = vrot.lane.b32.xlu0 %v12616_v33, %s11540_s22 }
0x1e7b   :  { %10935 = vrot.lane.b32.xlu1 %v12621_v59, %s11540_s22 }
0x1ee7   :  { %v5523_v6 = vpop.xlane.xlu0 %5522 }
0x1ee8   :  { %11201 = vrcp.f32 %v5523_v6 }
0x1eeb   :  { %v5529_v39 = vpop.xlane.xlu0 %5528 }
0x1eef   :  { %v10931_v30 = vpop.permute.xlu0 %10930 }
0x1ef0   :  { %v10933_v49 = vunpack.i.h.bf16 %v10931_v30  ;;  %v10932_v34 = vunpack.i.l.bf16 %v10931_v30  ;;  %v9904_v0 = vpop.f32.mrb[64].mxu1 }
0x1ef1   :  { %v5167_v29 = vpop.f32.mrb[65].mxu1 }
0x1ef2   :  { %v10540_v31 = vpack.c.bf16 %v10933_v49, %v10932_v34  ;;  %9910 = vmatprep.mubr.msk.f32.mxu1 %vm212_vm0, %v5167_v29  ;;  %v11202_v58 = vpop.eup %11201 }
0x1ef3   :  { %v5526_v63 = vpop.xlane.xlu1 %5525  ;;  %9911 = vmatmul.mubr.msk.f32.vlgmr.msra.gmra.mrb[68].mxu1 %vm212_vm0, %v9904_v0  ;;  %v5537_v62 = vmul.f32 %v11202_v58, %v11194_v12 }
0x1ef4   :  { %9917 = vmatpush3.msra.mxu1 %v8725_v53  ;;  %v9907_v4 = vpop.f32.mrb[66].mxu1  ;;  %11203 = vrcp.f32 %v5526_v63 }
0x1ef5   :  { %10541 = vmatprep.subr.bf16.mxu1 %v10540_v31  ;;  %v5177_v51 = vpop.f32.mrb[67].mxu1  ;;  %11205 = vrcp.f32 %v5529_v39 }
0x1ef6   :  { %9913 = vmatprep.mubr.msk.f32.mxu1 %vm212_vm0, %v5177_v51 }
0x1ef7   :  { %v5532_v57 = vpop.xlane.xlu1 %5531  ;;  %9914 = vmatmul.mubr.msk.f32.gmra.mrb[70].mxu1 %vm212_vm0, %v9907_v4 }
0x1ef8   :  { %9918 = vmatprep.mubr.msk.f32.mxu1 %vm212_vm0, %v12713_v40  ;;  %11207 = vrcp.f32 %v5532_v57 }
0x1efb   :  { %v10936_v37 = vpop.permute.xlu1 %10935  ;;  %9919 = vmatmul.mubr.msk.f32.vlgmr.msra.gmra.mrb[68].mxu1 %vm212_vm0, %v12711_v1 }
0x1efc   :  { %v10938_v60 = vunpack.i.h.bf16 %v10936_v37  ;;  %v10937_v38 = vunpack.i.l.bf16 %v10936_v37  ;;  %10543 = vmatpush3.bf16.msra.mxu1 %v10540_v31  ;;  %9921 = vmatprep.mubr.msk.f32.mxu1 %vm212_vm0, %v12717_v5 }
0x1efe   :  { %v10544_v61 = vpack.c.bf16 %v10938_v60, %v10937_v38  ;;  %v11204_v43 = vpop.eup %11203 }
0x1eff   :  { %9922 = vmatmul.mubr.msk.f32.gmra.mrb[70].mxu1 %vm212_vm0, %v12715_v50  ;;  %v11206_v9 = vpop.eup %11205  ;;  %v5538_v10 = vmul.f32 %v11204_v43, %v11198_v8 }
0x1f00   :  { %10545 = vmatprep.subr.bf16.mxu1 %v10544_v61  ;;  %9946 = vmatprep.mubr.msk.f32.mxu1 %vm325_vm1, %v5537_v62  ;;  %v9970_v40 = vpop.f32.mrb[72].mxu0  ;;  %v5539_v17 = vmul.f32 %v11206_v9, %v11196_v28 }
0x1f01   :  { %v5855_v42 = vadd.f32 %v9970_v40, %v11946_v13  ;;  %10547 = vmatpush3.bf16.msra.mxu1 %v10544_v61  ;;  %v5849_v1 = vpop.f32.mrb[73].mxu0 }
0x1f02   :  { %v5850_v46 = vadd.f32 %v5849_v1, %v11944_v11  ;;  %v11208_v15 = vpop.eup %11207  ;;  %9952 = vmatprep.subr.mxu1 %v8727_v23 }
0x1f03   :  { %v5871_v5 = vsel %vm325_vm1, %v5855_v42, -inf  ;;  %v5540_v54 = vmul.f32 %v11208_v15, %v12794_v26 }
0x1f04   :  { %v9973_v44 = vpop.f32.mrb[74].mxu0  ;;  %5872 = vmax.xlane.f32.xlu0 %v5871_v5  ;;  %9947 = vmatmul.mubr.msk.f32.vlgmr.msra.gmra.mrb[72].mxu1 %vm325_vm1, %v5538_v10  ;;  %v5868_v50 = vsel %vm325_vm1, %v5850_v46, -inf }
0x1f05   :  { %v5865_v18 = vadd.f32 %v9973_v44, %v11953_v20  ;;  %v5859_v19 = vpop.f32.mrb[75].mxu0  ;;  %5869 = vmax.xlane.f32.xlu1 %v5868_v50  ;;  %9949 = vmatprep.mubr.msk.f32.mxu1 %vm325_vm1, %v5539_v17 }
0x1f06   :  { %v5860_v21 = vadd.f32 %v5859_v19, %v11949_v16  ;;  %9953 = vmatpush3.msra.mxu1 %v8727_v23  ;;  %v12859_v19 = vld [vmem:[#allocation2] sm:$0xff] }
0x1f07   :  { %v5877_v22 = vsel %vm325_vm1, %v5865_v18, -inf }
0x1f08   :  { %9950 = vmatmul.mubr.msk.f32.gmra.mrb[74].mxu1 %vm325_vm1, %v5540_v54  ;;  %v5874_v52 = vsel %vm325_vm1, %v5860_v21, -inf }
0x1f09   :  { %5875 = vmax.xlane.f32.xlu0 %v5874_v52  ;;  %5878 = vmax.xlane.f32.xlu1 %v5877_v22 }
0x1f91   :  { %v5873_v24 = vpop.xlane.xlu0 %5872 }
0x1f92   :  { %v5881_v27 = vsub.f32 %v5855_v42, %v5873_v24  ;;  %v5870_v56 = vpop.xlane.xlu1 %5869  ;;  %v8728_v42 = vld [vmem:[%s13251_s6 + $0x38] sm:$0xff] }
0x1f93   :  { %v5880_v48 = vsub.f32 %v5850_v46, %v5870_v56 }
0x1f94   :  { %v5886_v12 = vmul.f32 1.442695, %v5881_v27 }
0x1f95   :  { %v5884_v14 = vmul.f32 1.442695, %v5880_v48 }
0x1f96   :  { %11209 = vpow2.f32 %v5886_v12  ;;  %v5879_v55 = vpop.xlane.xlu1 %5878  ;;  %v5876_v3 = vpop.xlane.xlu0 %5875 }
0x1f97   :  { %11211 = vpow2.f32 %v5884_v14  ;;  %v5883_v28 = vsub.f32 %v5865_v18, %v5879_v55  ;;  %v5882_v35 = vsub.f32 %v5860_v21, %v5876_v3  ;;  %v8794_v21 = vld [vmem:[%s13252_s7 + $0x1] ss:$0 sm:$0xff] }
0x1f99   :  { %v5890_v8 = vmul.f32 1.442695, %v5883_v28  ;;  %v5888_v36 = vmul.f32 1.442695, %v5882_v35 }
0x1f9b   :  { %11213 = vpow2.f32 %v5890_v8 }
0x1f9c   :  { %11215 = vpow2.f32 %v5888_v36 }
0x1fa0   :  { %v11210_v26 = vpop.eup %11209 }
0x1fa1   :  { %v11212_v7 = vpop.eup %11211  ;;  %v5895_v47 = vsel %vm325_vm1, %v11210_v26, 0.0 }
0x1fa2   :  { %5896 = vadd.xlane.f32.xlu1 %v5895_v47  ;;  %v5892_v53 = vsel %vm325_vm1, %v11212_v7, 0.0 }
0x1fa3   :  { %5893 = vadd.xlane.f32.xlu0 %v5892_v53 }
0x1fa5   :  { %v11214_v6 = vpop.eup %11213 }
0x1fa6   :  { %v11216_v39 = vpop.eup %11215  ;;  %v5901_v30 = vsel %vm325_vm1, %v11214_v6, 0.0 }
0x1fa7   :  { %5902 = vadd.xlane.f32.xlu1 %v5901_v30  ;;  %v5898_v49 = vsel %vm325_vm1, %v11216_v39, 0.0 }
0x1fa8   :  { %5899 = vadd.xlane.f32.xlu0 %v5898_v49 }
0x1fb8   :  { %10945 = vrot.lane.b32.xlu1 %v12621_v59, %s11541_s3 }
0x1fbe   :  { %10940 = vrot.lane.b32.xlu0 %v12616_v33, %s11541_s3 }
0x1fd7   :  { %v9948_v34 = vpop.f32.mrb[72].mxu1 }
0x1fd8   :  { %v5631_v0 = vpop.f32.mrb[73].mxu1 }
0x1fd9   :  { %9954 = vmatprep.mubr.msk.f32.mxu1 %vm212_vm0, %v5631_v0 }
0x1fda   :  { %9955 = vmatmul.mubr.msk.f32.vlgmr.msra.gmra.mrb[68].mxu1 %vm212_vm0, %v9948_v34 }
0x1fdb   :  { %v9951_v29 = vpop.f32.mrb[74].mxu1 }
0x1fdc   :  { %v5641_v31 = vpop.f32.mrb[75].mxu1 }
0x1fdd   :  { %9957 = vmatprep.mubr.msk.f32.mxu1 %vm212_vm0, %v5641_v31 }
0x1fde   :  { %9958 = vmatmul.mubr.msk.f32.gmra.mrb[70].mxu1 %vm212_vm0, %v9951_v29 }
0x202f   :  { %v5897_v63 = vpop.xlane.xlu1 %5896 }
0x2030   :  { %v5894_v4 = vpop.xlane.xlu0 %5893 }
0x2031   :  { %11217 = vrcp.f32 %v5894_v4 }
0x2032   :  { %11219 = vrcp.f32 %v5897_v63 }
0x2034   :  { %v5903_v51 = vpop.xlane.xlu1 %5902 }
0x2035   :  { %v5900_v59 = vpop.xlane.xlu0 %5899 }
0x2036   :  { %11221 = vrcp.f32 %v5900_v59 }
0x2037   :  { %11223 = vrcp.f32 %v5903_v51 }
0x2038   :  { %v10946_v33 = vpop.permute.xlu1 %10945 }
0x2039   :  { %v10941_v57 = vpop.permute.xlu0 %10940  ;;  %v10948_v58 = vunpack.i.h.bf16 %v10946_v33  ;;  %v10947_v37 = vunpack.i.l.bf16 %v10946_v33  ;;  %v6213_v33 = vld [vmem:[#allocation4 + $0x60] sm:$0xff] }
0x203a   :  { %v10943_v60 = vunpack.i.h.bf16 %v10941_v57  ;;  %v10942_v38 = vunpack.i.l.bf16 %v10941_v57  ;;  %v6214_v57 = vld [vmem:[#allocation4 + $0x68] sm:$0xff] }
0x203b   :  { %v11218_v61 = vpop.eup %11217  ;;  %v10564_v9 = vpack.c.bf16 %v10948_v58, %v10947_v37  ;;  %v10568_v58 = vpack.c.bf16 %v6214_v57, %v6213_v33  ;;  %v6215_v37 = vld [vmem:[#allocation4 + $0x70] sm:$0xff] }
0x203c   :  { %v10560_v62 = vpack.c.bf16 %v10943_v60, %v10942_v38  ;;  %v5908_v43 = vmul.f32 %v11218_v61, %v11212_v7  ;;  %v11220_v40 = vpop.eup %11219  ;;  %v6216_v60 = vld [vmem:[#allocation4 + $0x78] sm:$0xff]  ;;  %v6323_v61 = vld [vmem:[#allocation4 + $0x80] sm:$0xff] }
0x203d   :  { %v5909_v10 = vmul.f32 %v11220_v40, %v11210_v26  ;;  %10569 = vmatprep.subr.bf16.mxu0 %v10568_v58  ;;  %v10572_v38 = vpack.c.bf16 %v6216_v60, %v6215_v37 }
0x203e   :  { %10561 = vmatprep.subr.bf16.mxu1 %v10560_v62  ;;  %9982 = vmatprep.mubr.msk.f32.mxu1 %vm325_vm1, %v5908_v43 }
0x203f   :  { %10563 = vmatpush3.bf16.msra.mxu1 %v10560_v62  ;;  %10571 = vmatpush3.bf16.msra.mxu0 %v10568_v58  ;;  %v6324_v62 = vld [vmem:[#allocation4 + $0x88] sm:$0xff] }
0x2040   :  { %10565 = vmatprep.subr.bf16.mxu1 %v10564_v9  ;;  %v11222_v1 = vpop.eup %11221  ;;  %10573 = vmatprep.subr.bf16.mxu0 %v10572_v38  ;;  %v10576_v43 = vpack.c.bf16 %v6324_v62, %v6323_v61 }
0x2041   :  { %v11224_v46 = vpop.eup %11223  ;;  %v5910_v15 = vmul.f32 %v11222_v1, %v11216_v39 }
0x2042   :  { %v5911_v5 = vmul.f32 %v11224_v46, %v11214_v6 }
0x2043   :  { %10567 = vmatpush3.bf16.msra.mxu1 %v10564_v9  ;;  %10575 = vmatpush3.bf16.msra.mxu0 %v10572_v38 }
0x2044   :  { %9988 = vmatprep.subr.mxu1 %v8728_v42  ;;  %10577 = vmatprep.subr.bf16.mxu0 %v10576_v43 }
0x2046   :  { %9983 = vmatmul.mubr.msk.f32.vlgmr.msra.gmra.mrb[76].mxu1 %vm325_vm1, %v5909_v10 }
0x2047   :  { %9985 = vmatprep.mubr.msk.f32.mxu1 %vm325_vm1, %v5910_v15  ;;  %9989 = vmatpush3.msra.mxu1 %v8728_v42 }
0x204a   :  { %9986 = vmatmul.mubr.msk.f32.gmra.mrb[78].mxu1 %vm325_vm1, %v5911_v5 }
0x2119   :  { %v9984_v17 = vpop.f32.mrb[76].mxu1 }
0x211a   :  { %v6002_v44 = vpop.f32.mrb[77].mxu1 }
0x211b   :  { %9990 = vmatprep.mubr.msk.f32.mxu1 %vm212_vm0, %v6002_v44 }
0x211c   :  { %9991 = vmatmul.mubr.msk.f32.vlgmr.msra.gmra.mrb[68].mxu1 %vm212_vm0, %v9984_v17 }
0x211d   :  { %v9987_v50 = vpop.f32.mrb[78].mxu1 }
0x211e   :  { %v6012_v18 = vpop.f32.mrb[79].mxu1 }
0x211f   :  { %9993 = vmatprep.mubr.msk.f32.mxu1 %vm212_vm0, %v6012_v18 }
0x2120   :  { %9994 = vmatmul.mubr.msk.f32.gmra.mrb[70].mxu1 %vm212_vm0, %v9987_v50 }
0x2121   :  { %10032 = vmatprep.mubr.msk.f32.mxu1 %vm325_vm1, %v12859_v19 }
0x21ef   :  { %v9992_v54 = vpop.f32.mrb[68].mxu1 }
0x21f0   :  { %v6129_v22 = vadd.f32 %v9992_v54, %v8794_v21  ;;  %v6099_v52 = vpop.f32.mrb[69].mxu1  ;;  %v8795_v54 = vld [vmem:[#allocation12 + $0x3] ss:$0 sm:$0xff] }
0x21f1   :  { %v6128_v23 = vadd.f32 %v8794_v21, %v6099_v52 }
0x21f2   :  { %v6133_v24 = vadd.f32 %v6129_v22, %v12575_v2 }
0x21f3   :  { %v6132_v27 = vadd.f32 %v6128_v23, %v12572_v32  ;;  %v9995_v56 = vpop.f32.mrb[70].mxu1 }
0x21f4   :  { %v6131_v48 = vadd.f32 %v9995_v56, %v8794_v21  ;;  %v6109_v12 = vpop.f32.mrb[71].mxu1  ;;  %v6143_v14 = vsel %vm325_vm1, %v6133_v24, 0.0 }
0x21f5   :  { %v6130_v55 = vadd.f32 %v8794_v21, %v6109_v12  ;;  %6144 = vadd.xlane.f32.xlu0 %v6143_v14  ;;  %v6140_v3 = vsel %vm325_vm1, %v6132_v27, 0.0  ;;  %v6326_v12 = vld [vmem:[#allocation4 + $0x98] sm:$0xff] }
0x21f6   :  { %v6135_v28 = vadd.f32 %v6131_v48, %v12588_v45  ;;  %6141 = vadd.xlane.f32.xlu1 %v6140_v3  ;;  %v6325_v48 = vld [vmem:[#allocation4 + $0x90] sm:$0xff] }
0x21f7   :  { %v6134_v35 = vadd.f32 %v6130_v55, %v12586_v25 }
0x21f8   :  { %v6149_v8 = vsel %vm325_vm1, %v6135_v28, 0.0 }
0x21f9   :  { %v6146_v2 = vsel %vm325_vm1, %v6134_v35, 0.0 }
0x21fa   :  { %6150 = vadd.xlane.f32.xlu1 %v6149_v8  ;;  %6147 = vadd.xlane.f32.xlu0 %v6146_v2  ;;  %v10580_v2 = vpack.c.bf16 %v6326_v12, %v6325_v48 }
0x2282   :  { %v6145_v32 = vpop.xlane.xlu0 %6144 }
0x2283   :  { %v6153_v36 = vmul.f32 0.03125, %v6145_v32  ;;  %v6142_v26 = vpop.xlane.xlu1 %6141 }
0x2284   :  { %v6152_v7 = vmul.f32 0.03125, %v6142_v26 }
0x2285   :  { %v6157_v47 = vsub.f32 %v6133_v24, %v6153_v36  ;;  %v8796_v24 = vld [vmem:[#allocation13 + $0x3] ss:$0 sm:$0xff] }
0x2286   :  { %v6156_v53 = vsub.f32 %v6132_v27, %v6152_v7 }
0x2287   :  { %v6151_v6 = vpop.xlane.xlu1 %6150  ;;  %v6148_v39 = vpop.xlane.xlu0 %6147  ;;  %v6161_v30 = vmul.f32 %v6157_v47, %v6157_v47 }
0x2288   :  { %v6155_v49 = vmul.f32 0.03125, %v6151_v6  ;;  %v6154_v45 = vmul.f32 0.03125, %v6148_v39  ;;  %v6160_v34 = vmul.f32 %v6156_v53, %v6156_v53  ;;  %v11316_v6 = vld [vmem:[#allocation2 + $0x18] sm:$0xff]  ;;  %v8797_v39 = vld [vmem:[#allocation6 + $0x3] ss:$0 sm:$0xff] }
0x2289   :  { %v6167_v25 = vsel %vm325_vm1, %v6161_v30, 0.0 }
0x228a   :  { %v6159_v0 = vsub.f32 %v6135_v28, %v6155_v49  ;;  %v6158_v29 = vsub.f32 %v6134_v35, %v6154_v45  ;;  %6168 = vadd.xlane.f32.xlu1 %v6167_v25  ;;  %v6164_v31 = vsel %vm325_vm1, %v6160_v34, 0.0 }
0x228b   :  { %6165 = vadd.xlane.f32.xlu0 %v6164_v31 }
0x228c   :  { %v6163_v63 = vmul.f32 %v6159_v0, %v6159_v0  ;;  %v6162_v4 = vmul.f32 %v6158_v29, %v6158_v29 }
0x228e   :  { %v6173_v51 = vsel %vm325_vm1, %v6163_v63, 0.0  ;;  %v6170_v59 = vsel %vm325_vm1, %v6162_v4, 0.0 }
0x228f   :  { %6174 = vadd.xlane.f32.xlu1 %v6173_v51  ;;  %6171 = vadd.xlane.f32.xlu0 %v6170_v59 }
0x2317   :  { %v6169_v9 = vpop.xlane.xlu1 %6168 }
0x2318   :  { %v6177_v40 = vmul.f32 0.03125, %v6169_v9  ;;  %v6166_v42 = vpop.xlane.xlu0 %6165  ;;  %v6422_v9 = vld [vmem:[#allocation4 + $0xa8] sm:$0xff] }
0x2319   :  { %v6176_v1 = vmul.f32 0.03125, %v6166_v42 }
0x231a   :  { %v6181_v10 = vadd.f32 1e-05, %v6177_v40  ;;  %v6423_v40 = vld [vmem:[#allocation4 + $0xb0] sm:$0xff] }
0x231b   :  { %v6180_v46 = vadd.f32 1e-05, %v6176_v1  ;;  %v6424_v1 = vld [vmem:[#allocation4 + $0xb8] sm:$0xff] }
0x231c   :  { %11225 = vrsqrt.f32 %v6181_v10  ;;  %v6175_v15 = vpop.xlane.xlu1 %6174  ;;  %v6172_v5 = vpop.xlane.xlu0 %6171  ;;  %v10588_v10 = vpack.c.bf16 %v6424_v1, %v6423_v40 }
0x231d   :  { %11227 = vrsqrt.f32 %v6180_v46  ;;  %v6179_v17 = vmul.f32 0.03125, %v6175_v15  ;;  %v6178_v44 = vmul.f32 0.03125, %v6172_v5 }
0x231f   :  { %v6183_v50 = vadd.f32 1e-05, %v6179_v17  ;;  %v6182_v18 = vadd.f32 1e-05, %v6178_v44 }
0x2321   :  { %11229 = vrsqrt.f32 %v6183_v50 }
0x2322   :  { %11231 = vrsqrt.f32 %v6182_v18 }
0x2326   :  { %v11226_v21 = vpop.eup %11225 }
0x2327   :  { %v11228_v22 = vpop.eup %11227  ;;  %v6189_v52 = vmul.f32 %v11226_v21, %v6157_v47  ;;  %v11314_v47 = vld [vmem:[#allocation2 + $0x8] sm:$0xff] }
0x2328   :  { %v6188_v23 = vmul.f32 %v11228_v22, %v6156_v53  ;;  %v11315_v53 = vld [vmem:[#allocation2 + $0x10] sm:$0xff] }
0x2329   :  { %v6199_v27 = vmul.f32 %v8795_v54, %v6189_v52 }
0x232a   :  { %v6198_v56 = vmul.f32 %v8795_v54, %v6188_v23 }
0x232b   :  { %v11230_v14 = vpop.eup %11229  ;;  %v12880_v35 = vadd.f32 %v8796_v24, %v6199_v27 }
0x232c   :  { %v11232_v55 = vpop.eup %11231  ;;  %v12878_v3 = vadd.f32 %v8796_v24, %v6198_v56  ;;  %v6191_v28 = vmul.f32 %v11230_v14, %v6159_v0 }
0x232d   :  { %v6190_v8 = vmul.f32 %v11232_v55, %v6158_v29 }
0x232e   :  { %10004 = vmatprep.mubr.msk.f32.mxu0 %vm325_vm1, %v12878_v3  ;;  %v6201_v32 = vmul.f32 %v8795_v54, %v6191_v28 }
0x232f   :  { %10005 = vmatmul.mubr.msk.f32.vlgmr.msra.gmra.mrb[76].mxu0 %vm325_vm1, %v12880_v35  ;;  %v6200_v36 = vmul.f32 %v8795_v54, %v6190_v8 }
0x2330   :  { %10579 = vmatpush3.bf16.msra.mxu0 %v10576_v43  ;;  %v12886_v26 = vadd.f32 %v8796_v24, %v6201_v32  ;;  %v6421_v43 = vld [vmem:[#allocation4 + $0xa0] sm:$0xff] }
0x2331   :  { %v12888_v7 = vadd.f32 %v8796_v24, %v6200_v36  ;;  %10581 = vmatprep.subr.bf16.mxu0 %v10580_v2  ;;  %v10584_v42 = vpack.c.bf16 %v6422_v9, %v6421_v43  ;;  %v8807_v24 = vld [vmem:[#allocation6 + $0x5] ss:$0 sm:$0xff] }
0x2333   :  { %10007 = vmatprep.mubr.msk.f32.mxu0 %vm325_vm1, %v12888_v7  ;;  %10585 = vmatprep.subr.bf16.mxu1 %v10584_v42 }
0x2334   :  { %10008 = vmatmul.mubr.msk.f32.gmra.mrb[78].mxu0 %vm325_vm1, %v12886_v26  ;;  %10587 = vmatpush3.bf16.msra.mxu1 %v10584_v42 }
0x2335   :  { %10583 = vmatpush3.bf16.msra.mxu0 %v10580_v2  ;;  %10018 = vmatprep.mubr.msk.f32.mxu0 %vm325_vm1, %v12859_v19  ;;  %v8802_v19 = vld [vmem:[#allocation6 + $0x4] ss:$0 sm:$0xff] }
0x2336   :  { %10589 = vmatprep.subr.bf16.mxu1 %v10588_v10 }
0x2338   :  { %10019 = vmatmul.mubr.msk.f32.vlgmr.msra.gmra.mrb[80].mxu0 %vm325_vm1, %v11314_v47  ;;  %10591 = vmatpush3.bf16.msra.mxu1 %v10588_v10 }
0x2339   :  { %10021 = vmatprep.mubr.msk.f32.mxu0 %vm325_vm1, %v11315_v53 }
0x233b   :  { %10033 = vmatmul.mubr.msk.f32.vlgmr.msra.gmra.mrb[80].mxu1 %vm325_vm1, %v11314_v47 }
0x233c   :  { %10022 = vmatmul.mubr.msk.f32.gmra.mrb[82].mxu0 %vm325_vm1, %v11316_v6  ;;  %10035 = vmatprep.mubr.msk.f32.mxu1 %vm325_vm1, %v11315_v53 }
0x233f   :  { %10036 = vmatmul.mubr.msk.f32.gmra.mrb[82].mxu1 %vm325_vm1, %v11316_v6 }
0x2402   :  { %v10006_v30 = vpop.f32.mrb[76].mxu0 }
0x2403   :  { %v6303_v49 = vpop.f32.mrb[77].mxu0  ;;  %v12915_v38 = vadd.f32 %v10006_v30, %v8797_v39 }
0x2404   :  { %v12899_v45 = vadd.f32 %v8797_v39, %v6303_v49 }
0x2406   :  { %10046 = vmatprep.mubr.msk.f32.mxu0 %vm212_vm0, %v12899_v45 }
0x2407   :  { %v10009_v34 = vpop.f32.mrb[78].mxu0 }
0x2408   :  { %v6313_v25 = vpop.f32.mrb[79].mxu0  ;;  %v12923_v62 = vadd.f32 %v10009_v34, %v8797_v39 }
0x2409   :  { %v12917_v61 = vadd.f32 %v8797_v39, %v6313_v25 }
0x240b   :  { %v10020_v0 = vpop.f32.mrb[80].mxu0 }
0x240c   :  { %v6407_v29 = vadd.f32 %v10020_v0, %v8802_v19  ;;  %v6401_v31 = vpop.f32.mrb[81].mxu0 }
0x240d   :  { %v6402_v63 = vadd.f32 %v8802_v19, %v6401_v31 }
0x240e   :  { %v10034_v27 = vpop.f32.mrb[80].mxu1 }
0x240f   :  { %v10592_v4 = vpack.c.bf16 %v6407_v29, %v6402_v63  ;;  %v10023_v51 = vpop.f32.mrb[82].mxu0  ;;  %v12903_v59 = vpack.i.bf16 %v6407_v29, %v6402_v63  ;;  %v12938_v56 = vadd.f32 %v10034_v27, %v8807_v24  ;;  %v6499_v48 = vpop.f32.mrb[81].mxu1 }
0x2410   :  { %v6417_v33 = vadd.f32 %v10023_v51, %v8802_v19  ;;  %v6411_v57 = vpop.f32.mrb[83].mxu0  ;;  %v12940_v12 = vadd.f32 %v8807_v24, %v6499_v48 }
0x2411   :  { %10594 = vmatprep.subr.msk.bf16.mxu0 %vm11907_vm2, %v10592_v4  ;;  %v6412_v58 = vadd.f32 %v8802_v19, %v6411_v57 }
0x2412   :  { %10597 = vmatpush3.bf16.xpose.msk.msra.mxu0 %vm11907_vm2, %v10592_v4  ;;  %v10037_v14 = vpop.f32.mrb[82].mxu1  ;;  %v10604_v55 = vpack.c.bf16 %v12938_v56, %v12940_v12 }
0x2413   :  { %v10598_v37 = vpack.c.bf16 %v6417_v33, %v6412_v58  ;;  %v12909_v60 = vpack.i.bf16 %v6417_v33, %v6412_v58  ;;  %v6515_v28 = vadd.f32 %v10037_v14, %v8807_v24  ;;  %v6509_v8 = vpop.f32.mrb[83].mxu1 }
0x2414   :  { %v6510_v2 = vadd.f32 %v8807_v24, %v6509_v8  ;;  %10605 = vmatprep.subr.bf16.mxu1 %v10604_v55 }
0x2415   :  { %10600 = vmatprep.subr.msk.bf16.mxu0 %vm11907_vm2, %v10598_v37  ;;  %10607 = vmatpush3.bf16.msra.mxu1 %v10604_v55 }
0x2416   :  { %v12948_v43 = vpack.i.bf16 %v6515_v28, %v6510_v2 }
0x241a   :  { %10603 = vmatpush3.bf16.xpose.msk.msra.mxu0 %vm11907_vm2, %v10598_v37  ;;  %v10608_v37 = vpack.c.bf16 %v6515_v28, %v6510_v2 }
0x241c   :  { %10609 = vmatprep.subr.bf16.mxu1 %v10608_v37 }
0x241d   :  { %10611 = vmatpush3.bf16.msra.mxu1 %v10608_v37 }
0x2421   :  { %10047 = vmatmul.mubr.msk.f32.vlgmr.msra.gmra.mrb[84].mxu0 %vm212_vm0, %v12915_v38 }
0x2422   :  { %10049 = vmatprep.mubr.msk.f32.mxu0 %vm212_vm0, %v12917_v61 }
0x2425   :  { %10050 = vmatmul.mubr.msk.f32.gmra.mrb[86].mxu0 %vm212_vm0, %v12923_v62 }
0x24f4   :  { %v10048_v46 = vpop.f32.mrb[84].mxu0 }
0x24f5   :  { %v6621_v15 = vadd.f32 %v10048_v46, %v11946_v13  ;;  %v6615_v5 = vpop.f32.mrb[85].mxu0 }
0x24f6   :  { %v6616_v17 = vadd.f32 %v6615_v5, %v11944_v11 }
0x24f7   :  { %v6637_v44 = vsel %vm325_vm1, %v6621_v15, -inf }
0x24f8   :  { %6638 = vmax.xlane.f32.xlu1 %v6637_v44  ;;  %v10051_v50 = vpop.f32.mrb[86].mxu0  ;;  %v6634_v18 = vsel %vm325_vm1, %v6616_v17, -inf }
0x24f9   :  { %v6631_v21 = vadd.f32 %v10051_v50, %v11953_v20  ;;  %6635 = vmax.xlane.f32.xlu0 %v6634_v18  ;;  %v6625_v54 = vpop.f32.mrb[87].mxu0 }
0x24fa   :  { %v6626_v22 = vadd.f32 %v6625_v54, %v11949_v16 }
0x24fb   :  { %v6643_v52 = vsel %vm325_vm1, %v6631_v21, -inf }
0x24fc   :  { %6644 = vmax.xlane.f32.xlu1 %v6643_v52  ;;  %v6640_v23 = vsel %vm325_vm1, %v6626_v22, -inf }
0x24fd   :  { %6641 = vmax.xlane.f32.xlu0 %v6640_v23 }
0x2585   :  { %v6639_v32 = vpop.xlane.xlu1 %6638 }
0x2586   :  { %v6647_v36 = vsub.f32 %v6621_v15, %v6639_v32  ;;  %v6636_v47 = vpop.xlane.xlu0 %6635 }
0x2587   :  { %v6646_v53 = vsub.f32 %v6616_v17, %v6636_v47 }
0x2588   :  { %v6652_v6 = vmul.f32 1.442695, %v6647_v36 }
0x2589   :  { %v6650_v39 = vmul.f32 1.442695, %v6646_v53  ;;  %v6645_v30 = vpop.xlane.xlu1 %6644 }
0x258a   :  { %11233 = vpow2.f32 %v6652_v6  ;;  %v6649_v49 = vsub.f32 %v6631_v21, %v6645_v30  ;;  %v6642_v34 = vpop.xlane.xlu0 %6641 }
0x258b   :  { %11235 = vpow2.f32 %v6650_v39  ;;  %v6648_v25 = vsub.f32 %v6626_v22, %v6642_v34 }
0x258c   :  { %v6656_v19 = vmul.f32 1.442695, %v6649_v49 }
0x258d   :  { %v6654_v0 = vmul.f32 1.442695, %v6648_v25 }
0x258e   :  { %11237 = vpow2.f32 %v6656_v19 }
0x258f   :  { %11239 = vpow2.f32 %v6654_v0 }
0x2594   :  { %v11234_v29 = vpop.eup %11233 }
0x2595   :  { %v11236_v31 = vpop.eup %11235  ;;  %v6661_v63 = vsel %vm325_vm1, %v11234_v29, 0.0 }
0x2596   :  { %6662 = vadd.xlane.f32.xlu1 %v6661_v63  ;;  %v6658_v4 = vsel %vm325_vm1, %v11236_v31, 0.0 }
0x2597   :  { %6659 = vadd.xlane.f32.xlu0 %v6658_v4 }
0x2598   :  { %v11238_v51 = vpop.eup %11237 }
0x2599   :  { %v11240_v33 = vpop.eup %11239  ;;  %v6667_v57 = vsel %vm325_vm1, %v11238_v51, 0.0 }
0x259a   :  { %6668 = vadd.xlane.f32.xlu1 %v6667_v57  ;;  %v6664_v58 = vsel %vm325_vm1, %v11240_v33, 0.0 }
0x259b   :  { %6665 = vadd.xlane.f32.xlu0 %v6664_v58 }
0x25ab   :  { %10955 = vrot.lane.b32.xlu1 %v12909_v60, %s11539_s0 }
0x25af   :  { %6775 = vrot.lane.b32.xlu1 %v12899_v45, %s11539_s0 }
0x25b1   :  { %10950 = vrot.lane.b32.xlu0 %v12903_v59, %s11539_s0 }
0x25b3   :  { %6777 = vrot.lane.b32.xlu1 %v12915_v38, %s11539_s0 }
0x25b5   :  { %6779 = vrot.lane.b32.xlu0 %v12917_v61, %s11539_s0 }
0x25b7   :  { %6781 = vrot.lane.b32.xlu1 %v12923_v62, %s11539_s0 }
0x25b9   :  { %10960 = vrot.lane.b32.xlu0 %v12903_v59, %s11540_s22 }
0x25bb   :  { %10965 = vrot.lane.b32.xlu1 %v12909_v60, %s11540_s22 }
0x25bd   :  { %7243 = vrot.lane.b32.xlu0 %v12899_v45, %s11540_s22 }
0x25bf   :  { %7245 = vrot.lane.b32.xlu1 %v12915_v38, %s11540_s22 }
0x25c1   :  { %7247 = vrot.lane.b32.xlu0 %v12917_v61, %s11540_s22 }
0x25c3   :  { %7249 = vrot.lane.b32.xlu1 %v12923_v62, %s11540_s22 }
0x2623   :  { %v6663_v9 = vpop.xlane.xlu1 %6662 }
0x2624   :  { %11241 = vrcp.f32 %v6663_v9  ;;  %v6660_v40 = vpop.xlane.xlu0 %6659 }
0x2625   :  { %11243 = vrcp.f32 %v6660_v40 }
0x2627   :  { %v6669_v42 = vpop.xlane.xlu1 %6668 }
0x2628   :  { %11245 = vrcp.f32 %v6669_v42  ;;  %v6666_v1 = vpop.xlane.xlu0 %6665 }
0x2629   :  { %11247 = vrcp.f32 %v6666_v1 }
0x262b   :  { %v10956_v10 = vpop.permute.xlu1 %10955 }
0x262c   :  { %v10951_v46 = vpop.permute.xlu0 %10950  ;;  %v10958_v50 = vunpack.i.h.bf16 %v10956_v10  ;;  %v10957_v18 = vunpack.i.l.bf16 %v10956_v10 }
0x262d   :  { %v10953_v15 = vunpack.i.h.bf16 %v10951_v46  ;;  %v10952_v5 = vunpack.i.l.bf16 %v10951_v46 }
0x262e   :  { %v11242_v17 = vpop.eup %11241  ;;  %v10618_v48 = vpack.c.bf16 %v10958_v50, %v10957_v18 }
0x262f   :  { %v11244_v44 = vpop.eup %11243  ;;  %v10612_v21 = vpack.c.bf16 %v10953_v15, %v10952_v5  ;;  %v6776_v54 = vpop.permute.xlu1 %6775  ;;  %v6675_v23 = vmul.f32 %v11242_v17, %v11234_v29 }
0x2630   :  { %v6780_v22 = vpop.permute.xlu0 %6779  ;;  %v6674_v52 = vmul.f32 %v11244_v44, %v11236_v31 }
0x2631   :  { %10614 = vmatprep.subr.msk.bf16.mxu1 %vm11907_vm2, %v10612_v21 }
0x2632   :  { %v11246_v24 = vpop.eup %11245  ;;  %10060 = vmatprep.mubr.msk.f32.mxu1 %vm325_vm1, %v6674_v52 }
0x2633   :  { %v11248_v27 = vpop.eup %11247  ;;  %v6778_v14 = vpop.permute.xlu1 %6777  ;;  %10061 = vmatmul.mubr.msk.f32.vlgmr.msra.gmra.mrb[84].mxu1 %vm325_vm1, %v6675_v23  ;;  %v6677_v8 = vmul.f32 %v11246_v24, %v11238_v51 }
0x2634   :  { %10617 = vmatpush3.bf16.xpose.msk.msra.mxu1 %vm11907_vm2, %v10612_v21  ;;  %v10961_v55 = vpop.permute.xlu0 %10960  ;;  %v6676_v28 = vmul.f32 %v11248_v27, %v11240_v33 }
0x2635   :  { %10620 = vmatprep.subr.msk.bf16.mxu1 %vm11907_vm2, %v10618_v48  ;;  %v10963_v2 = vunpack.i.h.bf16 %v10961_v55  ;;  %v10962_v32 = vunpack.i.l.bf16 %v10961_v55 }
0x2636   :  { %10063 = vmatprep.mubr.msk.f32.mxu1 %vm325_vm1, %v6676_v28 }
0x2637   :  { %v6782_v36 = vpop.permute.xlu1 %6781  ;;  %10064 = vmatmul.mubr.msk.f32.gmra.mrb[86].mxu1 %vm325_vm1, %v6677_v8  ;;  %v10632_v47 = vpack.c.bf16 %v10963_v2, %v10962_v32 }
0x2638   :  { %10074 = vmatprep.mubr.msk.f32.mxu1 %vm212_vm0, %v6776_v54  ;;  %v7244_v49 = vpop.permute.xlu0 %7243 }
0x263b   :  { %v10966_v53 = vpop.permute.xlu1 %10965 }
0x263c   :  { %10623 = vmatpush3.bf16.xpose.msk.msra.mxu1 %vm11907_vm2, %v10618_v48  ;;  %v10968_v6 = vunpack.i.h.bf16 %v10966_v53  ;;  %v10967_v39 = vunpack.i.l.bf16 %v10966_v53  ;;  %v7248_v25 = vpop.permute.xlu0 %7247 }
0x263d   :  { %10634 = vmatprep.subr.msk.bf16.mxu1 %vm11907_vm2, %v10632_v47 }
0x263e   :  { %v10638_v30 = vpack.c.bf16 %v10968_v6, %v10967_v39  ;;  %v13030_v39 = vpack.i.bf16 %v12938_v56, %v12940_v12 }
0x263f   :  { %v7246_v34 = vpop.permute.xlu1 %7245 }
0x2643   :  { %10075 = vmatmul.mubr.msk.f32.vlgmr.msra.gmra.mrb[88].mxu1 %vm212_vm0, %v6778_v14  ;;  %v7250_v19 = vpop.permute.xlu1 %7249 }
0x2644   :  { %10077 = vmatprep.mubr.msk.f32.mxu1 %vm212_vm0, %v6780_v22  ;;  %10637 = vmatpush3.bf16.xpose.msk.msra.mxu1 %vm11907_vm2, %v10632_v47 }
0x2645   :  { %10640 = vmatprep.subr.msk.bf16.mxu1 %vm11907_vm2, %v10638_v30 }
0x2647   :  { %10078 = vmatmul.mubr.msk.f32.gmra.mrb[90].mxu1 %vm212_vm0, %v6782_v36 }
0x2648   :  { %10118 = vmatprep.mubr.msk.f32.mxu1 %vm212_vm0, %v7244_v49 }
0x264c   :  { %10643 = vmatpush3.bf16.xpose.msk.msra.mxu1 %vm11907_vm2, %v10638_v30 }
0x2653   :  { %10119 = vmatmul.mubr.msk.f32.vlgmr.msra.gmra.mrb[92].mxu1 %vm212_vm0, %v7246_v34 }
0x2654   :  { %10121 = vmatprep.mubr.msk.f32.mxu1 %vm212_vm0, %v7248_v25 }
0x2657   :  { %10122 = vmatmul.mubr.msk.f32.gmra.mrb[94].mxu1 %vm212_vm0, %v7250_v19 }
0x2706   :  { %v13002_v0 = vpop.f32.mrb[84].mxu1 }
0x2707   :  { %v13004_v29 = vpop.f32.mrb[85].mxu1 }
0x270a   :  { %v13006_v31 = vpop.f32.mrb[86].mxu1 }
0x270b   :  { %v13008_v63 = vpop.f32.mrb[87].mxu1 }
0x2716   :  { %v10076_v4 = vpop.f32.mrb[88].mxu1 }
0x2717   :  { %v6879_v51 = vadd.f32 %v10076_v4, %v11946_v13  ;;  %v6873_v33 = vpop.f32.mrb[89].mxu1 }
0x2718   :  { %v6874_v57 = vadd.f32 %v6873_v33, %v11944_v11 }
0x2719   :  { %v6895_v58 = vsel %vm325_vm1, %v6879_v51, -inf }
0x271a   :  { %6896 = vmax.xlane.f32.xlu1 %v6895_v58  ;;  %v10079_v37 = vpop.f32.mrb[90].mxu1  ;;  %v6892_v9 = vsel %vm325_vm1, %v6874_v57, -inf }
0x271b   :  { %v6883_v40 = vpop.f32.mrb[91].mxu1  ;;  %6893 = vmax.xlane.f32.xlu0 %v6892_v9  ;;  %v6889_v1 = vadd.f32 %v10079_v37, %v11953_v20 }
0x271c   :  { %v6884_v42 = vadd.f32 %v6883_v40, %v11949_v16 }
0x271d   :  { %v6901_v46 = vsel %vm325_vm1, %v6889_v1, -inf }
0x271e   :  { %v6898_v10 = vsel %vm325_vm1, %v6884_v42, -inf }
0x271f   :  { %6899 = vmax.xlane.f32.xlu0 %v6898_v10 }
0x2723   :  { %6902 = vmax.xlane.f32.xlu0 %v6901_v46 }
0x2726   :  { %v10120_v15 = vpop.f32.mrb[92].mxu1 }
0x2727   :  { %v7341_v5 = vpop.f32.mrb[93].mxu1 }
0x2728   :  { %v13049_v56 = vadd.f32 %v7341_v5, %v11944_v11 }
0x272a   :  { %v10123_v17 = vpop.f32.mrb[94].mxu1 }
0x272b   :  { %v7351_v44 = vpop.f32.mrb[95].mxu1 }
0x27a7   :  { %v6897_v50 = vpop.xlane.xlu1 %6896 }
0x27a8   :  { %v6905_v18 = vsub.f32 %v6879_v51, %v6897_v50  ;;  %v6894_v21 = vpop.xlane.xlu0 %6893 }
0x27a9   :  { %v6904_v54 = vsub.f32 %v6874_v57, %v6894_v21 }
0x27aa   :  { %v6910_v22 = vmul.f32 1.442695, %v6905_v18 }
0x27ab   :  { %v6908_v52 = vmul.f32 1.442695, %v6904_v54 }
0x27ac   :  { %11249 = vpow2.f32 %v6910_v22  ;;  %v6900_v23 = vpop.xlane.xlu0 %6899 }
0x27ad   :  { %11251 = vpow2.f32 %v6908_v52  ;;  %v6906_v24 = vsub.f32 %v6884_v42, %v6900_v23 }
0x27af   :  { %v6912_v27 = vmul.f32 1.442695, %v6906_v24 }
0x27b0   :  { %v6903_v48 = vpop.xlane.xlu0 %6902 }
0x27b1   :  { %11253 = vpow2.f32 %v6912_v27  ;;  %v6907_v14 = vsub.f32 %v6889_v1, %v6903_v48 }
0x27b3   :  { %v6914_v55 = vmul.f32 1.442695, %v6907_v14 }
0x27b5   :  { %11255 = vpow2.f32 %v6914_v55 }
0x27b6   :  { %v13018_v28 = vpop.eup %11249 }
0x27b7   :  { %v11252_v8 = vpop.eup %11251  ;;  %v6919_v2 = vsel %vm325_vm1, %v13018_v28, 0.0 }
0x27b8   :  { %6920 = vadd.xlane.f32.xlu1 %v6919_v2  ;;  %v6916_v32 = vsel %vm325_vm1, %v11252_v8, 0.0 }
0x27b9   :  { %6917 = vadd.xlane.f32.xlu0 %v6916_v32 }
0x27bb   :  { %v11254_v36 = vpop.eup %11253 }
0x27bc   :  { %v6922_v47 = vsel %vm325_vm1, %v11254_v36, 0.0 }
0x27bd   :  { %6923 = vadd.xlane.f32.xlu0 %v6922_v47 }
0x27bf   :  { %v13024_v53 = vpop.eup %11255 }
0x27c0   :  { %v6925_v6 = vsel %vm325_vm1, %v13024_v53, 0.0 }
0x27c1   :  { %6926 = vadd.xlane.f32.xlu1 %v6925_v6 }
0x27d2   :  { %10975 = vrot.lane.b32.xlu1 %v12948_v43, %s11539_s0 }
0x27d3   :  { %10970 = vrot.lane.b32.xlu0 %v13030_v39, %s11539_s0 }
0x27d6   :  { %10980 = vrot.lane.b32.xlu1 %v12903_v59, %s11541_s3  ;;  %v13052_v59 = vadd.f32 %v7351_v44, %v11949_v16 }
0x27d7   :  { %7614 = vrot.lane.b32.xlu0 %v12899_v45, %s11541_s3  ;;  %v7360_v45 = vsel %vm325_vm1, %v13049_v56, -inf }
0x27da   :  { %10985 = vrot.lane.b32.xlu1 %v12909_v60, %s11541_s3  ;;  %v13057_v60 = vadd.f32 %v10123_v17, %v11953_v20 }
0x27db   :  { %7618 = vrot.lane.b32.xlu0 %v12917_v61, %s11541_s3  ;;  %v7366_v61 = vsel %vm325_vm1, %v13052_v59, -inf }
0x27de   :  { %7616 = vrot.lane.b32.xlu1 %v12915_v38, %s11541_s3  ;;  %v13062_v38 = vadd.f32 %v10120_v15, %v11946_v13 }
0x27e0   :  { %v7363_v12 = vsel %vm325_vm1, %v13062_v38, -inf }
0x27e2   :  { %7620 = vrot.lane.b32.xlu1 %v12923_v62, %s11541_s3  ;;  %v7369_v62 = vsel %vm325_vm1, %v13057_v60, -inf }
0x27fa   :  { %7361 = vmax.xlane.f32.xlu0 %v7360_v45 }
0x27fe   :  { %7367 = vmax.xlane.f32.xlu0 %v7366_v61 }
0x2802   :  { %7370 = vmax.xlane.f32.xlu0 %v7369_v62 }
0x2806   :  { %7364 = vmax.xlane.f32.xlu1 %v7363_v12 }
0x2845   :  { %v6921_v49 = vpop.xlane.xlu1 %6920 }
0x2846   :  { %v6918_v30 = vpop.xlane.xlu0 %6917 }
0x2847   :  { %11257 = vrcp.f32 %v6918_v30 }
0x2848   :  { %11259 = vrcp.f32 %v6921_v49 }
0x284a   :  { %v6924_v34 = vpop.xlane.xlu0 %6923 }
0x284b   :  { %11261 = vrcp.f32 %v6924_v34 }
0x284e   :  { %v6927_v25 = vpop.xlane.xlu1 %6926  ;;  %v10971_v19 = vpop.permute.xlu0 %10970 }
0x284f   :  { %v10973_v4 = vunpack.i.h.bf16 %v10971_v19  ;;  %v10972_v51 = vunpack.i.l.bf16 %v10971_v19  ;;  %11263 = vrcp.f32 %v6927_v25  ;;  %v8812_v25 = vld [vmem:[%s13255_s10 + $0x20] sm:$0xff] }
0x2851   :  { %v11258_v33 = vpop.eup %11257  ;;  %v10624_v57 = vpack.c.bf16 %v10973_v4, %v10972_v51 }
0x2852   :  { %v10976_v58 = vpop.permute.xlu1 %10975  ;;  %v7615_v37 = vpop.permute.xlu0 %7614  ;;  %v6932_v9 = vmul.f32 %v11258_v33, %v11252_v8 }
0x2853   :  { %v10978_v40 = vunpack.i.h.bf16 %v10976_v58  ;;  %v10977_v42 = vunpack.i.l.bf16 %v10976_v58  ;;  %10625 = vmatprep.subr.bf16.mxu0 %v10624_v57  ;;  %10154 = vmatprep.mubr.msk.f32.mxu1 %vm212_vm0, %v7615_v37  ;;  %v11260_v10 = vpop.eup %11259 }
0x2854   :  { %10627 = vmatpush3.bf16.msra.mxu0 %v10624_v57  ;;  %10088 = vmatprep.mubr.msk.f32.mxu0 %vm325_vm1, %v6932_v9  ;;  %v6933_v44 = vmul.f32 %v11260_v10, %v13018_v28 }
0x2855   :  { %v10628_v1 = vpack.c.bf16 %v10978_v40, %v10977_v42  ;;  %v11262_v15 = vpop.eup %11261 }
0x2856   :  { %v10981_v46 = vpop.permute.xlu1 %10980  ;;  %v6934_v54 = vmul.f32 %v11262_v15, %v11254_v36  ;;  %v7619_v48 = vpop.permute.xlu0 %7618 }
0x2857   :  { %v10983_v5 = vunpack.i.h.bf16 %v10981_v46  ;;  %v10982_v17 = vunpack.i.l.bf16 %v10981_v46  ;;  %10629 = vmatprep.subr.bf16.mxu0 %v10628_v1 }
0x2858   :  { %10631 = vmatpush3.bf16.msra.mxu0 %v10628_v1 }
0x2859   :  { %v10652_v50 = vpack.c.bf16 %v10983_v5, %v10982_v17  ;;  %v11264_v18 = vpop.eup %11263 }
0x285a   :  { %v10986_v21 = vpop.permute.xlu1 %10985  ;;  %v6935_v24 = vmul.f32 %v11264_v18, %v13024_v53 }
0x285b   :  { %v10988_v22 = vunpack.i.h.bf16 %v10986_v21  ;;  %v10987_v52 = vunpack.i.l.bf16 %v10986_v21  ;;  %10089 = vmatmul.mubr.msk.f32.vlgmr.msra.gmra.mrb[88].mxu0 %vm325_vm1, %v6933_v44  ;;  %10654 = vmatprep.subr.msk.bf16.mxu1 %vm11907_vm2, %v10652_v50 }
0x285c   :  { %10091 = vmatprep.mubr.msk.f32.mxu0 %vm325_vm1, %v6934_v54  ;;  %10657 = vmatpush3.bf16.xpose.msk.msra.mxu1 %vm11907_vm2, %v10652_v50 }
0x285d   :  { %v10658_v23 = vpack.c.bf16 %v10988_v22, %v10987_v52 }
0x285e   :  { %v7617_v27 = vpop.permute.xlu1 %7616 }
0x285f   :  { %10092 = vmatmul.mubr.msk.f32.gmra.mrb[90].mxu0 %vm325_vm1, %v6935_v24  ;;  %10660 = vmatprep.subr.msk.bf16.mxu1 %vm11907_vm2, %v10658_v23 }
0x2862   :  { %v7621_v14 = vpop.permute.xlu1 %7620 }
0x2864   :  { %10663 = vmatpush3.bf16.xpose.msk.msra.mxu1 %vm11907_vm2, %v10658_v23 }
0x286b   :  { %10155 = vmatmul.mubr.msk.f32.vlgmr.msra.gmra.mrb[96].mxu1 %vm212_vm0, %v7617_v27 }
0x286c   :  { %10157 = vmatprep.mubr.msk.f32.mxu1 %vm212_vm0, %v7619_v48 }
0x286f   :  { %10158 = vmatmul.mubr.msk.f32.gmra.mrb[98].mxu1 %vm212_vm0, %v7621_v14 }
0x2887   :  { %v7362_v55 = vpop.xlane.xlu0 %7361 }
0x2888   :  { %v7372_v28 = vsub.f32 %v13049_v56, %v7362_v55 }
0x288a   :  { %v7376_v8 = vmul.f32 1.442695, %v7372_v28 }
0x288b   :  { %v7368_v2 = vpop.xlane.xlu0 %7367 }
0x288c   :  { %11265 = vpow2.f32 %v7376_v8  ;;  %v7374_v32 = vsub.f32 %v13052_v59, %v7368_v2 }
0x288e   :  { %v7380_v36 = vmul.f32 1.442695, %v7374_v32 }
0x288f   :  { %v7371_v41 = vpop.xlane.xlu0 %7370 }
0x2890   :  { %11267 = vpow2.f32 %v7380_v36  ;;  %v7375_v47 = vsub.f32 %v13057_v60, %v7371_v41 }
0x2892   :  { %v7382_v61 = vmul.f32 1.442695, %v7375_v47 }
0x2893   :  { %v7365_v53 = vpop.xlane.xlu1 %7364 }
0x2894   :  { %v7373_v6 = vsub.f32 %v13062_v38, %v7365_v53  ;;  %v8813_v38 = vld [vmem:[%s13255_s10 + $0x28] sm:$0xff] }
0x2895   :  { %10094 = vmatprep.subr.mxu0 %v8813_v38 }
0x2896   :  { %v11266_v45 = vpop.eup %11265  ;;  %v7378_v62 = vmul.f32 1.442695, %v7373_v6  ;;  %10095 = vmatpush3.msra.mxu0 %v8813_v38 }
0x2897   :  { %v7384_v12 = vsel %vm325_vm1, %v11266_v45, 0.0  ;;  %10102 = vmatprep.subr.mxu0 %v8812_v25 }
0x2898   :  { %11269 = vpow2.f32 %v7378_v62  ;;  %7385 = vadd.xlane.f32.xlu0 %v7384_v12 }
0x2899   :  { %11271 = vpow2.f32 %v7382_v61 }
0x289a   :  { %v11268_v56 = vpop.eup %11267 }
0x289b   :  { %v7390_v30 = vsel %vm325_vm1, %v11268_v56, 0.0 }
0x289c   :  { %7391 = vadd.xlane.f32.xlu0 %v7390_v30 }
0x28a2   :  { %v11270_v59 = vpop.eup %11269 }
0x28a3   :  { %v7387_v49 = vsel %vm325_vm1, %v11270_v59, 0.0  ;;  %v13093_v34 = vpop.eup %11271 }
0x28a4   :  { %7388 = vadd.xlane.f32.xlu1 %v7387_v49  ;;  %v7393_v60 = vsel %vm325_vm1, %v13093_v34, 0.0 }
0x28a8   :  { %7394 = vadd.xlane.f32.xlu1 %v7393_v60 }
0x28b2   :  { %10990 = vrot.lane.b32.xlu0 %v13030_v39, %s11540_s22 }
0x28b9   :  { %10995 = vrot.lane.b32.xlu1 %v12948_v43, %s11540_s22 }
0x2925   :  { %v7386_v19 = vpop.xlane.xlu0 %7385 }
0x2926   :  { %11273 = vrcp.f32 %v7386_v19 }
0x2929   :  { %v7392_v4 = vpop.xlane.xlu0 %7391 }
0x292d   :  { %v10991_v51 = vpop.permute.xlu0 %10990 }
0x292e   :  { %v10993_v33 = vunpack.i.h.bf16 %v10991_v51  ;;  %v10992_v57 = vunpack.i.l.bf16 %v10991_v51  ;;  %v10090_v58 = vpop.f32.mrb[88].mxu0 }
0x292f   :  { %v7030_v37 = vpop.f32.mrb[89].mxu0 }
0x2930   :  { %v10644_v9 = vpack.c.bf16 %v10993_v33, %v10992_v57  ;;  %10096 = vmatprep.mubr.msk.f32.mxu0 %vm212_vm0, %v7030_v37  ;;  %v11274_v46 = vpop.eup %11273 }
0x2931   :  { %v7389_v40 = vpop.xlane.xlu1 %7388  ;;  %10097 = vmatmul.mubr.msk.f32.vlgmr.msra.gmra.mrb[92].mxu0 %vm212_vm0, %v10090_v58  ;;  %v7400_v50 = vmul.f32 %v11274_v46, %v11266_v45 }
0x2932   :  { %10103 = vmatpush3.msra.mxu0 %v8812_v25  ;;  %v10093_v42 = vpop.f32.mrb[90].mxu0  ;;  %11275 = vrcp.f32 %v7389_v40 }
0x2933   :  { %10645 = vmatprep.subr.bf16.mxu0 %v10644_v9  ;;  %v7040_v1 = vpop.f32.mrb[91].mxu0  ;;  %11277 = vrcp.f32 %v7392_v4 }
0x2934   :  { %10099 = vmatprep.mubr.msk.f32.mxu0 %vm212_vm0, %v7040_v1 }
0x2935   :  { %v7395_v10 = vpop.xlane.xlu1 %7394  ;;  %10100 = vmatmul.mubr.msk.f32.gmra.mrb[94].mxu0 %vm212_vm0, %v10093_v42 }
0x2936   :  { %10104 = vmatprep.mubr.msk.f32.mxu0 %vm212_vm0, %v13004_v29  ;;  %11279 = vrcp.f32 %v7395_v10 }
0x2939   :  { %v10996_v15 = vpop.permute.xlu1 %10995  ;;  %10105 = vmatmul.mubr.msk.f32.vlgmr.msra.gmra.mrb[92].mxu0 %vm212_vm0, %v13002_v0 }
0x293a   :  { %v10998_v5 = vunpack.i.h.bf16 %v10996_v15  ;;  %v10997_v17 = vunpack.i.l.bf16 %v10996_v15  ;;  %10647 = vmatpush3.bf16.msra.mxu0 %v10644_v9  ;;  %10107 = vmatprep.mubr.msk.f32.mxu0 %vm212_vm0, %v13008_v63 }
0x293c   :  { %v10648_v44 = vpack.c.bf16 %v10998_v5, %v10997_v17  ;;  %v11276_v18 = vpop.eup %11275 }
0x293d   :  { %10108 = vmatmul.mubr.msk.f32.gmra.mrb[94].mxu0 %vm212_vm0, %v13006_v31  ;;  %v11278_v21 = vpop.eup %11277  ;;  %v7401_v22 = vmul.f32 %v11276_v18, %v11270_v59 }
0x293e   :  { %10649 = vmatprep.subr.bf16.mxu0 %v10648_v44  ;;  %10132 = vmatprep.mubr.msk.f32.mxu0 %vm325_vm1, %v7400_v50  ;;  %v10156_v29 = vpop.f32.mrb[96].mxu1  ;;  %v7402_v24 = vmul.f32 %v11278_v21, %v11268_v56 }
0x293f   :  { %v7718_v54 = vadd.f32 %v10156_v29, %v11946_v13  ;;  %10651 = vmatpush3.bf16.msra.mxu0 %v10648_v44  ;;  %v7712_v0 = vpop.f32.mrb[97].mxu1  ;;  %v8815_v44 = vld [vmem:[%s13255_s10 + $0x38] sm:$0xff] }
0x2940   :  { %v7713_v52 = vadd.f32 %v7712_v0, %v11944_v11  ;;  %v11280_v23 = vpop.eup %11279 }
0x2941   :  { %v7734_v63 = vsel %vm325_vm1, %v7718_v54, -inf  ;;  %v7403_v11 = vmul.f32 %v11280_v23, %v13093_v34 }
0x2942   :  { %v10159_v27 = vpop.f32.mrb[98].mxu1  ;;  %7735 = vmax.xlane.f32.xlu0 %v7734_v63  ;;  %10133 = vmatmul.mubr.msk.f32.vlgmr.msra.gmra.mrb[96].mxu0 %vm325_vm1, %v7401_v22  ;;  %v7731_v31 = vsel %vm325_vm1, %v7713_v52, -inf  ;;  %v8881_v63 = vld [vmem:[%s13256_s11 + $0x1] ss:$0 sm:$0xff] }
0x2943   :  { %v7728_v48 = vadd.f32 %v10159_v27, %v11953_v20  ;;  %v7722_v14 = vpop.f32.mrb[99].mxu1  ;;  %7732 = vmax.xlane.f32.xlu1 %v7731_v31  ;;  %10135 = vmatprep.mubr.msk.f32.mxu0 %vm325_vm1, %v7402_v24  ;;  %v8814_v20 = vld [vmem:[%s13255_s10 + $0x30] sm:$0xff] }
0x2944   :  { %v7723_v13 = vadd.f32 %v7722_v14, %v11949_v16  ;;  %10138 = vmatprep.subr.mxu0 %v8814_v20 }
0x2945   :  { %v7740_v55 = vsel %vm325_vm1, %v7728_v48, -inf  ;;  %10139 = vmatpush3.msra.mxu0 %v8814_v20 }
0x2946   :  { %10136 = vmatmul.mubr.msk.f32.gmra.mrb[98].mxu0 %vm325_vm1, %v7403_v11  ;;  %v7737_v28 = vsel %vm325_vm1, %v7723_v13, -inf }
0x2947   :  { %7738 = vmax.xlane.f32.xlu0 %v7737_v28  ;;  %7741 = vmax.xlane.f32.xlu1 %v7740_v55 }
0x29cf   :  { %v7736_v8 = vpop.xlane.xlu0 %7735 }
0x29d0   :  { %v7744_v2 = vsub.f32 %v7718_v54, %v7736_v8  ;;  %v7733_v32 = vpop.xlane.xlu1 %7732 }
0x29d1   :  { %v7743_v16 = vsub.f32 %v7713_v52, %v7733_v32 }
0x29d2   :  { %v7749_v36 = vmul.f32 1.442695, %v7744_v2 }
0x29d3   :  { %v7747_v41 = vmul.f32 1.442695, %v7743_v16 }
0x29d4   :  { %11281 = vpow2.f32 %v7749_v36  ;;  %v7742_v47 = vpop.xlane.xlu1 %7741  ;;  %v7739_v53 = vpop.xlane.xlu0 %7738 }
0x29d5   :  { %11283 = vpow2.f32 %v7747_v41  ;;  %v7746_v6 = vsub.f32 %v7728_v48, %v7742_v47  ;;  %v7745_v45 = vsub.f32 %v7723_v13, %v7739_v53 }
0x29d7   :  { %v7753_v61 = vmul.f32 1.442695, %v7746_v6  ;;  %v7751_v62 = vmul.f32 1.442695, %v7745_v45 }
0x29d9   :  { %11285 = vpow2.f32 %v7753_v61 }
0x29da   :  { %11287 = vpow2.f32 %v7751_v62 }
0x29de   :  { %v11282_v12 = vpop.eup %11281 }
0x29df   :  { %v11284_v56 = vpop.eup %11283  ;;  %v7758_v30 = vsel %vm325_vm1, %v11282_v12, 0.0 }
0x29e0   :  { %7759 = vadd.xlane.f32.xlu1 %v7758_v30  ;;  %v7755_v59 = vsel %vm325_vm1, %v11284_v56, 0.0 }
0x29e1   :  { %7756 = vadd.xlane.f32.xlu0 %v7755_v59 }
0x29e3   :  { %v11286_v49 = vpop.eup %11285 }
0x29e4   :  { %v11288_v34 = vpop.eup %11287  ;;  %v7764_v60 = vsel %vm325_vm1, %v11286_v49, 0.0 }
0x29e5   :  { %7765 = vadd.xlane.f32.xlu1 %v7764_v60  ;;  %v7761_v38 = vsel %vm325_vm1, %v11288_v34, 0.0 }
0x29e6   :  { %7762 = vadd.xlane.f32.xlu0 %v7761_v38 }
0x29f6   :  { %11005 = vrot.lane.b32.xlu1 %v12948_v43, %s11541_s3 }
0x29fc   :  { %11000 = vrot.lane.b32.xlu0 %v13030_v39, %s11541_s3 }
0x2a15   :  { %v10134_v25 = vpop.f32.mrb[96].mxu0 }
0x2a16   :  { %v7494_v19 = vpop.f32.mrb[97].mxu0 }
0x2a17   :  { %10140 = vmatprep.mubr.msk.f32.mxu0 %vm212_vm0, %v7494_v19 }
0x2a18   :  { %10141 = vmatmul.mubr.msk.f32.vlgmr.msra.gmra.mrb[92].mxu0 %vm212_vm0, %v10134_v25 }
0x2a19   :  { %v10137_v4 = vpop.f32.mrb[98].mxu0 }
0x2a1a   :  { %v7504_v51 = vpop.f32.mrb[99].mxu0 }
0x2a1b   :  { %10143 = vmatprep.mubr.msk.f32.mxu0 %vm212_vm0, %v7504_v51  ;;  %v8077_v51 = vld [vmem:[#allocation7 + $0x28] sm:$0xff] }
0x2a1c   :  { %10144 = vmatmul.mubr.msk.f32.gmra.mrb[94].mxu0 %vm212_vm0, %v10137_v4  ;;  %v8076_v4 = vld [vmem:[#allocation7 + $0x20] sm:$0xff] }
0x2a6d   :  { %v7760_v33 = vpop.xlane.xlu1 %7759 }
0x2a6e   :  { %v7757_v57 = vpop.xlane.xlu0 %7756 }
0x2a6f   :  { %11289 = vrcp.f32 %v7757_v57  ;;  %v8078_v57 = vld [vmem:[#allocation7 + $0x30] sm:$0xff] }
0x2a70   :  { %11291 = vrcp.f32 %v7760_v33  ;;  %v10672_v33 = vpack.c.bf16 %v8077_v51, %v8076_v4 }
0x2a72   :  { %v7766_v58 = vpop.xlane.xlu1 %7765  ;;  %10673 = vmatprep.subr.bf16.mxu1 %v10672_v33 }
0x2a73   :  { %v7763_v43 = vpop.xlane.xlu0 %7762  ;;  %10675 = vmatpush3.bf16.msra.mxu1 %v10672_v33 }
0x2a74   :  { %11293 = vrcp.f32 %v7763_v43 }
0x2a75   :  { %11295 = vrcp.f32 %v7766_v58  ;;  %v8079_v58 = vld [vmem:[#allocation7 + $0x38] sm:$0xff] }
0x2a76   :  { %v11006_v39 = vpop.permute.xlu1 %11005  ;;  %v10676_v43 = vpack.c.bf16 %v8079_v58, %v8078_v57 }
0x2a77   :  { %v11001_v37 = vpop.permute.xlu0 %11000  ;;  %v11008_v9 = vunpack.i.h.bf16 %v11006_v39  ;;  %v11007_v40 = vunpack.i.l.bf16 %v11006_v39  ;;  %v8889_v39 = vld [vmem:[%s13259_s14 + $0x40] sm:$0xff] }
0x2a78   :  { %v11003_v42 = vunpack.i.h.bf16 %v11001_v37  ;;  %v11002_v1 = vunpack.i.l.bf16 %v11001_v37  ;;  %10677 = vmatprep.subr.bf16.mxu1 %v10676_v43  ;;  %v8890_v37 = vld [vmem:[%s13259_s14 + $0x48] sm:$0xff] }
0x2a79   :  { %v11290_v10 = vpop.eup %11289  ;;  %v10668_v5 = vpack.c.bf16 %v11008_v9, %v11007_v40  ;;  %10679 = vmatpush3.bf16.msra.mxu1 %v10676_v43  ;;  %v10680_v9 = vpack.c.bf16 %v8890_v37, %v8889_v39 }
0x2a7a   :  { %v10664_v46 = vpack.c.bf16 %v11003_v42, %v11002_v1  ;;  %v7771_v15 = vmul.f32 %v11290_v10, %v11284_v56  ;;  %v11292_v17 = vpop.eup %11291 }
0x2a7b   :  { %v7772_v18 = vmul.f32 %v11292_v17, %v11282_v12  ;;  %10681 = vmatprep.subr.bf16.mxu1 %v10680_v9 }
0x2a7c   :  { %10665 = vmatprep.subr.bf16.mxu0 %v10664_v46  ;;  %10168 = vmatprep.mubr.msk.f32.mxu0 %vm325_vm1, %v7771_v15 }
0x2a7d   :  { %10667 = vmatpush3.bf16.msra.mxu0 %v10664_v46 }
0x2a7e   :  { %10669 = vmatprep.subr.bf16.mxu0 %v10668_v5  ;;  %v11294_v50 = vpop.eup %11293 }
0x2a7f   :  { %v11296_v21 = vpop.eup %11295  ;;  %v7773_v29 = vmul.f32 %v11294_v50, %v11288_v34 }
0x2a80   :  { %v7774_v54 = vmul.f32 %v11296_v21, %v11286_v49 }
0x2a81   :  { %10671 = vmatpush3.bf16.msra.mxu0 %v10668_v5 }
0x2a82   :  { %10174 = vmatprep.subr.mxu0 %v8815_v44 }
0x2a84   :  { %10169 = vmatmul.mubr.msk.f32.vlgmr.msra.gmra.mrb[100].mxu0 %vm325_vm1, %v7772_v18 }
0x2a85   :  { %10171 = vmatprep.mubr.msk.f32.mxu0 %vm325_vm1, %v7773_v29  ;;  %10175 = vmatpush3.msra.mxu0 %v8815_v44 }
0x2a88   :  { %10172 = vmatmul.mubr.msk.f32.gmra.mrb[102].mxu0 %vm325_vm1, %v7774_v54  ;;  %v8882_v54 = vld [vmem:[#allocation12 + $0x4] ss:$0 sm:$0xff] }
0x2b57   :  { %v10170_v0 = vpop.f32.mrb[100].mxu0 }
0x2b58   :  { %v7865_v22 = vpop.f32.mrb[101].mxu0 }
0x2b59   :  { %10176 = vmatprep.mubr.msk.f32.mxu0 %vm212_vm0, %v7865_v22 }
0x2b5a   :  { %10177 = vmatmul.mubr.msk.f32.vlgmr.msra.gmra.mrb[92].mxu0 %vm212_vm0, %v10170_v0 }
0x2b5b   :  { %v10173_v52 = vpop.f32.mrb[102].mxu0 }
0x2b5c   :  { %v7875_v23 = vpop.f32.mrb[103].mxu0 }
0x2b5d   :  { %10179 = vmatprep.mubr.msk.f32.mxu0 %vm212_vm0, %v7875_v23  ;;  %v8883_v23 = vld [vmem:[#allocation13 + $0x4] ss:$0 sm:$0xff] }
0x2b5e   :  { %10180 = vmatmul.mubr.msk.f32.gmra.mrb[94].mxu0 %vm212_vm0, %v10173_v52 }
0x2c2d   :  { %v10178_v24 = vpop.f32.mrb[92].mxu0 }
0x2c2e   :  { %v7992_v27 = vadd.f32 %v10178_v24, %v8881_v63  ;;  %v7962_v31 = vpop.f32.mrb[93].mxu0 }
0x2c2f   :  { %v7991_v48 = vadd.f32 %v8881_v63, %v7962_v31  ;;  %v8892_v31 = vld [vmem:[%s13259_s14 + $0x58] sm:$0xff] }
0x2c30   :  { %v7996_v14 = vadd.f32 %v7992_v27, %v12880_v35  ;;  %v8891_v27 = vld [vmem:[%s13259_s14 + $0x50] sm:$0xff] }
0x2c31   :  { %v7995_v13 = vadd.f32 %v7991_v48, %v12878_v3  ;;  %v10181_v11 = vpop.f32.mrb[94].mxu0 }
0x2c32   :  { %v7994_v55 = vadd.f32 %v10181_v11, %v8881_v63  ;;  %v7972_v28 = vpop.f32.mrb[95].mxu0  ;;  %v8006_v20 = vsel %vm325_vm1, %v7996_v14, 0.0 }
0x2c33   :  { %v7993_v8 = vadd.f32 %v8881_v63, %v7972_v28  ;;  %8007 = vadd.xlane.f32.xlu0 %v8006_v20  ;;  %v8003_v2 = vsel %vm325_vm1, %v7995_v13, 0.0  ;;  %v10684_v20 = vpack.c.bf16 %v8892_v31, %v8891_v27 }
0x2c34   :  { %v7998_v32 = vadd.f32 %v7994_v55, %v12886_v26  ;;  %8004 = vadd.xlane.f32.xlu1 %v8003_v2 }
0x2c35   :  { %v7997_v16 = vadd.f32 %v7993_v8, %v12888_v7 }
0x2c36   :  { %v8012_v36 = vsel %vm325_vm1, %v7998_v32, 0.0 }
0x2c37   :  { %v8009_v35 = vsel %vm325_vm1, %v7997_v16, 0.0 }
0x2c38   :  { %8013 = vadd.xlane.f32.xlu1 %v8012_v36  ;;  %8010 = vadd.xlane.f32.xlu0 %v8009_v35 }
0x2cc0   :  { %v8008_v3 = vpop.xlane.xlu0 %8007 }
0x2cc1   :  { %v8016_v41 = vmul.f32 0.03125, %v8008_v3  ;;  %v8005_v47 = vpop.xlane.xlu1 %8004 }
0x2cc2   :  { %v8015_v53 = vmul.f32 0.03125, %v8005_v47  ;;  %v8896_v47 = vld [vmem:[%s13259_s14 + $0x78] sm:$0xff] }
0x2cc3   :  { %v8020_v6 = vsub.f32 %v7996_v14, %v8016_v41  ;;  %v8895_v41 = vld [vmem:[%s13259_s14 + $0x70] sm:$0xff] }
0x2cc4   :  { %v8019_v45 = vsub.f32 %v7995_v13, %v8015_v53  ;;  %v10692_v53 = vpack.c.bf16 %v8896_v47, %v8895_v41 }
0x2cc5   :  { %v8014_v61 = vpop.xlane.xlu1 %8013  ;;  %v8011_v62 = vpop.xlane.xlu0 %8010  ;;  %v8024_v12 = vmul.f32 %v8020_v6, %v8020_v6 }
0x2cc6   :  { %v8018_v56 = vmul.f32 0.03125, %v8014_v61  ;;  %v8017_v26 = vmul.f32 0.03125, %v8011_v62  ;;  %v8023_v30 = vmul.f32 %v8019_v45, %v8019_v45 }
0x2cc7   :  { %v8030_v7 = vsel %vm325_vm1, %v8024_v12, 0.0 }
0x2cc8   :  { %v8022_v59 = vsub.f32 %v7998_v32, %v8018_v56  ;;  %v8021_v49 = vsub.f32 %v7997_v16, %v8017_v26  ;;  %8031 = vadd.xlane.f32.xlu1 %v8030_v7  ;;  %v8027_v34 = vsel %vm325_vm1, %v8023_v30, 0.0  ;;  %v8893_v32 = vld [vmem:[%s13259_s14 + $0x60] sm:$0xff]  ;;  %v8894_v16 = vld [vmem:[%s13259_s14 + $0x68] sm:$0xff] }
0x2cc9   :  { %8028 = vadd.xlane.f32.xlu0 %v8027_v34  ;;  %v10688_v3 = vpack.c.bf16 %v8894_v16, %v8893_v32 }
0x2cca   :  { %v8026_v60 = vmul.f32 %v8022_v59, %v8022_v59  ;;  %v8025_v38 = vmul.f32 %v8021_v49, %v8021_v49 }
0x2ccc   :  { %v8036_v25 = vsel %vm325_vm1, %v8026_v60, 0.0  ;;  %v8033_v19 = vsel %vm325_vm1, %v8025_v38, 0.0  ;;  %v8897_v38 = vld [vmem:[#allocation10 + $0x1] ss:$0 sm:$0xff] }
0x2ccd   :  { %8037 = vadd.xlane.f32.xlu1 %v8036_v25  ;;  %8034 = vadd.xlane.f32.xlu0 %v8033_v19 }
0x2d55   :  { %v8032_v40 = vpop.xlane.xlu1 %8031 }
0x2d56   :  { %v8040_v42 = vmul.f32 0.03125, %v8032_v40  ;;  %v8029_v1 = vpop.xlane.xlu0 %8028 }
0x2d57   :  { %v8039_v10 = vmul.f32 0.03125, %v8029_v1 }
0x2d58   :  { %v8044_v46 = vadd.f32 1e-05, %v8040_v42 }
0x2d59   :  { %v8043_v15 = vadd.f32 1e-05, %v8039_v10 }
0x2d5a   :  { %11297 = vrsqrt.f32 %v8044_v46  ;;  %v8038_v5 = vpop.xlane.xlu1 %8037  ;;  %v8035_v17 = vpop.xlane.xlu0 %8034 }
0x2d5b   :  { %11299 = vrsqrt.f32 %v8043_v15  ;;  %v8042_v44 = vmul.f32 0.03125, %v8038_v5  ;;  %v8041_v50 = vmul.f32 0.03125, %v8035_v17 }
0x2d5d   :  { %v8046_v18 = vadd.f32 1e-05, %v8042_v44  ;;  %v8045_v21 = vadd.f32 1e-05, %v8041_v50 }
0x2d5f   :  { %11301 = vrsqrt.f32 %v8046_v18 }
0x2d60   :  { %11303 = vrsqrt.f32 %v8045_v21 }
0x2d64   :  { %v11298_v29 = vpop.eup %11297 }
0x2d65   :  { %v11300_v0 = vpop.eup %11299  ;;  %v8052_v22 = vmul.f32 %v11298_v29, %v8020_v6  ;;  %v8884_v6 = vld [vmem:[#allocation9 + $0x1] ss:$0 sm:$0xff] }
0x2d66   :  { %v8051_v52 = vmul.f32 %v11300_v0, %v8019_v45 }
0x2d67   :  { %v8062_v63 = vmul.f32 %v8882_v54, %v8052_v22 }
0x2d68   :  { %v8061_v24 = vmul.f32 %v8882_v54, %v8051_v52 }
0x2d69   :  { %v11302_v48 = vpop.eup %11301  ;;  %v8072_v55 = vadd.f32 %v8883_v23, %v8062_v63 }
0x2d6a   :  { %v11304_v14 = vpop.eup %11303  ;;  %v8071_v13 = vadd.f32 %v8883_v23, %v8061_v24  ;;  %v8054_v11 = vmul.f32 %v11302_v48, %v8022_v59 }
0x2d6b   :  { %v8053_v28 = vmul.f32 %v11304_v14, %v8021_v49 }
0x2d6c   :  { %10190 = vmatprep.mubr.msk.f32.mxu1 %vm325_vm1, %v8071_v13  ;;  %v8064_v8 = vmul.f32 %v8882_v54, %v8054_v11  ;;  %v8383_v11 = vld [vmem:[%s13263_s18] sm:$0xff] }
0x2d6d   :  { %10191 = vmatmul.mubr.msk.f32.vlgmr.msra.gmra.mrb[100].mxu1 %vm325_vm1, %v8072_v55  ;;  %v8063_v2 = vmul.f32 %v8882_v54, %v8053_v28 }
0x2d6e   :  { %v8074_v36 = vadd.f32 %v8883_v23, %v8064_v8  ;;  %10683 = vmatpush3.bf16.msra.mxu1 %v10680_v9  ;;  %v8386_v8 = vld [vmem:[%s13263_s18 + $0x18] sm:$0xff] }
0x2d6f   :  { %v8073_v35 = vadd.f32 %v8883_v23, %v8063_v2  ;;  %10685 = vmatprep.subr.bf16.mxu1 %v10684_v20 }
0x2d71   :  { %10193 = vmatprep.mubr.msk.f32.mxu1 %vm325_vm1, %v8073_v35 }
0x2d72   :  { %10194 = vmatmul.mubr.msk.f32.gmra.mrb[102].mxu1 %vm325_vm1, %v8074_v36 }
0x2d73   :  { %10687 = vmatpush3.bf16.msra.mxu1 %v10684_v20  ;;  %v8385_v20 = vld [vmem:[%s13263_s18 + $0x10] sm:$0xff] }
0x2d74   :  { %10689 = vmatprep.subr.bf16.mxu1 %v10688_v3  ;;  %v10700_v2 = vpack.c.bf16 %v8386_v8, %v8385_v20 }
0x2d77   :  { %10691 = vmatpush3.bf16.msra.mxu1 %v10688_v3 }
0x2d78   :  { %10693 = vmatprep.subr.bf16.mxu1 %v10692_v53 }
0x2d7b   :  { %10695 = vmatpush3.bf16.msra.mxu1 %v10692_v53 }
0x2e40   :  { %v10192_v45 = vpop.f32.mrb[100].mxu1 }
0x2e41   :  { %v8172_v61 = vadd.f32 %v10192_v45, %v8884_v6  ;;  %v8166_v62 = vpop.f32.mrb[101].mxu1 }
0x2e42   :  { %v8167_v12 = vadd.f32 %v8884_v6, %v8166_v62 }
0x2e43   :  { %v8186_v26 = vmax.f32 %v8172_v61, 0.0 }
0x2e44   :  { %v8185_v56 = vmax.f32 %v8167_v12, 0.0 }
0x2e45   :  { %v10195_v30 = vpop.f32.mrb[102].mxu1 }
0x2e46   :  { %v8182_v7 = vadd.f32 %v10195_v30, %v8884_v6  ;;  %v8176_v59 = vpop.f32.mrb[103].mxu1  ;;  %10212 = vmatprep.mubr.msk.f32.mxu1 %vm4171_vm7, %v8185_v56  ;;  %v8902_v56 = vld [vmem:[#allocation12 + $0x5] ss:$0 sm:$0xff] }
0x2e47   :  { %v8177_v49 = vadd.f32 %v8884_v6, %v8176_v59  ;;  %10213 = vmatmul.mubr.msk.f32.vlgmr.msra.gmra.mrb[104].mxu1 %vm4171_vm7, %v8186_v26  ;;  %v8903_v59 = vld [vmem:[#allocation13 + $0x5] ss:$0 sm:$0xff] }
0x2e48   :  { %v8188_v60 = vmax.f32 %v8182_v7, 0.0 }
0x2e49   :  { %v8187_v34 = vmax.f32 %v8177_v49, 0.0 }
0x2e4b   :  { %10215 = vmatprep.mubr.msk.f32.mxu1 %vm4171_vm7, %v8187_v34 }
0x2e4c   :  { %10216 = vmatmul.mubr.msk.f32.gmra.mrb[106].mxu1 %vm4171_vm7, %v8188_v60 }
0x2f1a   :  { %v10214_v25 = vpop.f32.mrb[104].mxu1 }
0x2f1b   :  { %v8290_v19 = vadd.f32 %v10214_v25, %v8897_v38  ;;  %v8284_v4 = vpop.f32.mrb[105].mxu1 }
0x2f1c   :  { %v8285_v51 = vadd.f32 %v8897_v38, %v8284_v4 }
0x2f1d   :  { %v8304_v33 = vadd.f32 %v8290_v19, %v8072_v55  ;;  %v8384_v55 = vld [vmem:[%s13263_s18 + $0x8] sm:$0xff] }
0x2f1e   :  { %v8303_v57 = vadd.f32 %v8285_v51, %v8071_v13  ;;  %v10696_v28 = vpack.c.bf16 %v8384_v55, %v8383_v11 }
0x2f1f   :  { %v10217_v58 = vpop.f32.mrb[106].mxu1  ;;  %v8314_v43 = vsel %vm325_vm1, %v8304_v33, 0.0 }
0x2f20   :  { %v8300_v39 = vadd.f32 %v10217_v58, %v8897_v38  ;;  %v8294_v37 = vpop.f32.mrb[107].mxu1  ;;  %8315 = vadd.xlane.f32.xlu1 %v8314_v43  ;;  %v8311_v9 = vsel %vm325_vm1, %v8303_v57, 0.0  ;;  %10697 = vmatprep.subr.bf16.mxu0 %v10696_v28 }
0x2f21   :  { %v8295_v40 = vadd.f32 %v8897_v38, %v8294_v37  ;;  %8312 = vadd.xlane.f32.xlu0 %v8311_v9  ;;  %10699 = vmatpush3.bf16.msra.mxu0 %v10696_v28 }
0x2f22   :  { %v8306_v42 = vadd.f32 %v8300_v39, %v8074_v36  ;;  %10701 = vmatprep.subr.bf16.mxu0 %v10700_v2  ;;  %v8904_v39 = vld [vmem:[#allocation15] ss:$0 sm:$0xff] }
0x2f23   :  { %v8305_v1 = vadd.f32 %v8295_v40, %v8073_v35 }
0x2f24   :  { %v8320_v10 = vsel %vm325_vm1, %v8306_v42, 0.0 }
0x2f25   :  { %8321 = vadd.xlane.f32.xlu1 %v8320_v10  ;;  %v8317_v46 = vsel %vm325_vm1, %v8305_v1, 0.0  ;;  %10703 = vmatpush3.bf16.msra.mxu0 %v10700_v2 }
0x2f26   :  { %8318 = vadd.xlane.f32.xlu0 %v8317_v46 }
0x2fad   :  { %v8316_v15 = vpop.xlane.xlu1 %8315 }
0x2fae   :  { %v8324_v5 = vmul.f32 0.03125, %v8316_v15  ;;  %v8313_v17 = vpop.xlane.xlu0 %8312 }
0x2faf   :  { %v8323_v44 = vmul.f32 0.03125, %v8313_v17 }
0x2fb0   :  { %v8328_v50 = vsub.f32 %v8304_v33, %v8324_v5 }
0x2fb1   :  { %v8327_v18 = vsub.f32 %v8303_v57, %v8323_v44 }
0x2fb2   :  { %v8322_v21 = vpop.xlane.xlu1 %8321  ;;  %v8332_v29 = vmul.f32 %v8328_v50, %v8328_v50 }
0x2fb3   :  { %v8326_v54 = vmul.f32 0.03125, %v8322_v21  ;;  %v8319_v0 = vpop.xlane.xlu0 %8318  ;;  %v8331_v22 = vmul.f32 %v8327_v18, %v8327_v18 }
0x2fb4   :  { %v8325_v52 = vmul.f32 0.03125, %v8319_v0  ;;  %v8338_v23 = vsel %vm325_vm1, %v8332_v29, 0.0 }
0x2fb5   :  { %v8330_v63 = vsub.f32 %v8306_v42, %v8326_v54  ;;  %8339 = vadd.xlane.f32.xlu1 %v8338_v23  ;;  %v8335_v24 = vsel %vm325_vm1, %v8331_v22, 0.0 }
0x2fb6   :  { %v8329_v27 = vsub.f32 %v8305_v1, %v8325_v52  ;;  %8336 = vadd.xlane.f32.xlu0 %v8335_v24 }
0x2fb7   :  { %v8334_v31 = vmul.f32 %v8330_v63, %v8330_v63 }
0x2fb8   :  { %v8333_v48 = vmul.f32 %v8329_v27, %v8329_v27 }
0x2fb9   :  { %v8344_v14 = vsel %vm325_vm1, %v8334_v31, 0.0 }
0x2fba   :  { %8345 = vadd.xlane.f32.xlu1 %v8344_v14  ;;  %v8341_v13 = vsel %vm325_vm1, %v8333_v48, 0.0 }
0x2fbb   :  { %8342 = vadd.xlane.f32.xlu0 %v8341_v13 }
0x3042   :  { %v8340_v32 = vpop.xlane.xlu1 %8339 }
0x3043   :  { %v8348_v16 = vmul.f32 0.03125, %v8340_v32  ;;  %v8337_v36 = vpop.xlane.xlu0 %8336 }
0x3044   :  { %v8347_v35 = vmul.f32 0.03125, %v8337_v36 }
0x3045   :  { %v8352_v3 = vadd.f32 1e-05, %v8348_v16 }
0x3046   :  { %v8351_v41 = vadd.f32 1e-05, %v8347_v35 }
0x3047   :  { %11305 = vrsqrt.f32 %v8352_v3  ;;  %v8346_v47 = vpop.xlane.xlu1 %8345 }
0x3048   :  { %11307 = vrsqrt.f32 %v8351_v41  ;;  %v8350_v53 = vmul.f32 0.03125, %v8346_v47  ;;  %v8343_v6 = vpop.xlane.xlu0 %8342 }
0x3049   :  { %v8349_v45 = vmul.f32 0.03125, %v8343_v6 }
0x304a   :  { %v8354_v61 = vadd.f32 1e-05, %v8350_v53 }
0x304b   :  { %v8353_v62 = vadd.f32 1e-05, %v8349_v45 }
0x304c   :  { %11309 = vrsqrt.f32 %v8354_v61 }
0x304d   :  { %11311 = vrsqrt.f32 %v8353_v62 }
0x3051   :  { %v11306_v12 = vpop.eup %11305 }
0x3052   :  { %v11308_v26 = vpop.eup %11307  ;;  %v8360_v30 = vmul.f32 %v11306_v12, %v8328_v50 }
0x3053   :  { %v8359_v7 = vmul.f32 %v11308_v26, %v8327_v18 }
0x3054   :  { %v8370_v49 = vmul.f32 %v8902_v56, %v8360_v30 }
0x3055   :  { %v8369_v34 = vmul.f32 %v8902_v56, %v8359_v7 }
0x3056   :  { %v11310_v60 = vpop.eup %11309  ;;  %v8380_v4 = vadd.f32 %v8903_v59, %v8370_v49 }
0x3057   :  { %v11312_v38 = vpop.eup %11311  ;;  %v8379_v25 = vadd.f32 %v8903_v59, %v8369_v34  ;;  %v8362_v19 = vmul.f32 %v11310_v60, %v8330_v63 }
0x3058   :  { %v8361_v51 = vmul.f32 %v11312_v38, %v8329_v27 }
0x3059   :  { %10226 = vmatprep.mubr.msk.f32.mxu0 %vm325_vm1, %v8379_v25  ;;  %v8372_v33 = vmul.f32 %v8902_v56, %v8362_v19 }
0x305a   :  { %10227 = vmatmul.mubr.msk.f32.vlgmr.msra.gmra.mrb[104].mxu0 %vm325_vm1, %v8380_v4  ;;  %v8371_v57 = vmul.f32 %v8902_v56, %v8361_v51 }
0x305b   :  { %v8382_v43 = vadd.f32 %v8903_v59, %v8372_v33 }
0x305c   :  { %v8381_v58 = vadd.f32 %v8903_v59, %v8371_v57 }
0x305e   :  { %10229 = vmatprep.mubr.msk.f32.mxu0 %vm325_vm1, %v8381_v58 }
0x305f   :  { %10230 = vmatmul.mubr.msk.f32.gmra.mrb[106].mxu0 %vm325_vm1, %v8382_v43 }
0x312d   :  { %v10228_v37 = vpop.f32.mrb[104].mxu0 }
0x312e   :  { %v8478_v9 = vadd.f32 %v10228_v37, %v8904_v39  ;;  %v8472_v40 = vpop.f32.mrb[105].mxu0 }
0x312f   :  { %v8473_v42 = vadd.f32 %v8904_v39, %v8472_v40 }
0x3130   :  { %8492 = vst.msk [vmem:[%s13265_s20 + $0x8] sm:$0xff] %vm212_vm0, %v8478_v9 }
0x3131   :  { %8491 = vst.msk [vmem:[%s13265_s20] sm:$0xff] %vm212_vm0, %v8473_v42 }
0x3132   :  { %v10231_v1 = vpop.f32.mrb[106].mxu0 }
0x3133   :  { %v8488_v10 = vadd.f32 %v10231_v1, %v8904_v39  ;;  %v8482_v46 = vpop.f32.mrb[107].mxu0 }
0x3134   :  { %v8483_v15 = vadd.f32 %v8904_v39, %v8482_v46 }
0x3135   :  { %8494 = vst.msk [vmem:[%s13265_s20 + $0x18] sm:$0xff] %vm212_vm0, %v8488_v10 }
0x3136   :  { %8493 = vst.msk [vmem:[%s13265_s20 + $0x10] sm:$0xff] %vm212_vm0, %v8483_v15 }
0x3137   :  { %8499 = vsyncpa [#allocation3], 1 }
0x3138   :  { %8500 = vsyncpa [#allocation5], 1 }
0x3139   :  { %8501 = vsyncpa [#allocation8], 1 }
0x313a   :  { %8502 = vsyncpa [#allocation11], 1 }
0x313b   :  { %8503 = vsyncpa [#allocation14], 1 }

</bundles_post_ra>
